<compile_context>
chip_gen: v6e
topology: v6e:2x2x1
jax: 0.10.0
libtpu: 0.0.40
codegen_flags: <defaults>
</compile_context>

<pallas_src>
import jax
import jax.numpy as jnp
from jax import lax
from jax.experimental import pallas as pl
from jax.experimental.pallas import tpu as pltpu


# ---------------------------------------------------------------------------
# Pallas kernel: fused multi-scale shared-MLP + max-pool (+ optional Linear head)
# ---------------------------------------------------------------------------

def _make_sa_kernel(n_scales, c3_list, c_total, with_head):
    """Build the fused SA-stage kernel.

    Ref order:
      g_s                      (1, TP, K_s, Cin_s)  bf16 grouped features, one per scale
      (w1,b1,w2,b2,w3,b3)_s    conv weights (bf16, BN scale folded) + f32 bias rows (1,C)
      [head] xyz               (1, TP, 3)           f32 sampled centers
      [head] lw_s              (C3_s, Cout_lin)     bf16 per-scale rows of the Linear weight
      [head] lb                (1, Cout_lin)        f32 Linear bias
      o_ref                    (1, TP, c_total)     bf16 (feature stage) / f32 (head stage)
    """

    def kernel(*refs):
        i = 0
        g_refs = refs[i:i + n_scales]; i += n_scales
        wb_refs = []
        for _ in range(n_scales):
            wb_refs.append(refs[i:i + 6]); i += 6
        if with_head:
            xyz_ref = refs[i]; i += 1
            lw_refs = refs[i:i + n_scales]; i += n_scales
            lb_ref = refs[i]; i += 1
        o_ref = refs[i]
        tp = o_ref.shape[1]

        accs = []
        for s in range(n_scales):
            g_ref = g_refs[s]
            w1, b1, w2, b2, w3, b3 = wb_refs[s]
            _, _, K, cin = g_ref.shape
            c3 = c3_list[s]
            # Whole-K tile (no nsample chunking): one 3-matmul MXU chain per scale, then a
            # single strided max-pool over the nsample axis.
            x = g_ref[0].reshape(tp * K, cin)                               # bf16
            h = jnp.dot(x, w1[...], preferred_element_type=jnp.float32)
            h = jnp.maximum(h + b1[...], 0.0).astype(jnp.bfloat16)
            h = jnp.dot(h, w2[...], preferred_element_type=jnp.float32)
            h = jnp.maximum(h + b2[...], 0.0).astype(jnp.bfloat16)
            y = jnp.dot(h, w3[...], preferred_element_type=jnp.float32)
            y = jnp.maximum(y + b3[...], 0.0)                               # (tp*K, c3) f32
            accs.append(jnp.max(y.reshape(tp, K, c3), axis=1))              # pooled (tp, c3)

        if with_head:
            # Fused nn.Linear head: contract each scale's pooled block with its slice of the
            # Linear weight (no re-concat of the 256-wide features), then slice-store the
            # xyz and Linear output directly into the output block.
            lin = lb_ref[...]
            for s in range(n_scales):
                lin = lin + jnp.dot(accs[s].astype(jnp.bfloat16), lw_refs[s][...],
                                    preferred_element_type=jnp.float32)
            o_ref[0, :, 0:3] = xyz_ref[0].astype(o_ref.dtype)
            o_ref[0, :, 3:c_total] = lin.astype(o_ref.dtype)
        else:
            # Per-scale slice stores (no in-kernel concatenate); zero the lane padding so
            # the next stage's zero-padded conv rows see clean zeros.
            off = 0
            for s in range(n_scales):
                o_ref[0, :, off:off + c3_list[s]] = accs[s].astype(o_ref.dtype)
                off += c3_list[s]
            if off < c_total:
                o_ref[0, :, off:c_total] = jnp.zeros((tp, c_total - off), o_ref.dtype)

    return kernel


# ---------------------------------------------------------------------------
# Pallas wrapper
# ---------------------------------------------------------------------------

def _round_up(x, m):
    return ((x + m - 1) // m) * m


def _pick_tile(s, cap, batch=1, min_steps=1):
    """Largest tile dividing `s` that is <= cap and a multiple of 8 (or the full axis,
    which is always a legal block extent), preferring tiles that leave at least
    `min_steps` grid steps (batch * s/tile) so multi-TensorCore chips get parallel work
    and the DMA pipeline has depth."""
    divs = [d for d in range(1, s + 1) if s % d == 0 and (d % 8 == 0 or d == s)]
    good = [d for d in divs if d <= cap and batch * (s // d) >= min_steps]
    if good:
        return max(good)
    small = [d for d in divs if d <= cap]
    if small:
        return max(small)
    return s


def sa_stage_pallas(groups, scale_params, head=None, out_pad=None, tile_cap=128,
                    min_steps=4):
    """Run one fused PointnetSAModuleMSG stage.

    groups       : list of (B, S, K_s, Cin_s) bf16 grouped inputs (one per radius/scale)
    scale_params : per scale, list of 3 (weight bf16 (Cin,Cout), bias f32 (1,Cout)) layers
    head         : None -> returns pooled features (B, S, out_pad) bf16 (lane-padded)
                   (new_xyz, [lw_s...], lb) -> returns (B, S, 3 + Cout_lin) f32
    """
    B, S = int(groups[0].shape[0]), int(groups[0].shape[1])
    TP = _pick_tile(S, tile_cap, batch=B, min_steps=min_steps)
    grid = (B, S // TP)
    n_scales = len(groups)
    c3_list = [int(p[-1][0].shape[1]) for p in scale_params]

    inputs, in_specs = [], []
    for g in groups:
        K, Cin = int(g.shape[2]), int(g.shape[3])
        inputs.append(g)
        in_specs.append(pl.BlockSpec((1, TP, K, Cin), lambda b, p: (b, p, 0, 0)))
    for params in scale_params:
        for w, bias in params:
            inputs.append(w)
            in_specs.append(pl.BlockSpec(w.shape, lambda b, p: (0, 0)))
            inputs.append(bias)
            in_specs.append(pl.BlockSpec(bias.shape, lambda b, p: (0, 0)))

    if head is None:
        c_feat = sum(c3_list)
        c_total = c_feat if out_pad is None else int(out_pad)
        assert c_total >= c_feat
        out_dtype = jnp.bfloat16      # lane-dense bf16: halves writeback + stage-2 gather
    else:
        new_xyz, lws, lb = head
        inputs.append(new_xyz)
        in_specs.append(pl.BlockSpec((1, TP, 3), lambda b, p: (b, p, 0)))
        for lw in lws:
            inputs.append(lw)
            in_specs.append(pl.BlockSpec(lw.shape, lambda b, p: (0, 0)))
        inputs.append(lb)
        in_specs.append(pl.BlockSpec(lb.shape, lambda b, p: (0, 0)))
        c_total = 3 + int(lb.shape[1])
        out_dtype = jnp.float32

    # Advisory cost estimate so XLA schedules/overlaps the custom call sensibly.
    flops = 0
    for g, params in zip(groups, scale_params):
        rows = int(g.shape[0]) * int(g.shape[1]) * int(g.shape[2])
        dims = [int(g.shape[3])] + [int(w.shape[1]) for w, _ in params]
        flops += 2 * rows * sum(dims[i] * dims[i + 1] for i in range(len(dims) - 1))
    if head is not None:
        flops += 2 * B * S * sum(c3_list) * int(head[2].shape[1])
    bytes_accessed = sum(int(a.size) * jnp.dtype(a.dtype).itemsize for a in inputs)
    bytes_accessed += B * S * c_total * jnp.dtype(out_dtype).itemsize

    kernel = _make_sa_kernel(n_scales, tuple(c3_list), c_total, head is not None)
    return pl.pallas_call(
        kernel,
        out_shape=jax.ShapeDtypeStruct((B, S, c_total), out_dtype),
        grid=grid,
        in_specs=in_specs,
        out_specs=pl.BlockSpec((1, TP, c_total), lambda b, p: (b, p, 0)),
        compiler_params=pltpu.CompilerParams(
            dimension_semantics=("parallel", "parallel"),
            vmem_limit_bytes=64 * 1024 * 1024),
        cost_estimate=pl.CostEstimate(flops=int(flops), transcendentals=0,
                                      bytes_accessed=int(bytes_accessed)),
    )(*inputs)


# ---------------------------------------------------------------------------
# Plain-JAX glue (data-dependent sampling / grouping)
# ---------------------------------------------------------------------------

def furthest_point_sample(xyz, npoint):
    """xyz: (B, N, 3) -> int32 indices (B, npoint). Matches CUDA FPS (seed index 0)."""
    B, N, _ = xyz.shape

    def body(i, state):
        idx, mind, last = state
        last_xyz = jnp.take_along_axis(xyz, last[:, None, None], axis=1)   # (B,1,3)
        d = jnp.sum((xyz - last_xyz) ** 2, axis=-1)                        # (B,N)
        mind = jnp.minimum(mind, d)
        nxt = jnp.argmax(mind, axis=-1).astype(jnp.int32)
        idx = idx.at[:, i].set(nxt)
        return idx, mind, nxt

    idx0 = jnp.zeros((B, npoint), jnp.int32)
    mind0 = jnp.full((B, N), 1e10, jnp.float32)
    last0 = jnp.zeros((B,), jnp.int32)
    idx, _, _ = lax.fori_loop(1, npoint, body, (idx0, mind0, last0))
    return idx


def ball_query(radius, nsample, xyz, new_xyz):
    """First-`nsample`-in-order points within `radius` of each query (CUDA semantics).
    Empty neighborhoods are padded with the first hit (index 0 if none) — matches the
    CUDA kernel's behavior."""
    N = xyz.shape[1]
    d2 = jnp.sum((new_xyz[:, :, None, :] - xyz[:, None, :, :]) ** 2, axis=-1)  # (B,S,N)
    mask = d2 < radius * radius
    ar = jnp.arange(N, dtype=jnp.int32)
    key = jnp.where(mask, ar, N + ar)                  # in-radius indices sort first, in order
    order = -lax.top_k(-key, nsample)[0]               # nsample smallest keys, ascending
    first = jnp.where(order[..., 0:1] < N, order[..., 0:1], 0)
    return jnp.where(order < N, order, first).astype(jnp.int32)


def group_points(points, idx):
    """points: (B, N, C), idx: (B, S, K) -> (B, S, K, C)."""
    B, S, K = idx.shape
    flat = idx.reshape(B, S * K)
    g = jnp.take_along_axis(points, flat[..., None], axis=1)
    return g.reshape(B, S, K, points.shape[-1])


# ---------------------------------------------------------------------------
# Parameter init (deterministic, synthetic)
# ---------------------------------------------------------------------------

def _init_mlp_params(key, spec):
    """spec = [c0, c1, c2, c3]. Conv2d 1x1 (no bias) + folded eval-mode BatchNorm:
    BN scale is multiplied into the weight; bias kept as an f32 row. Returns f32 params."""
    params = []
    for i in range(3):
        cin, cout = spec[i], spec[i + 1]
        key, kw, kg, kb, km, kv = jax.random.split(key, 6)
        w = jax.random.normal(kw, (cin, cout), jnp.float32) / jnp.sqrt(float(cin))
        gamma = jax.random.uniform(kg, (cout,), jnp.float32, minval=0.5, maxval=1.5)
        beta = jax.random.normal(kb, (cout,), jnp.float32) * 0.1
        rmean = jax.random.normal(km, (cout,), jnp.float32) * 0.1
        rvar = jax.random.uniform(kv, (cout,), jnp.float32, minval=0.5, maxval=1.5)
        scale = gamma / jnp.sqrt(rvar + 1e-5)
        bias = beta - rmean * scale
        params.append((w * scale[None, :], bias[None, :]))
    return key, params


def _pad_first_layer(w, n_feat, xyz_slot, cin_pad):
    """w rows = [xyz(3); feat(n_feat)]  ->  rows [feat @ 0:n_feat; xyz @ xyz_slot:+3; zeros],
    matching the lane-padded grouped-input layout (padding rows are zero)."""
    cout = w.shape[1]
    wp = jnp.zeros((cin_pad, cout), w.dtype)
    wp = wp.at[:n_feat].set(w[3:])
    wp = wp.at[xyz_slot:xyz_slot + 3].set(w[:3])
    return wp


class PointNet2EncoderPallas:
    """JAX/Pallas port of PointNet2Encoder (forward semantics, synthetic weights).

    TODO(synk): BatchNorm is eval-mode folded (scale folded into the conv weight);
    training-mode batch statistics are not reproduced.
    """

    def __init__(self, c_in=6, c_out=128, num_keypoints=256, npoint0=1024,
                 nsamples0=(16, 32), nsamples1=(16, 32), seed=0):
        c_feat1 = 32 + 64                        # stage-1 concatenated feature width
        self.c_feat1 = c_feat1
        self.c_feat1_pad = _round_up(c_feat1 + 3, 128)   # 128: feat + rel-xyz + zero pad
        self.xyz_slot = c_feat1                  # rel-xyz at channels [96:99] of stage-2 input
        self.sa_configs = [
            dict(npoint=npoint0, radii=(0.05, 0.1), nsamples=tuple(nsamples0),
                 mlps=[[c_in, 16, 16, 32], [c_in, 32, 32, 64]]),
            dict(npoint=num_keypoints, radii=(0.1, 0.2), nsamples=tuple(nsamples1),
                 mlps=[[c_feat1, 64, 64, 128], [c_feat1, 64, 96, 128]]),
        ]
        key = jax.random.PRNGKey(seed)
        self.sa_params = []
        for stage, cfg in enumerate(self.sa_configs):
            scale_params = []
            for spec in cfg["mlps"]:
                spec = [spec[0] + 3] + spec[1:]   # use_xyz=True adds 3 input channels
                key, layers = _init_mlp_params(key, spec)
                if stage == 1:
                    # Reorder + zero-pad the first conv's rows to the [feat | xyz | pad]
                    # 128-wide layout of the stage-2 grouped input (Cin 99 -> 128).
                    w0, b0 = layers[0]
                    layers[0] = (_pad_first_layer(w0, c_feat1, self.xyz_slot,
                                                  self.c_feat1_pad), b0)
                scale_params.append([(w.astype(jnp.bfloat16), b) for w, b in layers])
            self.sa_params.append(scale_params)

        c_out_1 = 128 + 128
        key, kw, kb = jax.random.split(key, 3)
        lin_w = jax.random.normal(kw, (c_out_1, c_out - 3), jnp.float32) / jnp.sqrt(float(c_out_1))
        self.lin_b = (jax.random.normal(kb, (c_out - 3,), jnp.float32) * 0.01)[None, :]
        # Split the Linear weight rows per scale of the last SA stage so the fused kernel
        # contracts each scale's pooled features directly (no re-concat of 256-wide feats).
        c3_last = [spec[-1] for spec in self.sa_configs[-1]["mlps"]]
        self.lin_ws, off = [], 0
        for c3 in c3_last:
            self.lin_ws.append(lin_w[off:off + c3].astype(jnp.bfloat16))
            off += c3
        self.c_out = c_out
        self.num_keypoints = num_keypoints

    def _group(self, xyz, features, cfg, xyz_slot=None):
        """FPS + per-radius ball query + gather.

        xyz_slot=None : grouped input is [rel_xyz(3) | features]                (stage 1)
        xyz_slot=k    : features is already lane-padded with zero channels at [k:];
                        rel_xyz is written into channels [k:k+3] so Cin stays 128-dense.
        """
        fps_idx = furthest_point_sample(xyz, cfg["npoint"])
        new_xyz = jnp.take_along_axis(xyz, fps_idx[..., None], axis=1)   # (B, npoint, 3)
        groups = []
        for radius, nsample in zip(cfg["radii"], cfg["nsamples"]):
            idx = ball_query(radius, nsample, xyz, new_xyz)
            gx = (group_points(xyz, idx) - new_xyz[:, :, None, :]).astype(jnp.bfloat16)
            if features is None:
                groups.append(gx)
            elif xyz_slot is None:
                gf = group_points(features, idx).astype(jnp.bfloat16)
                groups.append(jnp.concatenate([gx, gf], axis=-1))
            else:
                gf = group_points(features, idx)                # already bf16, lane-padded
                groups.append(lax.dynamic_update_slice(gf, gx, (0, 0, 0, xyz_slot)))
        return new_xyz, groups

    def __call__(self, pointcloud):
        # _break_up_pc (channels-last)
        xyz = pointcloud[..., 0:3]
        features = pointcloud[..., 3:] if pointcloud.shape[-1] > 3 else None

        # SA stage 1: fused two-scale shared-MLP + max-pool, bf16 lane-padded (128) output.
        new_xyz, groups = self._group(xyz, features, self.sa_configs[0])
        features = sa_stage_pallas(groups, self.sa_params[0], head=None,
                                   out_pad=self.c_feat1_pad, tile_cap=256)
        xyz = new_xyz

        # SA stage 2: fused two-scale MLP + max-pool + final Linear + xyz concat.
        new_xyz, groups = self._group(xyz, features, self.sa_configs[1],
                                      xyz_slot=self.xyz_slot)
        out = sa_stage_pallas(groups, self.sa_params[1],
                              head=(new_xyz, self.lin_ws, self.lin_b), tile_cap=128)
        return out                                     # (B, num_keypoints, c_out) f32


# ---------------------------------------------------------------------------
# Demo
# ---------------------------------------------------------------------------

if __name__ == "__main__":
    B, N, c_in = 2, 64, 6
    c_out, num_keypoints, npoint0 = 32, 16, 32

    key = jax.random.PRNGKey(0)
    kxyz, kfeat = jax.random.split(key)
    # points in a small cube so the (fixed) radii 0.05/0.1/0.2 actually capture neighbors
    xyz = jax.random.uniform(kxyz, (B, N, 3), jnp.float32) * 0.3
    feats = jax.random.normal(kfeat, (B, N, c_in), jnp.float32)
    pointcloud = jnp.concatenate([xyz, feats], axis=-1)            # (B, N, 3 + c_in)

    enc = PointNet2EncoderPallas(c_in=c_in, c_out=c_out,
                                 num_keypoints=num_keypoints, npoint0=npoint0, seed=0)
    out = jax.jit(enc.__call__)(pointcloud)
    out = jax.block_until_ready(out)
    assert out.shape == (B, num_keypoints, c_out), out.shape
    assert out.dtype == jnp.float32
    assert bool(jnp.isfinite(out).all())
    print("KERNEL_OK")
</pallas_src>

<mosaic_0001>
module attributes {stable_mosaic.version = 11 : i64} {
  func.func @kernel(%arg0: i32, %arg1: i32, %arg2: memref<1x16x16x9xbf16, #tpu.memory_space<vmem>>, %arg3: memref<1x16x32x9xbf16, #tpu.memory_space<vmem>>, %arg4: memref<9x16xbf16, #tpu.memory_space<vmem>>, %arg5: memref<1x16xf32, #tpu.memory_space<vmem>>, %arg6: memref<16x16xbf16, #tpu.memory_space<vmem>>, %arg7: memref<1x16xf32, #tpu.memory_space<vmem>>, %arg8: memref<16x32xbf16, #tpu.memory_space<vmem>>, %arg9: memref<1x32xf32, #tpu.memory_space<vmem>>, %arg10: memref<9x32xbf16, #tpu.memory_space<vmem>>, %arg11: memref<1x32xf32, #tpu.memory_space<vmem>>, %arg12: memref<32x32xbf16, #tpu.memory_space<vmem>>, %arg13: memref<1x32xf32, #tpu.memory_space<vmem>>, %arg14: memref<32x64xbf16, #tpu.memory_space<vmem>>, %arg15: memref<1x64xf32, #tpu.memory_space<vmem>>, %arg16: memref<1x16x128xbf16, #tpu.memory_space<vmem>>) attributes {dimension_semantics = [#tpu.dimension_semantics<parallel>, #tpu.dimension_semantics<parallel>], iteration_bounds = array<i64: 2, 2>, scalar_prefetch = 0 : i64, scratch_operands = 0 : i64, tpu.core_type = #tpu.core_type<tc>, window_params = [{transform_indices = @transform_0, window_bounds = array<i64: 1, 16, 16, 9>}, {transform_indices = @transform_1, window_bounds = array<i64: 1, 16, 32, 9>}, {pipeline_mode = #tpu.pipeline_mode<synchronous>, transform_indices = @transform_2, window_bounds = array<i64: 9, 16>}, {pipeline_mode = #tpu.pipeline_mode<synchronous>, transform_indices = @transform_3, window_bounds = array<i64: 1, 16>}, {pipeline_mode = #tpu.pipeline_mode<synchronous>, transform_indices = @transform_4, window_bounds = array<i64: 16, 16>}, {pipeline_mode = #tpu.pipeline_mode<synchronous>, transform_indices = @transform_5, window_bounds = array<i64: 1, 16>}, {pipeline_mode = #tpu.pipeline_mode<synchronous>, transform_indices = @transform_6, window_bounds = array<i64: 16, 32>}, {pipeline_mode = #tpu.pipeline_mode<synchronous>, transform_indices = @transform_7, window_bounds = array<i64: 1, 32>}, {pipeline_mode = #tpu.pipeline_mode<synchronous>, transform_indices = @transform_8, window_bounds = array<i64: 9, 32>}, {pipeline_mode = #tpu.pipeline_mode<synchronous>, transform_indices = @transform_9, window_bounds = array<i64: 1, 32>}, {pipeline_mode = #tpu.pipeline_mode<synchronous>, transform_indices = @transform_10, window_bounds = array<i64: 32, 32>}, {pipeline_mode = #tpu.pipeline_mode<synchronous>, transform_indices = @transform_11, window_bounds = array<i64: 1, 32>}, {pipeline_mode = #tpu.pipeline_mode<synchronous>, transform_indices = @transform_12, window_bounds = array<i64: 32, 64>}, {pipeline_mode = #tpu.pipeline_mode<synchronous>, transform_indices = @transform_13, window_bounds = array<i64: 1, 64>}, {transform_indices = @transform_14, window_bounds = array<i64: 1, 16, 128>}]} {
    %c0 = arith.constant 0 : index
    %c0_0 = arith.constant 0 : index
    %c0_1 = arith.constant 0 : index
    %c0_2 = arith.constant 0 : index
    %0 = vector.load %arg2[%c0, %c0_0, %c0_1, %c0_2] : memref<1x16x16x9xbf16, #tpu.memory_space<vmem>>, vector<1x16x16x9xbf16>
    %1 = vector.shape_cast %0 : vector<1x16x16x9xbf16> to vector<16x16x9xbf16>
    %2 = vector.shape_cast %1 : vector<16x16x9xbf16> to vector<256x9xbf16>
    %c0_3 = arith.constant 0 : index
    %c0_4 = arith.constant 0 : index
    %3 = vector.load %arg4[%c0_3, %c0_4] : memref<9x16xbf16, #tpu.memory_space<vmem>>, vector<9x16xbf16>
    %cst = arith.constant dense<0.000000e+00> : vector<256x16xf32>
    %4 = tpu.matmul %2, %3, %cst {dimension_numbers = #tpu.dot_dimension_numbers<[1], [0], [0], [1], [0, 0, 1, 1], [], []>} : vector<256x9xbf16>, vector<9x16xbf16>, vector<256x16xf32> -> vector<256x16xf32>
    %c0_5 = arith.constant 0 : index
    %c0_6 = arith.constant 0 : index
    %5 = vector.load %arg5[%c0_5, %c0_6] : memref<1x16xf32, #tpu.memory_space<vmem>>, vector<1x16xf32>
    %6 = vector.broadcast %5 : vector<1x16xf32> to vector<256x16xf32>
    %7 = arith.addf %4, %6 : vector<256x16xf32>
    %cst_7 = arith.constant 0.000000e+00 : f32
    %8 = vector.broadcast %cst_7 : f32 to vector<256x16xf32>
    %9 = arith.maximumf %7, %8 : vector<256x16xf32>
    %10 = arith.truncf %9 : vector<256x16xf32> to vector<256x16xbf16>
    %c0_8 = arith.constant 0 : index
    %c0_9 = arith.constant 0 : index
    %11 = vector.load %arg6[%c0_8, %c0_9] : memref<16x16xbf16, #tpu.memory_space<vmem>>, vector<16x16xbf16>
    %cst_10 = arith.constant dense<0.000000e+00> : vector<256x16xf32>
    %12 = tpu.matmul %10, %11, %cst_10 {dimension_numbers = #tpu.dot_dimension_numbers<[1], [0], [0], [1], [0, 0, 1, 1], [], []>} : vector<256x16xbf16>, vector<16x16xbf16>, vector<256x16xf32> -> vector<256x16xf32>
    %c0_11 = arith.constant 0 : index
    %c0_12 = arith.constant 0 : index
    %13 = vector.load %arg7[%c0_11, %c0_12] : memref<1x16xf32, #tpu.memory_space<vmem>>, vector<1x16xf32>
    %14 = vector.broadcast %13 : vector<1x16xf32> to vector<256x16xf32>
    %15 = arith.addf %12, %14 : vector<256x16xf32>
    %cst_13 = arith.constant 0.000000e+00 : f32
    %16 = vector.broadcast %cst_13 : f32 to vector<256x16xf32>
    %17 = arith.maximumf %15, %16 : vector<256x16xf32>
    %18 = arith.truncf %17 : vector<256x16xf32> to vector<256x16xbf16>
    %c0_14 = arith.constant 0 : index
    %c0_15 = arith.constant 0 : index
    %19 = vector.load %arg8[%c0_14, %c0_15] : memref<16x32xbf16, #tpu.memory_space<vmem>>, vector<16x32xbf16>
    %cst_16 = arith.constant dense<0.000000e+00> : vector<256x32xf32>
    %20 = tpu.matmul %18, %19, %cst_16 {dimension_numbers = #tpu.dot_dimension_numbers<[1], [0], [0], [1], [0, 0, 1, 1], [], []>} : vector<256x16xbf16>, vector<16x32xbf16>, vector<256x32xf32> -> vector<256x32xf32>
    %c0_17 = arith.constant 0 : index
    %c0_18 = arith.constant 0 : index
    %21 = vector.load %arg9[%c0_17, %c0_18] : memref<1x32xf32, #tpu.memory_space<vmem>>, vector<1x32xf32>
    %22 = vector.broadcast %21 : vector<1x32xf32> to vector<256x32xf32>
    %23 = arith.addf %20, %22 : vector<256x32xf32>
    %cst_19 = arith.constant 0.000000e+00 : f32
    %24 = vector.broadcast %cst_19 : f32 to vector<256x32xf32>
    %25 = arith.maximumf %23, %24 : vector<256x32xf32>
    %26 = vector.shape_cast %25 : vector<256x32xf32> to vector<16x16x32xf32>
    %cst_20 = arith.constant dense<0xFF800000> : vector<16x32xf32>
    %27 = vector.multi_reduction <maximumf>, %26, %cst_20 [1] : vector<16x16x32xf32> to vector<16x32xf32>
    %c0_21 = arith.constant 0 : index
    %c0_22 = arith.constant 0 : index
    %c0_23 = arith.constant 0 : index
    %c0_24 = arith.constant 0 : index
    %28 = vector.load %arg3[%c0_21, %c0_22, %c0_23, %c0_24] : memref<1x16x32x9xbf16, #tpu.memory_space<vmem>>, vector<1x16x32x9xbf16>
    %29 = vector.shape_cast %28 : vector<1x16x32x9xbf16> to vector<16x32x9xbf16>
    %30 = vector.shape_cast %29 : vector<16x32x9xbf16> to vector<512x9xbf16>
    %c0_25 = arith.constant 0 : index
    %c0_26 = arith.constant 0 : index
    %31 = vector.load %arg10[%c0_25, %c0_26] : memref<9x32xbf16, #tpu.memory_space<vmem>>, vector<9x32xbf16>
    %cst_27 = arith.constant dense<0.000000e+00> : vector<512x32xf32>
    %32 = tpu.matmul %30, %31, %cst_27 {dimension_numbers = #tpu.dot_dimension_numbers<[1], [0], [0], [1], [0, 0, 1, 1], [], []>} : vector<512x9xbf16>, vector<9x32xbf16>, vector<512x32xf32> -> vector<512x32xf32>
    %c0_28 = arith.constant 0 : index
    %c0_29 = arith.constant 0 : index
    %33 = vector.load %arg11[%c0_28, %c0_29] : memref<1x32xf32, #tpu.memory_space<vmem>>, vector<1x32xf32>
    %34 = vector.broadcast %33 : vector<1x32xf32> to vector<512x32xf32>
    %35 = arith.addf %32, %34 : vector<512x32xf32>
    %cst_30 = arith.constant 0.000000e+00 : f32
    %36 = vector.broadcast %cst_30 : f32 to vector<512x32xf32>
    %37 = arith.maximumf %35, %36 : vector<512x32xf32>
    %38 = arith.truncf %37 : vector<512x32xf32> to vector<512x32xbf16>
    %c0_31 = arith.constant 0 : index
    %c0_32 = arith.constant 0 : index
    %39 = vector.load %arg12[%c0_31, %c0_32] : memref<32x32xbf16, #tpu.memory_space<vmem>>, vector<32x32xbf16>
    %cst_33 = arith.constant dense<0.000000e+00> : vector<512x32xf32>
    %40 = tpu.matmul %38, %39, %cst_33 {dimension_numbers = #tpu.dot_dimension_numbers<[1], [0], [0], [1], [0, 0, 1, 1], [], []>} : vector<512x32xbf16>, vector<32x32xbf16>, vector<512x32xf32> -> vector<512x32xf32>
    %c0_34 = arith.constant 0 : index
    %c0_35 = arith.constant 0 : index
    %41 = vector.load %arg13[%c0_34, %c0_35] : memref<1x32xf32, #tpu.memory_space<vmem>>, vector<1x32xf32>
    %42 = vector.broadcast %41 : vector<1x32xf32> to vector<512x32xf32>
    %43 = arith.addf %40, %42 : vector<512x32xf32>
    %cst_36 = arith.constant 0.000000e+00 : f32
    %44 = vector.broadcast %cst_36 : f32 to vector<512x32xf32>
    %45 = arith.maximumf %43, %44 : vector<512x32xf32>
    %46 = arith.truncf %45 : vector<512x32xf32> to vector<512x32xbf16>
    %c0_37 = arith.constant 0 : index
    %c0_38 = arith.constant 0 : index
    %47 = vector.load %arg14[%c0_37, %c0_38] : memref<32x64xbf16, #tpu.memory_space<vmem>>, vector<32x64xbf16>
    %cst_39 = arith.constant dense<0.000000e+00> : vector<512x64xf32>
    %48 = tpu.matmul %46, %47, %cst_39 {dimension_numbers = #tpu.dot_dimension_numbers<[1], [0], [0], [1], [0, 0, 1, 1], [], []>} : vector<512x32xbf16>, vector<32x64xbf16>, vector<512x64xf32> -> vector<512x64xf32>
    %c0_40 = arith.constant 0 : index
    %c0_41 = arith.constant 0 : index
    %49 = vector.load %arg15[%c0_40, %c0_41] : memref<1x64xf32, #tpu.memory_space<vmem>>, vector<1x64xf32>
    %50 = vector.broadcast %49 : vector<1x64xf32> to vector<512x64xf32>
    %51 = arith.addf %48, %50 : vector<512x64xf32>
    %cst_42 = arith.constant 0.000000e+00 : f32
    %52 = vector.broadcast %cst_42 : f32 to vector<512x64xf32>
    %53 = arith.maximumf %51, %52 : vector<512x64xf32>
    %54 = vector.shape_cast %53 : vector<512x64xf32> to vector<16x32x64xf32>
    %cst_43 = arith.constant dense<0xFF800000> : vector<16x64xf32>
    %55 = vector.multi_reduction <maximumf>, %54, %cst_43 [1] : vector<16x32x64xf32> to vector<16x64xf32>
    %56 = arith.truncf %27 : vector<16x32xf32> to vector<16x32xbf16>
    %c0_44 = arith.constant 0 : index
    %c0_45 = arith.constant 0 : index
    %c0_46 = arith.constant 0 : index
    %57 = vector.load %arg16[%c0_44, %c0_45, %c0_46] : memref<1x16x128xbf16, #tpu.memory_space<vmem>>, vector<1x16x32xbf16>
    %58 = vector.shape_cast %57 : vector<1x16x32xbf16> to vector<16x32xbf16>
    %59 = vector.shape_cast %56 : vector<16x32xbf16> to vector<1x16x32xbf16>
    tpu.vector_store %arg16[%c0_44, %c0_45, %c0_46], %59 {strides = array<i32>} : memref<1x16x128xbf16, #tpu.memory_space<vmem>>, vector<1x16x32xbf16>,
    %60 = arith.truncf %55 : vector<16x64xf32> to vector<16x64xbf16>
    %c0_47 = arith.constant 0 : index
    %c0_48 = arith.constant 0 : index
    %c32 = arith.constant 32 : index
    %61 = vector.load %arg16[%c0_47, %c0_48, %c32] : memref<1x16x128xbf16, #tpu.memory_space<vmem>>, vector<1x16x64xbf16>
    %62 = vector.shape_cast %61 : vector<1x16x64xbf16> to vector<16x64xbf16>
    %63 = vector.shape_cast %60 : vector<16x64xbf16> to vector<1x16x64xbf16>
    tpu.vector_store %arg16[%c0_47, %c0_48, %c32], %63 {strides = array<i32>} : memref<1x16x128xbf16, #tpu.memory_space<vmem>>, vector<1x16x64xbf16>,
    %cst_49 = arith.constant 0.000000e+00 : bf16
    %64 = vector.broadcast %cst_49 : bf16 to vector<16x32xbf16>
    %c0_50 = arith.constant 0 : index
    %c0_51 = arith.constant 0 : index
    %c96 = arith.constant 96 : index
    %65 = vector.load %arg16[%c0_50, %c0_51, %c96] : memref<1x16x128xbf16, #tpu.memory_space<vmem>>, vector<1x16x32xbf16>
    %66 = vector.shape_cast %65 : vector<1x16x32xbf16> to vector<16x32xbf16>
    %67 = vector.shape_cast %64 : vector<16x32xbf16> to vector<1x16x32xbf16>
    tpu.vector_store %arg16[%c0_50, %c0_51, %c96], %67 {strides = array<i32>} : memref<1x16x128xbf16, #tpu.memory_space<vmem>>, vector<1x16x32xbf16>,
    return
  }
  func.func @transform_0(%arg0: i32, %arg1: i32) -> (i32, i32, i32, i32) {
    %c0_i32 = arith.constant 0 : i32
    %c0_i32_0 = arith.constant 0 : i32
    %c0_i32_1 = arith.constant 0 : i32
    return %arg0, %arg1, %c0_i32, %c0_i32_0 : i32, i32, i32, i32
  }
  func.func @transform_1(%arg0: i32, %arg1: i32) -> (i32, i32, i32, i32) {
    %c0_i32 = arith.constant 0 : i32
    %c0_i32_0 = arith.constant 0 : i32
    %c0_i32_1 = arith.constant 0 : i32
    return %arg0, %arg1, %c0_i32, %c0_i32_0 : i32, i32, i32, i32
  }
  func.func @transform_2(%arg0: i32, %arg1: i32) -> (i32, i32) {
    %c0_i32 = arith.constant 0 : i32
    %c0_i32_0 = arith.constant 0 : i32
    %c0_i32_1 = arith.constant 0 : i32
    return %c0_i32, %c0_i32_0 : i32, i32
  }
  func.func @transform_3(%arg0: i32, %arg1: i32) -> (i32, i32) {
    %c0_i32 = arith.constant 0 : i32
    %c0_i32_0 = arith.constant 0 : i32
    %c0_i32_1 = arith.constant 0 : i32
    return %c0_i32, %c0_i32_0 : i32, i32
  }
  func.func @transform_4(%arg0: i32, %arg1: i32) -> (i32, i32) {
    %c0_i32 = arith.constant 0 : i32
    %c0_i32_0 = arith.constant 0 : i32
    %c0_i32_1 = arith.constant 0 : i32
    return %c0_i32, %c0_i32_0 : i32, i32
  }
  func.func @transform_5(%arg0: i32, %arg1: i32) -> (i32, i32) {
    %c0_i32 = arith.constant 0 : i32
    %c0_i32_0 = arith.constant 0 : i32
    %c0_i32_1 = arith.constant 0 : i32
    return %c0_i32, %c0_i32_0 : i32, i32
  }
  func.func @transform_6(%arg0: i32, %arg1: i32) -> (i32, i32) {
    %c0_i32 = arith.constant 0 : i32
    %c0_i32_0 = arith.constant 0 : i32
    %c0_i32_1 = arith.constant 0 : i32
    return %c0_i32, %c0_i32_0 : i32, i32
  }
  func.func @transform_7(%arg0: i32, %arg1: i32) -> (i32, i32) {
    %c0_i32 = arith.constant 0 : i32
    %c0_i32_0 = arith.constant 0 : i32
    %c0_i32_1 = arith.constant 0 : i32
    return %c0_i32, %c0_i32_0 : i32, i32
  }
  func.func @transform_8(%arg0: i32, %arg1: i32) -> (i32, i32) {
    %c0_i32 = arith.constant 0 : i32
    %c0_i32_0 = arith.constant 0 : i32
    %c0_i32_1 = arith.constant 0 : i32
    return %c0_i32, %c0_i32_0 : i32, i32
  }
  func.func @transform_9(%arg0: i32, %arg1: i32) -> (i32, i32) {
    %c0_i32 = arith.constant 0 : i32
    %c0_i32_0 = arith.constant 0 : i32
    %c0_i32_1 = arith.constant 0 : i32
    return %c0_i32, %c0_i32_0 : i32, i32
  }
  func.func @transform_10(%arg0: i32, %arg1: i32) -> (i32, i32) {
    %c0_i32 = arith.constant 0 : i32
    %c0_i32_0 = arith.constant 0 : i32
    %c0_i32_1 = arith.constant 0 : i32
    return %c0_i32, %c0_i32_0 : i32, i32
  }
  func.func @transform_11(%arg0: i32, %arg1: i32) -> (i32, i32) {
    %c0_i32 = arith.constant 0 : i32
    %c0_i32_0 = arith.constant 0 : i32
    %c0_i32_1 = arith.constant 0 : i32
    return %c0_i32, %c0_i32_0 : i32, i32
  }
  func.func @transform_12(%arg0: i32, %arg1: i32) -> (i32, i32) {
    %c0_i32 = arith.constant 0 : i32
    %c0_i32_0 = arith.constant 0 : i32
    %c0_i32_1 = arith.constant 0 : i32
    return %c0_i32, %c0_i32_0 : i32, i32
  }
  func.func @transform_13(%arg0: i32, %arg1: i32) -> (i32, i32) {
    %c0_i32 = arith.constant 0 : i32
    %c0_i32_0 = arith.constant 0 : i32
    %c0_i32_1 = arith.constant 0 : i32
    return %c0_i32, %c0_i32_0 : i32, i32
  }
  func.func @transform_14(%arg0: i32, %arg1: i32) -> (i32, i32, i32) {
    %c0_i32 = arith.constant 0 : i32
    %c0_i32_0 = arith.constant 0 : i32
    return %arg0, %arg1, %c0_i32 : i32, i32, i32
  }
}

module attributes {stable_mosaic.version = 11 : i64} {
  func.func @kernel(%arg0: i32, %arg1: i32, %arg2: memref<1x8x16x128xbf16, #tpu.memory_space<vmem>>, %arg3: memref<1x8x32x128xbf16, #tpu.memory_space<vmem>>, %arg4: memref<128x64xbf16, #tpu.memory_space<vmem>>, %arg5: memref<1x64xf32, #tpu.memory_space<vmem>>, %arg6: memref<64x64xbf16, #tpu.memory_space<vmem>>, %arg7: memref<1x64xf32, #tpu.memory_space<vmem>>, %arg8: memref<64x128xbf16, #tpu.memory_space<vmem>>, %arg9: memref<1x128xf32, #tpu.memory_space<vmem>>, %arg10: memref<128x64xbf16, #tpu.memory_space<vmem>>, %arg11: memref<1x64xf32, #tpu.memory_space<vmem>>, %arg12: memref<64x96xbf16, #tpu.memory_space<vmem>>, %arg13: memref<1x96xf32, #tpu.memory_space<vmem>>, %arg14: memref<96x128xbf16, #tpu.memory_space<vmem>>, %arg15: memref<1x128xf32, #tpu.memory_space<vmem>>, %arg16: memref<1x8x3xf32, #tpu.memory_space<vmem>>, %arg17: memref<128x29xbf16, #tpu.memory_space<vmem>>, %arg18: memref<128x29xbf16, #tpu.memory_space<vmem>>, %arg19: memref<1x29xf32, #tpu.memory_space<vmem>>, %arg20: memref<1x8x32xf32, #tpu.memory_space<vmem>>) attributes {dimension_semantics = [#tpu.dimension_semantics<parallel>, #tpu.dimension_semantics<parallel>], iteration_bounds = array<i64: 2, 2>, scalar_prefetch = 0 : i64, scratch_operands = 0 : i64, tpu.core_type = #tpu.core_type<tc>, window_params = [{transform_indices = @transform_0, window_bounds = array<i64: 1, 8, 16, 128>}, {transform_indices = @transform_1, window_bounds = array<i64: 1, 8, 32, 128>}, {pipeline_mode = #tpu.pipeline_mode<synchronous>, transform_indices = @transform_2, window_bounds = array<i64: 128, 64>}, {pipeline_mode = #tpu.pipeline_mode<synchronous>, transform_indices = @transform_3, window_bounds = array<i64: 1, 64>}, {pipeline_mode = #tpu.pipeline_mode<synchronous>, transform_indices = @transform_4, window_bounds = array<i64: 64, 64>}, {pipeline_mode = #tpu.pipeline_mode<synchronous>, transform_indices = @transform_5, window_bounds = array<i64: 1, 64>}, {pipeline_mode = #tpu.pipeline_mode<synchronous>, transform_indices = @transform_6, window_bounds = array<i64: 64, 128>}, {pipeline_mode = #tpu.pipeline_mode<synchronous>, transform_indices = @transform_7, window_bounds = array<i64: 1, 128>}, {pipeline_mode = #tpu.pipeline_mode<synchronous>, transform_indices = @transform_8, window_bounds = array<i64: 128, 64>}, {pipeline_mode = #tpu.pipeline_mode<synchronous>, transform_indices = @transform_9, window_bounds = array<i64: 1, 64>}, {pipeline_mode = #tpu.pipeline_mode<synchronous>, transform_indices = @transform_10, window_bounds = array<i64: 64, 96>}, {pipeline_mode = #tpu.pipeline_mode<synchronous>, transform_indices = @transform_11, window_bounds = array<i64: 1, 96>}, {pipeline_mode = #tpu.pipeline_mode<synchronous>, transform_indices = @transform_12, window_bounds = array<i64: 96, 128>}, {pipeline_mode = #tpu.pipeline_mode<synchronous>, transform_indices = @transform_13, window_bounds = array<i64: 1, 128>}, {transform_indices = @transform_14, window_bounds = array<i64: 1, 8, 3>}, {pipeline_mode = #tpu.pipeline_mode<synchronous>, transform_indices = @transform_15, window_bounds = array<i64: 128, 29>}, {pipeline_mode = #tpu.pipeline_mode<synchronous>, transform_indices = @transform_16, window_bounds = array<i64: 128, 29>}, {pipeline_mode = #tpu.pipeline_mode<synchronous>, transform_indices = @transform_17, window_bounds = array<i64: 1, 29>}, {transform_indices = @transform_18, window_bounds = array<i64: 1, 8, 32>}]} {
    %c0 = arith.constant 0 : index
    %c0_0 = arith.constant 0 : index
    %c0_1 = arith.constant 0 : index
    %c0_2 = arith.constant 0 : index
    %0 = vector.load %arg2[%c0, %c0_0, %c0_1, %c0_2] : memref<1x8x16x128xbf16, #tpu.memory_space<vmem>>, vector<1x8x16x128xbf16>
    %1 = vector.shape_cast %0 : vector<1x8x16x128xbf16> to vector<8x16x128xbf16>
    %2 = vector.shape_cast %1 : vector<8x16x128xbf16> to vector<128x128xbf16>
    %c0_3 = arith.constant 0 : index
    %c0_4 = arith.constant 0 : index
    %3 = vector.load %arg4[%c0_3, %c0_4] : memref<128x64xbf16, #tpu.memory_space<vmem>>, vector<128x64xbf16>
    %cst = arith.constant dense<0.000000e+00> : vector<128x64xf32>
    %4 = tpu.matmul %2, %3, %cst {dimension_numbers = #tpu.dot_dimension_numbers<[1], [0], [0], [1], [0, 0, 1, 1], [], []>} : vector<128x128xbf16>, vector<128x64xbf16>, vector<128x64xf32> -> vector<128x64xf32>
    %c0_5 = arith.constant 0 : index
    %c0_6 = arith.constant 0 : index
    %5 = vector.load %arg5[%c0_5, %c0_6] : memref<1x64xf32, #tpu.memory_space<vmem>>, vector<1x64xf32>
    %6 = vector.broadcast %5 : vector<1x64xf32> to vector<128x64xf32>
    %7 = arith.addf %4, %6 : vector<128x64xf32>
    %cst_7 = arith.constant 0.000000e+00 : f32
    %8 = vector.broadcast %cst_7 : f32 to vector<128x64xf32>
    %9 = arith.maximumf %7, %8 : vector<128x64xf32>
    %10 = arith.truncf %9 : vector<128x64xf32> to vector<128x64xbf16>
    %c0_8 = arith.constant 0 : index
    %c0_9 = arith.constant 0 : index
    %11 = vector.load %arg6[%c0_8, %c0_9] : memref<64x64xbf16, #tpu.memory_space<vmem>>, vector<64x64xbf16>
    %cst_10 = arith.constant dense<0.000000e+00> : vector<128x64xf32>
    %12 = tpu.matmul %10, %11, %cst_10 {dimension_numbers = #tpu.dot_dimension_numbers<[1], [0], [0], [1], [0, 0, 1, 1], [], []>} : vector<128x64xbf16>, vector<64x64xbf16>, vector<128x64xf32> -> vector<128x64xf32>
    %c0_11 = arith.constant 0 : index
    %c0_12 = arith.constant 0 : index
    %13 = vector.load %arg7[%c0_11, %c0_12] : memref<1x64xf32, #tpu.memory_space<vmem>>, vector<1x64xf32>
    %14 = vector.broadcast %13 : vector<1x64xf32> to vector<128x64xf32>
    %15 = arith.addf %12, %14 : vector<128x64xf32>
    %cst_13 = arith.constant 0.000000e+00 : f32
    %16 = vector.broadcast %cst_13 : f32 to vector<128x64xf32>
    %17 = arith.maximumf %15, %16 : vector<128x64xf32>
    %18 = arith.truncf %17 : vector<128x64xf32> to vector<128x64xbf16>
    %c0_14 = arith.constant 0 : index
    %c0_15 = arith.constant 0 : index
    %19 = vector.load %arg8[%c0_14, %c0_15] : memref<64x128xbf16, #tpu.memory_space<vmem>>, vector<64x128xbf16>
    %cst_16 = arith.constant dense<0.000000e+00> : vector<128x128xf32>
    %20 = tpu.matmul %18, %19, %cst_16 {dimension_numbers = #tpu.dot_dimension_numbers<[1], [0], [0], [1], [0, 0, 1, 1], [], []>} : vector<128x64xbf16>, vector<64x128xbf16>, vector<128x128xf32> -> vector<128x128xf32>
    %c0_17 = arith.constant 0 : index
    %c0_18 = arith.constant 0 : index
    %21 = vector.load %arg9[%c0_17, %c0_18] : memref<1x128xf32, #tpu.memory_space<vmem>>, vector<1x128xf32>
    %22 = vector.broadcast %21 : vector<1x128xf32> to vector<128x128xf32>
    %23 = arith.addf %20, %22 : vector<128x128xf32>
    %cst_19 = arith.constant 0.000000e+00 : f32
    %24 = vector.broadcast %cst_19 : f32 to vector<128x128xf32>
    %25 = arith.maximumf %23, %24 : vector<128x128xf32>
    %26 = vector.shape_cast %25 : vector<128x128xf32> to vector<8x16x128xf32>
    %cst_20 = arith.constant dense<0xFF800000> : vector<8x128xf32>
    %27 = vector.multi_reduction <maximumf>, %26, %cst_20 [1] : vector<8x16x128xf32> to vector<8x128xf32>
    %c0_21 = arith.constant 0 : index
    %c0_22 = arith.constant 0 : index
    %c0_23 = arith.constant 0 : index
    %c0_24 = arith.constant 0 : index
    %28 = vector.load %arg3[%c0_21, %c0_22, %c0_23, %c0_24] : memref<1x8x32x128xbf16, #tpu.memory_space<vmem>>, vector<1x8x32x128xbf16>
    %29 = vector.shape_cast %28 : vector<1x8x32x128xbf16> to vector<8x32x128xbf16>
    %30 = vector.shape_cast %29 : vector<8x32x128xbf16> to vector<256x128xbf16>
    %c0_25 = arith.constant 0 : index
    %c0_26 = arith.constant 0 : index
    %31 = vector.load %arg10[%c0_25, %c0_26] : memref<128x64xbf16, #tpu.memory_space<vmem>>, vector<128x64xbf16>
    %cst_27 = arith.constant dense<0.000000e+00> : vector<256x64xf32>
    %32 = tpu.matmul %30, %31, %cst_27 {dimension_numbers = #tpu.dot_dimension_numbers<[1], [0], [0], [1], [0, 0, 1, 1], [], []>} : vector<256x128xbf16>, vector<128x64xbf16>, vector<256x64xf32> -> vector<256x64xf32>
    %c0_28 = arith.constant 0 : index
    %c0_29 = arith.constant 0 : index
    %33 = vector.load %arg11[%c0_28, %c0_29] : memref<1x64xf32, #tpu.memory_space<vmem>>, vector<1x64xf32>
    %34 = vector.broadcast %33 : vector<1x64xf32> to vector<256x64xf32>
    %35 = arith.addf %32, %34 : vector<256x64xf32>
    %cst_30 = arith.constant 0.000000e+00 : f32
    %36 = vector.broadcast %cst_30 : f32 to vector<256x64xf32>
    %37 = arith.maximumf %35, %36 : vector<256x64xf32>
    %38 = arith.truncf %37 : vector<256x64xf32> to vector<256x64xbf16>
    %c0_31 = arith.constant 0 : index
    %c0_32 = arith.constant 0 : index
    %39 = vector.load %arg12[%c0_31, %c0_32] : memref<64x96xbf16, #tpu.memory_space<vmem>>, vector<64x96xbf16>
    %cst_33 = arith.constant dense<0.000000e+00> : vector<256x96xf32>
    %40 = tpu.matmul %38, %39, %cst_33 {dimension_numbers = #tpu.dot_dimension_numbers<[1], [0], [0], [1], [0, 0, 1, 1], [], []>} : vector<256x64xbf16>, vector<64x96xbf16>, vector<256x96xf32> -> vector<256x96xf32>
    %c0_34 = arith.constant 0 : index
    %c0_35 = arith.constant 0 : index
    %41 = vector.load %arg13[%c0_34, %c0_35] : memref<1x96xf32, #tpu.memory_space<vmem>>, vector<1x96xf32>
    %42 = vector.broadcast %41 : vector<1x96xf32> to vector<256x96xf32>
    %43 = arith.addf %40, %42 : vector<256x96xf32>
    %cst_36 = arith.constant 0.000000e+00 : f32
    %44 = vector.broadcast %cst_36 : f32 to vector<256x96xf32>
    %45 = arith.maximumf %43, %44 : vector<256x96xf32>
    %46 = arith.truncf %45 : vector<256x96xf32> to vector<256x96xbf16>
    %c0_37 = arith.constant 0 : index
    %c0_38 = arith.constant 0 : index
    %47 = vector.load %arg14[%c0_37, %c0_38] : memref<96x128xbf16, #tpu.memory_space<vmem>>, vector<96x128xbf16>
    %cst_39 = arith.constant dense<0.000000e+00> : vector<256x128xf32>
    %48 = tpu.matmul %46, %47, %cst_39 {dimension_numbers = #tpu.dot_dimension_numbers<[1], [0], [0], [1], [0, 0, 1, 1], [], []>} : vector<256x96xbf16>, vector<96x128xbf16>, vector<256x128xf32> -> vector<256x128xf32>
    %c0_40 = arith.constant 0 : index
    %c0_41 = arith.constant 0 : index
    %49 = vector.load %arg15[%c0_40, %c0_41] : memref<1x128xf32, #tpu.memory_space<vmem>>, vector<1x128xf32>
    %50 = vector.broadcast %49 : vector<1x128xf32> to vector<256x128xf32>
    %51 = arith.addf %48, %50 : vector<256x128xf32>
    %cst_42 = arith.constant 0.000000e+00 : f32
    %52 = vector.broadcast %cst_42 : f32 to vector<256x128xf32>
    %53 = arith.maximumf %51, %52 : vector<256x128xf32>
    %54 = vector.shape_cast %53 : vector<256x128xf32> to vector<8x32x128xf32>
    %cst_43 = arith.constant dense<0xFF800000> : vector<8x128xf32>
    %55 = vector.multi_reduction <maximumf>, %54, %cst_43 [1] : vector<8x32x128xf32> to vector<8x128xf32>
    %c0_44 = arith.constant 0 : index
    %c0_45 = arith.constant 0 : index
    %56 = vector.load %arg19[%c0_44, %c0_45] : memref<1x29xf32, #tpu.memory_space<vmem>>, vector<1x29xf32>
    %57 = arith.truncf %27 : vector<8x128xf32> to vector<8x128xbf16>
    %c0_46 = arith.constant 0 : index
    %c0_47 = arith.constant 0 : index
    %58 = vector.load %arg17[%c0_46, %c0_47] : memref<128x29xbf16, #tpu.memory_space<vmem>>, vector<128x29xbf16>
    %cst_48 = arith.constant dense<0.000000e+00> : vector<8x29xf32>
    %59 = tpu.matmul %57, %58, %cst_48 {dimension_numbers = #tpu.dot_dimension_numbers<[1], [0], [0], [1], [0, 0, 1, 1], [], []>} : vector<8x128xbf16>, vector<128x29xbf16>, vector<8x29xf32> -> vector<8x29xf32>
    %60 = vector.broadcast %56 : vector<1x29xf32> to vector<8x29xf32>
    %61 = arith.addf %60, %59 : vector<8x29xf32>
    %62 = arith.truncf %55 : vector<8x128xf32> to vector<8x128xbf16>
    %c0_49 = arith.constant 0 : index
    %c0_50 = arith.constant 0 : index
    %63 = vector.load %arg18[%c0_49, %c0_50] : memref<128x29xbf16, #tpu.memory_space<vmem>>, vector<128x29xbf16>
    %cst_51 = arith.constant dense<0.000000e+00> : vector<8x29xf32>
    %64 = tpu.matmul %62, %63, %cst_51 {dimension_numbers = #tpu.dot_dimension_numbers<[1], [0], [0], [1], [0, 0, 1, 1], [], []>} : vector<8x128xbf16>, vector<128x29xbf16>, vector<8x29xf32> -> vector<8x29xf32>
    %65 = arith.addf %61, %64 : vector<8x29xf32>
    %c0_52 = arith.constant 0 : index
    %c0_53 = arith.constant 0 : index
    %c0_54 = arith.constant 0 : index
    %66 = vector.load %arg16[%c0_52, %c0_53, %c0_54] : memref<1x8x3xf32, #tpu.memory_space<vmem>>, vector<1x8x3xf32>
    %67 = vector.shape_cast %66 : vector<1x8x3xf32> to vector<8x3xf32>
    %c0_55 = arith.constant 0 : index
    %c0_56 = arith.constant 0 : index
    %c0_57 = arith.constant 0 : index
    %68 = vector.load %arg20[%c0_55, %c0_56, %c0_57] : memref<1x8x32xf32, #tpu.memory_space<vmem>>, vector<1x8x3xf32>
    %69 = vector.shape_cast %68 : vector<1x8x3xf32> to vector<8x3xf32>
    %70 = vector.shape_cast %67 : vector<8x3xf32> to vector<1x8x3xf32>
    tpu.vector_store %arg20[%c0_55, %c0_56, %c0_57], %70 {strides = array<i32>} : memref<1x8x32xf32, #tpu.memory_space<vmem>>, vector<1x8x3xf32>,
    %c0_58 = arith.constant 0 : index
    %c0_59 = arith.constant 0 : index
    %c3 = arith.constant 3 : index
    %71 = vector.load %arg20[%c0_58, %c0_59, %c3] : memref<1x8x32xf32, #tpu.memory_space<vmem>>, vector<1x8x29xf32>
    %72 = vector.shape_cast %71 : vector<1x8x29xf32> to vector<8x29xf32>
    %73 = vector.shape_cast %65 : vector<8x29xf32> to vector<1x8x29xf32>
    tpu.vector_store %arg20[%c0_58, %c0_59, %c3], %73 {strides = array<i32>} : memref<1x8x32xf32, #tpu.memory_space<vmem>>, vector<1x8x29xf32>,
    return
  }
  func.func @transform_0(%arg0: i32, %arg1: i32) -> (i32, i32, i32, i32) {
    %c0_i32 = arith.constant 0 : i32
    %c0_i32_0 = arith.constant 0 : i32
    %c0_i32_1 = arith.constant 0 : i32
    return %arg0, %arg1, %c0_i32, %c0_i32_0 : i32, i32, i32, i32
  }
  func.func @transform_1(%arg0: i32, %arg1: i32) -> (i32, i32, i32, i32) {
    %c0_i32 = arith.constant 0 : i32
    %c0_i32_0 = arith.constant 0 : i32
    %c0_i32_1 = arith.constant 0 : i32
    return %arg0, %arg1, %c0_i32, %c0_i32_0 : i32, i32, i32, i32
  }
  func.func @transform_2(%arg0: i32, %arg1: i32) -> (i32, i32) {
    %c0_i32 = arith.constant 0 : i32
    %c0_i32_0 = arith.constant 0 : i32
    %c0_i32_1 = arith.constant 0 : i32
    return %c0_i32, %c0_i32_0 : i32, i32
  }
  func.func @transform_3(%arg0: i32, %arg1: i32) -> (i32, i32) {
    %c0_i32 = arith.constant 0 : i32
    %c0_i32_0 = arith.constant 0 : i32
    %c0_i32_1 = arith.constant 0 : i32
    return %c0_i32, %c0_i32_0 : i32, i32
  }
  func.func @transform_4(%arg0: i32, %arg1: i32) -> (i32, i32) {
    %c0_i32 = arith.constant 0 : i32
    %c0_i32_0 = arith.constant 0 : i32
    %c0_i32_1 = arith.constant 0 : i32
    return %c0_i32, %c0_i32_0 : i32, i32
  }
  func.func @transform_5(%arg0: i32, %arg1: i32) -> (i32, i32) {
    %c0_i32 = arith.constant 0 : i32
    %c0_i32_0 = arith.constant 0 : i32
    %c0_i32_1 = arith.constant 0 : i32
    return %c0_i32, %c0_i32_0 : i32, i32
  }
  func.func @transform_6(%arg0: i32, %arg1: i32) -> (i32, i32) {
    %c0_i32 = arith.constant 0 : i32
    %c0_i32_0 = arith.constant 0 : i32
    %c0_i32_1 = arith.constant 0 : i32
    return %c0_i32, %c0_i32_0 : i32, i32
  }
  func.func @transform_7(%arg0: i32, %arg1: i32) -> (i32, i32) {
    %c0_i32 = arith.constant 0 : i32
    %c0_i32_0 = arith.constant 0 : i32
    %c0_i32_1 = arith.constant 0 : i32
    return %c0_i32, %c0_i32_0 : i32, i32
  }
  func.func @transform_8(%arg0: i32, %arg1: i32) -> (i32, i32) {
    %c0_i32 = arith.constant 0 : i32
    %c0_i32_0 = arith.constant 0 : i32
    %c0_i32_1 = arith.constant 0 : i32
    return %c0_i32, %c0_i32_0 : i32, i32
  }
  func.func @transform_9(%arg0: i32, %arg1: i32) -> (i32, i32) {
    %c0_i32 = arith.constant 0 : i32
    %c0_i32_0 = arith.constant 0 : i32
    %c0_i32_1 = arith.constant 0 : i32
    return %c0_i32, %c0_i32_0 : i32, i32
  }
  func.func @transform_10(%arg0: i32, %arg1: i32) -> (i32, i32) {
    %c0_i32 = arith.constant 0 : i32
    %c0_i32_0 = arith.constant 0 : i32
    %c0_i32_1 = arith.constant 0 : i32
    return %c0_i32, %c0_i32_0 : i32, i32
  }
  func.func @transform_11(%arg0: i32, %arg1: i32) -> (i32, i32) {
    %c0_i32 = arith.constant 0 : i32
    %c0_i32_0 = arith.constant 0 : i32
    %c0_i32_1 = arith.constant 0 : i32
    return %c0_i32, %c0_i32_0 : i32, i32
  }
  func.func @transform_12(%arg0: i32, %arg1: i32) -> (i32, i32) {
    %c0_i32 = arith.constant 0 : i32
    %c0_i32_0 = arith.constant 0 : i32
    %c0_i32_1 = arith.constant 0 : i32
    return %c0_i32, %c0_i32_0 : i32, i32
  }
  func.func @transform_13(%arg0: i32, %arg1: i32) -> (i32, i32) {
    %c0_i32 = arith.constant 0 : i32
    %c0_i32_0 = arith.constant 0 : i32
    %c0_i32_1 = arith.constant 0 : i32
    return %c0_i32, %c0_i32_0 : i32, i32
  }
  func.func @transform_14(%arg0: i32, %arg1: i32) -> (i32, i32, i32) {
    %c0_i32 = arith.constant 0 : i32
    %c0_i32_0 = arith.constant 0 : i32
    return %arg0, %arg1, %c0_i32 : i32, i32, i32
  }
  func.func @transform_15(%arg0: i32, %arg1: i32) -> (i32, i32) {
    %c0_i32 = arith.constant 0 : i32
    %c0_i32_0 = arith.constant 0 : i32
    %c0_i32_1 = arith.constant 0 : i32
    return %c0_i32, %c0_i32_0 : i32, i32
  }
  func.func @transform_16(%arg0: i32, %arg1: i32) -> (i32, i32) {
    %c0_i32 = arith.constant 0 : i32
    %c0_i32_0 = arith.constant 0 : i32
    %c0_i32_1 = arith.constant 0 : i32
    return %c0_i32, %c0_i32_0 : i32, i32
  }
  func.func @transform_17(%arg0: i32, %arg1: i32) -> (i32, i32) {
    %c0_i32 = arith.constant 0 : i32
    %c0_i32_0 = arith.constant 0 : i32
    %c0_i32_1 = arith.constant 0 : i32
    return %c0_i32, %c0_i32_0 : i32, i32
  }
  func.func @transform_18(%arg0: i32, %arg1: i32) -> (i32, i32, i32) {
    %c0_i32 = arith.constant 0 : i32
    %c0_i32_0 = arith.constant 0 : i32
    return %arg0, %arg1, %c0_i32 : i32, i32, i32
  }
}

</mosaic_0001>

<bundles_post_ra>
// kernel: custom-call.24
= control target key start
LH: loop header
LB: loop body
LE: loop exit
PB: predicated region body
PF: predicated region fallthrough
CT: control target
= control target key end

     0   :  { %s6_s0 = inlined_call_operand.vmem [shape: f32[2,64], index: 0, kind: output, shape index: {}]  }

// kernel: custom-call.25
= control target key start
LH: loop header
LB: loop body
LE: loop exit
PB: predicated region body
PF: predicated region fallthrough
CT: control target
= control target key end

     0   :  { %s6_s0 = inlined_call_operand.vmem [shape: f32[2,32], index: 0, kind: output, shape index: {}]  }

// kernel: neg.15
= control target key start
LH: loop header
LB: loop body
LE: loop exit
PB: predicated region body
PF: predicated region fallthrough
CT: control target
= control target key end

     0   :  { %s136_s0 = inlined_call_operand.vmem [shape: s32[2,16,32], index: 0, kind: input, shape index: {}]   ;;  %s137_s1 = inlined_call_operand.vmem [shape: s32[2,16,32], index: 1, kind: output, shape index: {}]  }
   0x1   :  { %v2_v0 = vld [vmem:[%s136_s0] sm:$0xff]  ;;  %v66_v2 = vld [vmem:[%s136_s0 + $0x8] sm:$0xff]  ;;  %v70_v7 = vld [vmem:[%s136_s0 + $0x10] sm:$0xff] }
   0x2   :  { %v64_v1 = vld [vmem:[%s136_s0 + $0x20] sm:$0xff]  ;;  %v5_v3 = vsub.s32 0, %v2_v0  ;;  %v20_v5 = vsub.s32 0, %v66_v2  ;;  %v68_v6 = vld [vmem:[%s136_s0 + $0x28] sm:$0xff]  ;;  %v72_v8 = vld [vmem:[%s136_s0 + $0x30] sm:$0xff]  ;;  %v36_v10 = vsub.s32 0, %v70_v7 }
   0x3   :  { %v12_v4 = vsub.s32 0, %v64_v1  ;;  %v28_v9 = vsub.s32 0, %v68_v6  ;;  %v44_v11 = vsub.s32 0, %v72_v8  ;;  %v74_v12 = vld [vmem:[%s136_s0 + $0x18] sm:$0xff] }
   0x4   :  { %v76_v13 = vld [vmem:[%s136_s0 + $0x38] sm:$0xff]  ;;  %7 = vst [vmem:[%s137_s1] sm:$0xff] %v5_v3  ;;  %67 = vst [vmem:[%s137_s1 + $0x8] sm:$0xff] %v20_v5  ;;  %v52_v14 = vsub.s32 0, %v74_v12 }
   0x5   :  { %65 = vst [vmem:[%s137_s1 + $0x20] sm:$0xff] %v12_v4  ;;  %v60_v15 = vsub.s32 0, %v76_v13  ;;  %69 = vst [vmem:[%s137_s1 + $0x28] sm:$0xff] %v28_v9 }
   0x6   :  { %71 = vst [vmem:[%s137_s1 + $0x10] sm:$0xff] %v36_v10  ;;  %73 = vst [vmem:[%s137_s1 + $0x30] sm:$0xff] %v44_v11 }
   0x7   :  { %75 = vst [vmem:[%s137_s1 + $0x18] sm:$0xff] %v52_v14  ;;  %77 = vst [vmem:[%s137_s1 + $0x38] sm:$0xff] %v60_v15 }

// kernel: a_call__.2
= control target key start
LH: loop header
LB: loop body
LE: loop exit
PB: predicated region body
PF: predicated region fallthrough
CT: control target
= control target key end

     0   :  { %s4815_s29 = smov 0   ;;  %s4817_s30 = smov 0   ;;  %s5591_s0 = inlined_call_operand.vmem [shape: bf16[2,32,16,9], index: 0, kind: input, shape index: {}]   ;;  %s5592_s1 = inlined_call_operand.vmem [shape: bf16[2,32,32,9], index: 1, kind: input, shape index: {}]   ;;  %s5593_s2 = inlined_call_operand.vmem [shape: bf16[9,16], index: 2, kind: input, shape index: {}]   ;;  %s5594_s3 = inlined_call_operand.vmem [shape: f32[1,16], index: 3, kind: input, shape index: {}]   ;;  %s5595_s4 = inlined_call_operand.vmem [shape: bf16[16,16], index: 4, kind: input, shape index: {}]   ;;  %s5596_s5 = inlined_call_operand.vmem [shape: f32[1,16], index: 5, kind: input, shape index: {}]   ;;  %s5597_s6 = inlined_call_operand.vmem [shape: bf16[16,32], index: 6, kind: input, shape index: {}]   ;;  %s5598_s7 = inlined_call_operand.vmem [shape: f32[1,32], index: 7, kind: input, shape index: {}]   ;;  %s5599_s8 = inlined_call_operand.vmem [shape: bf16[9,32], index: 8, kind: input, shape index: {}]   ;;  %s5600_s9 = inlined_call_operand.vmem [shape: f32[1,32], index: 9, kind: input, shape index: {}]   ;;  %s5601_s10 = inlined_call_operand.vmem [shape: bf16[32,32], index: 10, kind: input, shape index: {}]   ;;  %s5602_s11 = inlined_call_operand.vmem [shape: f32[1,32], index: 11, kind: input, shape index: {}]   ;;  %s5603_s12 = inlined_call_operand.vmem [shape: bf16[32,64], index: 12, kind: input, shape index: {}]   ;;  %s5604_s13 = inlined_call_operand.vmem [shape: f32[1,64], index: 13, kind: input, shape index: {}]   ;;  %s5605_s14 = inlined_call_operand.vmem [shape: bf16[2,32,128], index: 14, kind: output, shape index: {}]  }
   0x1   :  { %s4819_s15 = smov 0   ;;  %s4821_s16 = smov 0  }
   0x2   :  { %s4823_s17 = smov 0  }
   0x3 LB: > { %s33_s18 = sadd.s32 1, %s4727_s15  ;;  %s36_s19 = sadd.s32 1, %s4731_s16  ;;  %s4735_s17 = sphi %s4823_s17, %s24_s17   ;;  %s4731_s16 = sphi %s4821_s16, %s5610_s16   ;;  %s4727_s15 = sphi %s4819_s15, %s5609_s15   ;;  %s4723_s30 = sphi %s4817_s30, %s5608_s30   ;;  %s4719_s29 = sphi %s4815_s29, %s5607_s29  }
   0x4   : > { %p34_p0 = scmp.ge.s32.totalorder %s33_s18, 2  ;;  %p3856_p1 = scmp.ge.s32.totalorder %s4735_s17, 1 }
   0x5   : > { %p452_p2 = scmp.lt.s32.totalorder %s4735_s17, 5 }
   0x6   : > { %s5612_s18 = smov (%p34_p0, %s33_s18), 0  ;;  %s5614_s19 = smov (!%p34_p0, %s36_s19), %s4731_s16 }
   0x7   : > { %p453_p3 = pnand %p3856_p1, %p452_p2  ;;  %p38_p4 = scmp.ge.s32.totalorder %s5614_s19, 2 }
   0x8   : > { %s3857_s22 = sshll.u32 (!%p453_p3), %s4719_s29, 4  ;;  %p518_p5 = scmp.lt.s32.totalorder (!%p453_p3), %s4723_s30, 1 }
   0x9   : > { %s5616_s19 = smov (%p38_p4, %s5614_s19), 0  ;;  %456 = sbr.rel (%p453_p3) target bundleno = 1171 (0x493), region = 76 }
   0xa   : > { %p520_p6 = scmp.lt.s32.totalorder (!%p453_p3), %s3857_s22, 31 }
   0xe   : > { %v4641_v0 = vld [vmem:[%s5593_s2] sm:$0x1f]   ;;  %vm725_vm0 = vcmask 1043456   ;;  %vm726_vm1 = vcmask 1044480   ;;  %v4737_v1 = vmov 65535   ;;  %s5618_s30 = smov (!%p518_p5, %s4723_s30), 1 }
   0xf   : > { %v727_v2 = vsel %vm725_vm0, 4294967295, %v4737_v1  ;;  %v4642_v3 = vld [vmem:[%s5599_s8] sm:$0x1f]   ;;  %s5620_s22 = smov (!%p520_p6, %s3857_s22), 31  ;;  %s3859_s27 = sshll.u32 %s5618_s30, 6  ;;  %vm676_vm2 = vcmask 72704  }
  0x10   : > { %v728_v4 = vsel %vm726_vm1, %v727_v2, 0  ;;  %v4659_v5 = vld [vmem:[%s5595_s4] sm:$0xff]   ;;  %s3858_s28 = sshll.u32 %s5620_s22, 1  ;;  %s3862_s26 = sshll.u32 %s5620_s22, 2  ;;  %vm956_vm3 = vcmask 130048   ;;  %vm1470_vm4 = vcmask 261120  }
  0x11   : > { %v730_v6 = vand.u32 %v4641_v0, %v728_v4  ;;  %v4857_v7 = vand.u32 %v4642_v3, %v728_v4  ;;  %4596 = vmatprep.subr.bf16.mxu1 %v4659_v5  ;;  %s524_s20 = sadd.s32 %s3859_s27, %s3858_s28  ;;  %s3863_s27 = sshll.u32 %s5618_s30, 7  ;;  %v4909_v26 = vld [vmem:[%s5594_s3] ss:$0 sm:$0xff]  ;;  %vm3602_vm5 = vcmask 1041409   ;;  %vm3604_vm6 = vcmask 1042434  }
  0x12   : > { %4597 = vmatpush3.bf16.msra.mxu1 %v4659_v5  ;;  %s3860_s21 = sshll.u32 %s524_s20, 2  ;;  %s535_s28 = sadd.s32 %s3863_s27, %s3862_s26  ;;  %vm3606_vm7 = vcmask 1043459   ;;  %vm3608_vm8 = vcmask 1044484   ;;  %vm3610_vm9 = vcmask 1045509   ;;  %vm3612_vm10 = vcmask 1046534  }
  0x13   : > { %4292 = vmatprep.subr.bf16.mxu0 %v730_v6  ;;  %4394 = vmatprep.subr.bf16.mxu1 %v4857_v7  ;;  %s4866_s25 = scalar_lea.vmem %s5591_s0, %s3860_s21  ;;  %s3864_s20 = sshll.u32 %s535_s28, 2  ;;  %vm3614_vm11 = vcmask 1047559   ;;  %vm3627_vm12 = vcmask 257024   ;;  %vm3313_vm13 = vcmask 523264   ;;  %vm3732_vm14 = vcmask 781568  }
  0x14   : > { %4293 = vmatpush3.bf16.msra.mxu0 %v730_v6  ;;  %v4643_v8 = vld [vmem:[%s4866_s25] sm:$0xff]   ;;  %v4644_v9 = vld [vmem:[%s4866_s25 + $0x8] sm:$0xff]   ;;  %v4645_v10 = vld [vmem:[%s4866_s25 + $0x10] sm:$0xff]   ;;  %s4883_s24 = scalar_lea.vmem %s5592_s1, %s3864_s20  ;;  %s3865_s22 = sshll.u32 %s4719_s29, 1  ;;  %vm3735_vm15 = vcmask 1044224  }
  0x15   : > { %4326 = vmatprep.subr.bf16.mxu0 %v4659_v5  ;;  %4294 = vmatprep.mubr.msk.bf16.mxu0 %vm676_vm2, %v4643_v8  ;;  %v4646_v11 = vld [vmem:[%s4866_s25 + $0x18] sm:$0xff]   ;;  %v4647_v12 = vld [vmem:[%s4866_s25 + $0x20] sm:$0xff]   ;;  %v4648_v13 = vld [vmem:[%s4866_s25 + $0x28] sm:$0xff]   ;;  %p5255_p7 = scmp.lt.s32.totalorder %s3865_s22, 3  ;;  %s4738_s26 = smov 32  }
  0x16   : > { %v4649_v14 = vld [vmem:[%s4866_s25 + $0x30] sm:$0xff]   ;;  %v4650_v15 = vld [vmem:[%s4866_s25 + $0x38] sm:$0xff]   ;;  %v4651_v16 = vld [vmem:[%s4866_s25 + $0x40] sm:$0xff]  }
  0x17   : > { %4295 = vmatmul.mubr.msk.bf16.vlgmr.msra.gmra.mxu0 %vm676_vm2, %v4644_v9  ;;  %v4652_v17 = vld [vmem:[%s4866_s25 + $0x48] sm:$0xff]   ;;  %v4653_v18 = vld [vmem:[%s4866_s25 + $0x50] sm:$0xff]   ;;  %v4654_v19 = vld [vmem:[%s4866_s25 + $0x58] sm:$0xff]   ;;  %s5622_s22 = smov (!%p5255_p7, %s3865_s22), 3 }
  0x18   : > { %4298 = vmatprep.mubr.msk.bf16.mxu0 %vm676_vm2, %v4645_v10  ;;  %4327 = vmatpush3.bf16.msra.mxu0 %v4659_v5  ;;  %v4655_v20 = vld [vmem:[%s4866_s25 + $0x60] sm:$0xff]   ;;  %v4656_v21 = vld [vmem:[%s4866_s25 + $0x68] sm:$0xff]   ;;  %v4657_v22 = vld [vmem:[%s4866_s25 + $0x70] sm:$0xff]  }
  0x19   : > { %v4658_v23 = vld [vmem:[%s4866_s25 + $0x78] sm:$0xff]   ;;  %s3866_s25 = sshll.u32 %s5618_s30, 2 }
  0x1a   : > { %s545_s29 = sadd.s32 %s3866_s25, %s5622_s22 }
  0x1b   : > { %s3867_s30 = sshll.u32 %s545_s29, 2 }
  0x1c   : > { %s5284_s20 = scalar_lea.vmem %s5605_s14, %s3867_s30 }
  0x1f   : > { %4299 = vmatmul.mubr.msk.bf16.gmra.mxu0 %vm676_vm2, %v4646_v11 }
  0x20   : > { %4302 = vmatprep.mubr.msk.bf16.mxu0 %vm676_vm2, %v4647_v12 }
  0x27   : > { %4303 = vmatmul.mubr.msk.bf16.gmra.mxu0 %vm676_vm2, %v4648_v13 }
  0x28   : > { %4306 = vmatprep.mubr.msk.bf16.mxu0 %vm676_vm2, %v4649_v14 }
  0x2f   : > { %4307 = vmatmul.mubr.msk.bf16.gmra.mxu0 %vm676_vm2, %v4650_v15 }
  0x30   : > { %4310 = vmatprep.mubr.msk.bf16.mxu0 %vm676_vm2, %v4651_v16 }
  0x37   : > { %4311 = vmatmul.mubr.msk.bf16.gmra.mxu0 %vm676_vm2, %v4652_v17 }
  0x38   : > { %4314 = vmatprep.mubr.msk.bf16.mxu0 %vm676_vm2, %v4653_v18 }
  0x3f   : > { %4315 = vmatmul.mubr.msk.bf16.gmra.mxu0 %vm676_vm2, %v4654_v19 }
  0x40   : > { %4318 = vmatprep.mubr.msk.bf16.mxu0 %vm676_vm2, %v4655_v20 }
  0x47   : > { %4319 = vmatmul.mubr.msk.bf16.gmra.mxu0 %vm676_vm2, %v4656_v21 }
  0x48   : > { %4322 = vmatprep.mubr.msk.bf16.mxu0 %vm676_vm2, %v4657_v22 }
  0x4f   : > { %4323 = vmatmul.mubr.msk.bf16.gmra.mxu0 %vm676_vm2, %v4658_v23 }
  0xd7   : > { %v4296_v24 = vpop.f32.mrf.mxu0 }
  0xd8   : > { %v775_v30 = vadd.f32 %v4296_v24, %v4909_v26 }
  0xd9   : > { %v766_v25 = vpop.f32.mrf.mxu0 }
  0xda   : > { %v767_v28 = vadd.f32 %v4909_v26, %v766_v25  ;;  %v895_v37 = vmax.f32 %v775_v30, 0.0 }
  0xdb   : > { %v4297_v27 = vpop.f32.mrf.mxu0 }
  0xdc   : > { %v778_v29 = vadd.f32 %v4297_v27, %v4909_v26  ;;  %v893_v35 = vmax.f32 %v767_v28, 0.0 }
  0xdd   : > { %v769_v31 = vpop.f32.mrf.mxu0 }
  0xde   : > { %v770_v32 = vadd.f32 %v4909_v26, %v769_v31  ;;  %v896_v33 = vmax.f32 %v778_v29, 0.0 }
  0xdf   : > { %v4300_v34 = vpop.f32.mrf.mxu0 }
  0xe0   : > { %v894_v36 = vmax.f32 %v770_v32, 0.0  ;;  %v926_v40 = vpack.c.bf16 %v896_v33, %v895_v37  ;;  %v791_v44 = vadd.f32 %v4300_v34, %v4909_v26 }
  0xe1   : > { %v782_v38 = vpop.f32.mrf.mxu0 }
  0xe2   : > { %v925_v39 = vpack.c.bf16 %v894_v36, %v893_v35  ;;  %v783_v42 = vadd.f32 %v4909_v26, %v782_v38  ;;  %v899_v51 = vmax.f32 %v791_v44, 0.0 }
  0xe3   : > { %v4301_v41 = vpop.f32.mrf.mxu0 }
  0xe4   : > { %v794_v43 = vadd.f32 %v4301_v41, %v4909_v26  ;;  %4328 = vmatprep.mubr.msk.bf16.mxu0 %vm956_vm3, %v925_v39  ;;  %v897_v49 = vmax.f32 %v783_v42, 0.0 }
  0xe5   : > { %v785_v45 = vpop.f32.mrf.mxu0  ;;  %4329 = vmatmul.mubr.msk.bf16.vlgmr.msra.gmra.mxu0 %vm956_vm3, %v926_v40 }
  0xe6   : > { %v786_v46 = vadd.f32 %v4909_v26, %v785_v45  ;;  %v900_v47 = vmax.f32 %v794_v43, 0.0 }
  0xe7   : > { %v4304_v48 = vpop.f32.mrf.mxu0 }
  0xe8   : > { %v898_v50 = vmax.f32 %v786_v46, 0.0  ;;  %v928_v54 = vpack.c.bf16 %v900_v47, %v899_v51  ;;  %v807_v58 = vadd.f32 %v4304_v48, %v4909_v26 }
  0xe9   : > { %v798_v52 = vpop.f32.mrf.mxu0 }
  0xea   : > { %v927_v53 = vpack.c.bf16 %v898_v50, %v897_v49  ;;  %v799_v56 = vadd.f32 %v4909_v26, %v798_v52  ;;  %v903_v1 = vmax.f32 %v807_v58, 0.0 }
  0xeb   : > { %v4305_v55 = vpop.f32.mrf.mxu0 }
  0xec   : > { %v810_v57 = vadd.f32 %v4305_v55, %v4909_v26  ;;  %4332 = vmatprep.mubr.msk.bf16.mxu0 %vm956_vm3, %v927_v53  ;;  %v901_v63 = vmax.f32 %v799_v56, 0.0 }
  0xed   : > { %v801_v59 = vpop.f32.mrf.mxu0  ;;  %4333 = vmatmul.mubr.msk.bf16.gmra.mxu0 %vm956_vm3, %v928_v54 }
  0xee   : > { %v802_v60 = vadd.f32 %v4909_v26, %v801_v59  ;;  %v904_v61 = vmax.f32 %v810_v57, 0.0 }
  0xef   : > { %v4308_v62 = vpop.f32.mrf.mxu0 }
  0xf0   : > { %v902_v0 = vmax.f32 %v802_v60, 0.0  ;;  %v930_v4 = vpack.c.bf16 %v904_v61, %v903_v1  ;;  %v823_v9 = vadd.f32 %v4308_v62, %v4909_v26 }
  0xf1   : > { %v814_v2 = vpop.f32.mrf.mxu0 }
  0xf2   : > { %v929_v3 = vpack.c.bf16 %v902_v0, %v901_v63  ;;  %v815_v6 = vadd.f32 %v4909_v26, %v814_v2  ;;  %v907_v16 = vmax.f32 %v823_v9, 0.0 }
  0xf3   : > { %v4309_v5 = vpop.f32.mrf.mxu0 }
  0xf4   : > { %v826_v8 = vadd.f32 %v4309_v5, %v4909_v26  ;;  %4336 = vmatprep.mubr.msk.bf16.mxu0 %vm956_vm3, %v929_v3  ;;  %v905_v14 = vmax.f32 %v815_v6, 0.0 }
  0xf5   : > { %v817_v10 = vpop.f32.mrf.mxu0  ;;  %4337 = vmatmul.mubr.msk.bf16.gmra.mxu0 %vm956_vm3, %v930_v4 }
  0xf6   : > { %v818_v11 = vadd.f32 %v4909_v26, %v817_v10  ;;  %v908_v12 = vmax.f32 %v826_v8, 0.0 }
  0xf7   : > { %v4312_v13 = vpop.f32.mrf.mxu0 }
  0xf8   : > { %v906_v15 = vmax.f32 %v818_v11, 0.0  ;;  %v932_v19 = vpack.c.bf16 %v908_v12, %v907_v16  ;;  %v839_v23 = vadd.f32 %v4312_v13, %v4909_v26  ;;  %v4660_v11 = vld [vmem:[%s4883_s24] sm:$0xff]   ;;  %v4661_v13 = vld [vmem:[%s4883_s24 + $0x8] sm:$0xff]  }
  0xf9   : > { %v830_v17 = vpop.f32.mrf.mxu0  ;;  %v4665_v16 = vld [vmem:[%s4883_s24 + $0x28] sm:$0xff]  }
  0xfa   : > { %v931_v18 = vpack.c.bf16 %v906_v15, %v905_v14  ;;  %v831_v21 = vadd.f32 %v4909_v26, %v830_v17  ;;  %v911_v31 = vmax.f32 %v839_v23, 0.0  ;;  %v4663_v14 = vld [vmem:[%s4883_s24 + $0x18] sm:$0xff]   ;;  %v4664_v15 = vld [vmem:[%s4883_s24 + $0x20] sm:$0xff]   ;;  %v4666_v17 = vld [vmem:[%s4883_s24 + $0x30] sm:$0xff]  }
  0xfb   : > { %v4313_v20 = vpop.f32.mrf.mxu0  ;;  %v4671_v23 = vld [vmem:[%s4883_s24 + $0x58] sm:$0xff]  }
  0xfc   : > { %v842_v22 = vadd.f32 %v4313_v20, %v4909_v26  ;;  %4340 = vmatprep.mubr.msk.bf16.mxu0 %vm956_vm3, %v931_v18  ;;  %v909_v29 = vmax.f32 %v831_v21, 0.0  ;;  %v4980_v18 = vld [vmem:[%s5601_s10 + $0x8] sm:$0xff]   ;;  %v4668_v20 = vld [vmem:[%s4883_s24 + $0x40] sm:$0xff]  }
  0xfd   : > { %v833_v24 = vpop.f32.mrf.mxu0  ;;  %4341 = vmatmul.mubr.msk.bf16.gmra.mxu0 %vm956_vm3, %v932_v19  ;;  %v4667_v19 = vld [vmem:[%s4883_s24 + $0x38] sm:$0xff]   ;;  %v4669_v21 = vld [vmem:[%s4883_s24 + $0x48] sm:$0xff]  }
  0xfe   : > { %v834_v25 = vadd.f32 %v4909_v26, %v833_v24  ;;  %v912_v27 = vmax.f32 %v842_v22, 0.0  ;;  %v4670_v22 = vld [vmem:[%s4883_s24 + $0x50] sm:$0xff]   ;;  %v4672_v24 = vld [vmem:[%s4883_s24 + $0x60] sm:$0xff]  }
  0xff   : > { %v4316_v28 = vpop.f32.mrf.mxu0 }
 0x100   : > { %v910_v30 = vmax.f32 %v834_v25, 0.0  ;;  %v934_v34 = vpack.c.bf16 %v912_v27, %v911_v31  ;;  %v855_v38 = vadd.f32 %v4316_v28, %v4909_v26  ;;  %v4673_v25 = vld [vmem:[%s4883_s24 + $0x68] sm:$0xff]   ;;  %v4674_v27 = vld [vmem:[%s4883_s24 + $0x70] sm:$0xff]   ;;  %v4675_v28 = vld [vmem:[%s4883_s24 + $0x78] sm:$0xff]  }
 0x101   : > { %v846_v32 = vpop.f32.mrf.mxu0  ;;  %v4678_v31 = vld [vmem:[%s4883_s24 + $0x90] sm:$0xff]  }
 0x102   : > { %v933_v33 = vpack.c.bf16 %v910_v30, %v909_v29  ;;  %v847_v36 = vadd.f32 %v4909_v26, %v846_v32  ;;  %v915_v45 = vmax.f32 %v855_v38, 0.0  ;;  %v4676_v29 = vld [vmem:[%s4883_s24 + $0x80] sm:$0xff]   ;;  %v4677_v30 = vld [vmem:[%s4883_s24 + $0x88] sm:$0xff]   ;;  %v4679_v32 = vld [vmem:[%s4883_s24 + $0x98] sm:$0xff]  }
 0x103   : > { %v4317_v35 = vpop.f32.mrf.mxu0  ;;  %v4685_v38 = vld [vmem:[%s4883_s24 + $0xc8] sm:$0xff]  }
 0x104   : > { %v858_v37 = vadd.f32 %v4317_v35, %v4909_v26  ;;  %4344 = vmatprep.mubr.msk.bf16.mxu1 %vm956_vm3, %v933_v33  ;;  %v913_v43 = vmax.f32 %v847_v36, 0.0  ;;  %v4680_v33 = vld [vmem:[%s4883_s24 + $0xa0] sm:$0xff]   ;;  %v4682_v35 = vld [vmem:[%s4883_s24 + $0xb0] sm:$0xff]   ;;  %v4683_v36 = vld [vmem:[%s4883_s24 + $0xb8] sm:$0xff]  }
 0x105   : > { %v849_v39 = vpop.f32.mrf.mxu0  ;;  %4345 = vmatmul.mubr.msk.bf16.vlgmr.msra.gmra.mxu1 %vm956_vm3, %v934_v34  ;;  %v4681_v34 = vld [vmem:[%s4883_s24 + $0xa8] sm:$0xff]  }
 0x106   : > { %v850_v40 = vadd.f32 %v4909_v26, %v849_v39  ;;  %4395 = vmatpush3.bf16.msra.mxu1 %v4857_v7  ;;  %v916_v41 = vmax.f32 %v858_v37, 0.0  ;;  %v4688_v7 = vld [vmem:[%s5597_s6] sm:$0xff]   ;;  %v4686_v39 = vld [vmem:[%s4883_s24 + $0xd0] sm:$0xff]  }
 0x107   : > { %v4320_v42 = vpop.f32.mrf.mxu0  ;;  %4360 = vmatprep.subr.bf16.mxu0 %v4688_v7  ;;  %v4684_v37 = vld [vmem:[%s4883_s24 + $0xc0] sm:$0xff]  }
 0x108   : > { %v914_v44 = vmax.f32 %v850_v40, 0.0  ;;  %v936_v48 = vpack.c.bf16 %v916_v41, %v915_v45  ;;  %v871_v52 = vadd.f32 %v4320_v42, %v4909_v26  ;;  %4361 = vmatpush3.bf16.msra.mxu0 %v4688_v7  ;;  %v4687_v40 = vld [vmem:[%s4883_s24 + $0xd8] sm:$0xff]   ;;  %v4689_v41 = vld [vmem:[%s4883_s24 + $0xe0] sm:$0xff]   ;;  %v4690_v42 = vld [vmem:[%s4883_s24 + $0xe8] sm:$0xff]  }
 0x109   : > { %v862_v46 = vpop.f32.mrf.mxu0  ;;  %4460 = vmatprep.subr.bf16.mxu0 %v4980_v18 }
 0x10a   : > { %v935_v47 = vpack.c.bf16 %v914_v44, %v913_v43  ;;  %v863_v50 = vadd.f32 %v4909_v26, %v862_v46  ;;  %v919_v59 = vmax.f32 %v871_v52, 0.0  ;;  %v4691_v43 = vld [vmem:[%s4883_s24 + $0xf0] sm:$0xff]   ;;  %v4692_v44 = vld [vmem:[%s4883_s24 + $0xf8] sm:$0xff]  }
 0x10b   : > { %v4321_v49 = vpop.f32.mrf.mxu0 }
 0x10c   : > { %v874_v51 = vadd.f32 %v4321_v49, %v4909_v26  ;;  %4348 = vmatprep.mubr.msk.bf16.mxu1 %vm956_vm3, %v935_v47  ;;  %v917_v57 = vmax.f32 %v863_v50, 0.0  ;;  %v5036_v47 = vld [vmem:[%s5596_s5] ss:$0 sm:$0xff] }
 0x10d   : > { %v865_v53 = vpop.f32.mrf.mxu0  ;;  %4349 = vmatmul.mubr.msk.bf16.gmra.mxu1 %vm956_vm3, %v936_v48 }
 0x10e   : > { %v866_v54 = vadd.f32 %v4909_v26, %v865_v53  ;;  %v920_v55 = vmax.f32 %v874_v51, 0.0 }
 0x10f   : > { %v4324_v56 = vpop.f32.mrf.mxu0 }
 0x110   : > { %v918_v58 = vmax.f32 %v866_v54, 0.0  ;;  %v938_v62 = vpack.c.bf16 %v920_v55, %v919_v59  ;;  %v887_v2 = vadd.f32 %v4324_v56, %v4909_v26 }
 0x111   : > { %v878_v60 = vpop.f32.mrf.mxu0 }
 0x112   : > { %v937_v61 = vpack.c.bf16 %v918_v58, %v917_v57  ;;  %v879_v0 = vadd.f32 %v4909_v26, %v878_v60  ;;  %v923_v9 = vmax.f32 %v887_v2, 0.0 }
 0x113   : > { %v4325_v63 = vpop.f32.mrf.mxu0 }
 0x114   : > { %v890_v1 = vadd.f32 %v4325_v63, %v4909_v26  ;;  %4352 = vmatprep.mubr.msk.bf16.mxu1 %vm956_vm3, %v937_v61  ;;  %v921_v6 = vmax.f32 %v879_v0, 0.0 }
 0x115   : > { %v881_v3 = vpop.f32.mrf.mxu0  ;;  %4353 = vmatmul.mubr.msk.bf16.gmra.mxu1 %vm956_vm3, %v938_v62  ;;  %v4694_v62 = vld [vmem:[%s5601_s10] sm:$0xff]  }
 0x116   : > { %v882_v4 = vadd.f32 %v4909_v26, %v881_v3  ;;  %v924_v5 = vmax.f32 %v890_v1, 0.0  ;;  %v4662_v26 = vld [vmem:[%s4883_s24 + $0x10] sm:$0xff]  }
 0x118   : > { %v922_v8 = vmax.f32 %v882_v4, 0.0  ;;  %v940_v12 = vpack.c.bf16 %v924_v5, %v923_v9 }
 0x11a   : > { %v939_v10 = vpack.c.bf16 %v922_v8, %v921_v6 }
 0x11c   : > { %4356 = vmatprep.mubr.msk.bf16.mxu1 %vm956_vm3, %v939_v10 }
 0x11d   : > { %4357 = vmatmul.mubr.msk.bf16.gmra.mxu1 %vm956_vm3, %v940_v12 }
 0x11e   : > { %4396 = vmatprep.mubr.msk.bf16.mxu1 %vm676_vm2, %v4660_v11 }
 0x125   : > { %4397 = vmatmul.mubr.msk.bf16.vlgmr.msra.gmra.mxu1 %vm676_vm2, %v4661_v13 }
 0x126   : > { %4400 = vmatprep.mubr.msk.bf16.mxu1 %vm676_vm2, %v4662_v26 }
 0x12d   : > { %4401 = vmatmul.mubr.msk.bf16.gmra.mxu1 %vm676_vm2, %v4663_v14 }
 0x12e   : > { %4404 = vmatprep.mubr.msk.bf16.mxu1 %vm676_vm2, %v4664_v15 }
 0x135   : > { %4405 = vmatmul.mubr.msk.bf16.gmra.mxu1 %vm676_vm2, %v4665_v16 }
 0x136   : > { %4408 = vmatprep.mubr.msk.bf16.mxu1 %vm676_vm2, %v4666_v17 }
 0x13d   : > { %4409 = vmatmul.mubr.msk.bf16.gmra.mxu1 %vm676_vm2, %v4667_v19 }
 0x13e   : > { %4412 = vmatprep.mubr.msk.bf16.mxu1 %vm676_vm2, %v4668_v20 }
 0x145   : > { %4413 = vmatmul.mubr.msk.bf16.gmra.mxu1 %vm676_vm2, %v4669_v21 }
 0x146   : > { %4416 = vmatprep.mubr.msk.bf16.mxu1 %vm676_vm2, %v4670_v22 }
 0x14d   : > { %4417 = vmatmul.mubr.msk.bf16.gmra.mxu1 %vm676_vm2, %v4671_v23 }
 0x14e   : > { %4420 = vmatprep.mubr.msk.bf16.mxu1 %vm676_vm2, %v4672_v24 }
 0x155   : > { %4421 = vmatmul.mubr.msk.bf16.gmra.mxu1 %vm676_vm2, %v4673_v25 }
 0x156   : > { %4424 = vmatprep.mubr.msk.bf16.mxu1 %vm676_vm2, %v4674_v27 }
 0x15d   : > { %4425 = vmatmul.mubr.msk.bf16.gmra.mxu1 %vm676_vm2, %v4675_v28 }
 0x15e   : > { %4428 = vmatprep.mubr.msk.bf16.mxu1 %vm676_vm2, %v4676_v29 }
 0x165   : > { %4429 = vmatmul.mubr.msk.bf16.gmra.mxu1 %vm676_vm2, %v4677_v30  ;;  %v4695_v30 = vld [vmem:[%s5603_s12 + $0x8] sm:$0xff]  }
 0x166   : > { %4432 = vmatprep.mubr.msk.bf16.mxu1 %vm676_vm2, %v4678_v31  ;;  %4528 = vmatprep.subr.bf16.mxu1 %v4695_v30 }
 0x167   : > { %4529 = vmatpush3.bf16.msra.mxu1 %v4695_v30 }
 0x16d   : > { %4433 = vmatmul.mubr.msk.bf16.gmra.mxu1 %vm676_vm2, %v4679_v32 }
 0x16e   : > { %4436 = vmatprep.mubr.msk.bf16.mxu1 %vm676_vm2, %v4680_v33 }
 0x175   : > { %4437 = vmatmul.mubr.msk.bf16.gmra.mxu1 %vm676_vm2, %v4681_v34 }
 0x176   : > { %4440 = vmatprep.mubr.msk.bf16.mxu1 %vm676_vm2, %v4682_v35 }
 0x17d   : > { %4441 = vmatmul.mubr.msk.bf16.gmra.mxu1 %vm676_vm2, %v4683_v36 }
 0x17e   : > { %4444 = vmatprep.mubr.msk.bf16.mxu1 %vm676_vm2, %v4684_v37 }
 0x185   : > { %4445 = vmatmul.mubr.msk.bf16.gmra.mxu1 %vm676_vm2, %v4685_v38 }
 0x186   : > { %4448 = vmatprep.mubr.msk.bf16.mxu1 %vm676_vm2, %v4686_v39 }
 0x18d   : > { %4449 = vmatmul.mubr.msk.bf16.gmra.mxu1 %vm676_vm2, %v4687_v40 }
 0x18e   : > { %4452 = vmatprep.mubr.msk.bf16.mxu1 %vm676_vm2, %v4689_v41 }
 0x195   : > { %4453 = vmatmul.mubr.msk.bf16.gmra.mxu1 %vm676_vm2, %v4690_v42 }
 0x196   : > { %4456 = vmatprep.mubr.msk.bf16.mxu1 %vm676_vm2, %v4691_v43 }
 0x19d   : > { %4457 = vmatmul.mubr.msk.bf16.gmra.mxu1 %vm676_vm2, %v4692_v44 }
 0x1a5   : > { %v4330_v45 = vpop.f32.mrf.mxu0 }
 0x1a6   : > { %v1048_v51 = vadd.f32 %v4330_v45, %v5036_v47 }
 0x1a7   : > { %v1039_v46 = vpop.f32.mrf.mxu0 }
 0x1a8   : > { %v1040_v49 = vadd.f32 %v5036_v47, %v1039_v46  ;;  %v1168_v57 = vmax.f32 %v1048_v51, 0.0 }
 0x1a9   : > { %v4331_v48 = vpop.f32.mrf.mxu0 }
 0x1aa   : > { %v1051_v50 = vadd.f32 %v4331_v48, %v5036_v47  ;;  %v1166_v55 = vmax.f32 %v1040_v49, 0.0 }
 0x1ab   : > { %v1042_v52 = vpop.f32.mrf.mxu0 }
 0x1ac   : > { %v1043_v53 = vadd.f32 %v5036_v47, %v1042_v52  ;;  %v1169_v7 = vmax.f32 %v1051_v50, 0.0 }
 0x1ad   : > { %v4334_v54 = vpop.f32.mrf.mxu0 }
 0x1ae   : > { %v1167_v56 = vmax.f32 %v1043_v53, 0.0  ;;  %v1199_v60 = vpack.c.bf16 %v1169_v7, %v1168_v57  ;;  %v1064_v1 = vadd.f32 %v4334_v54, %v5036_v47 }
 0x1af   : > { %v1055_v58 = vpop.f32.mrf.mxu0 }
 0x1b0   : > { %v1198_v59 = vpack.c.bf16 %v1167_v56, %v1166_v55  ;;  %v1056_v63 = vadd.f32 %v5036_v47, %v1055_v58  ;;  %v1172_v9 = vmax.f32 %v1064_v1, 0.0 }
 0x1b1   : > { %v4335_v61 = vpop.f32.mrf.mxu0 }
 0x1b2   : > { %v1067_v0 = vadd.f32 %v4335_v61, %v5036_v47  ;;  %4362 = vmatprep.mubr.msk.bf16.mxu0 %vm956_vm3, %v1198_v59  ;;  %v1170_v6 = vmax.f32 %v1056_v63, 0.0 }
 0x1b3   : > { %v1058_v2 = vpop.f32.mrf.mxu0  ;;  %4363 = vmatmul.mubr.msk.bf16.vlgmr.msra.gmra.mxu0 %vm956_vm3, %v1199_v60 }
 0x1b4   : > { %v1059_v3 = vadd.f32 %v5036_v47, %v1058_v2  ;;  %4461 = vmatpush3.bf16.msra.mxu0 %v4980_v18  ;;  %v1173_v4 = vmax.f32 %v1067_v0, 0.0 }
 0x1b5   : > { %v4338_v5 = vpop.f32.mrf.mxu0  ;;  %4462 = vmatprep.subr.bf16.mxu0 %v4694_v62 }
 0x1b6   : > { %v1171_v8 = vmax.f32 %v1059_v3, 0.0  ;;  %v1201_v12 = vpack.c.bf16 %v1173_v4, %v1172_v9  ;;  %v1080_v15 = vadd.f32 %v4338_v5, %v5036_v47 }
 0x1b7   : > { %v1071_v10 = vpop.f32.mrf.mxu0 }
 0x1b8   : > { %v1200_v11 = vpack.c.bf16 %v1171_v8, %v1170_v6  ;;  %4463 = vmatpush3.bf16.msra.mxu0 %v4694_v62  ;;  %v1072_v26 = vadd.f32 %v5036_v47, %v1071_v10  ;;  %v1176_v22 = vmax.f32 %v1080_v15, 0.0 }
 0x1b9   : > { %v4339_v13 = vpop.f32.mrf.mxu0 }
 0x1ba   : > { %v1083_v14 = vadd.f32 %v4339_v13, %v5036_v47  ;;  %4366 = vmatprep.mubr.msk.bf16.mxu0 %vm956_vm3, %v1200_v11  ;;  %v1174_v20 = vmax.f32 %v1072_v26, 0.0 }
 0x1bb   : > { %v1074_v16 = vpop.f32.mrf.mxu0  ;;  %4367 = vmatmul.mubr.msk.bf16.gmra.mxu0 %vm956_vm3, %v1201_v12 }
 0x1bc   : > { %v1075_v17 = vadd.f32 %v5036_v47, %v1074_v16  ;;  %v1177_v18 = vmax.f32 %v1083_v14, 0.0 }
 0x1bd   : > { %v4342_v19 = vpop.f32.mrf.mxu0 }
 0x1be   : > { %v1175_v21 = vmax.f32 %v1075_v17, 0.0  ;;  %v1203_v25 = vpack.c.bf16 %v1177_v18, %v1176_v22  ;;  %v1096_v31 = vadd.f32 %v4342_v19, %v5036_v47 }
 0x1bf   : > { %v1087_v23 = vpop.f32.mrf.mxu0 }
 0x1c0   : > { %v1202_v24 = vpack.c.bf16 %v1175_v21, %v1174_v20  ;;  %v1088_v28 = vadd.f32 %v5036_v47, %v1087_v23  ;;  %v1180_v38 = vmax.f32 %v1096_v31, 0.0 }
 0x1c1   : > { %v4343_v27 = vpop.f32.mrf.mxu0 }
 0x1c2   : > { %v1099_v29 = vadd.f32 %v4343_v27, %v5036_v47  ;;  %4370 = vmatprep.mubr.msk.bf16.mxu0 %vm956_vm3, %v1202_v24  ;;  %v1178_v36 = vmax.f32 %v1088_v28, 0.0 }
 0x1c3   : > { %v1090_v32 = vpop.f32.mrf.mxu0  ;;  %4371 = vmatmul.mubr.msk.bf16.gmra.mxu0 %vm956_vm3, %v1203_v25 }
 0x1c4   : > { %v1091_v33 = vadd.f32 %v5036_v47, %v1090_v32  ;;  %v1181_v34 = vmax.f32 %v1099_v29, 0.0 }
 0x1c5   : > { %v4346_v35 = vpop.f32.mrf.mxu1 }
 0x1c6   : > { %v1179_v37 = vmax.f32 %v1091_v33, 0.0  ;;  %v1205_v41 = vpack.c.bf16 %v1181_v34, %v1180_v38  ;;  %v1112_v45 = vadd.f32 %v4346_v35, %v5036_v47  ;;  %v5094_v34 = vld [vmem:[%s5600_s9] ss:$0 sm:$0xff] }
 0x1c7   : > { %v1103_v39 = vpop.f32.mrf.mxu1 }
 0x1c8   : > { %v1204_v40 = vpack.c.bf16 %v1179_v37, %v1178_v36  ;;  %v1104_v43 = vadd.f32 %v5036_v47, %v1103_v39  ;;  %v1184_v53 = vmax.f32 %v1112_v45, 0.0 }
 0x1c9   : > { %v4347_v42 = vpop.f32.mrf.mxu1 }
 0x1ca   : > { %v1115_v44 = vadd.f32 %v4347_v42, %v5036_v47  ;;  %4374 = vmatprep.mubr.msk.bf16.mxu0 %vm956_vm3, %v1204_v40  ;;  %v1182_v51 = vmax.f32 %v1104_v43, 0.0 }
 0x1cb   : > { %v1106_v46 = vpop.f32.mrf.mxu1  ;;  %4375 = vmatmul.mubr.msk.bf16.gmra.mxu0 %vm956_vm3, %v1205_v41 }
 0x1cc   : > { %v1107_v48 = vadd.f32 %v5036_v47, %v1106_v46  ;;  %v1185_v49 = vmax.f32 %v1115_v44, 0.0 }
 0x1cd   : > { %v4350_v50 = vpop.f32.mrf.mxu1 }
 0x1ce   : > { %v1183_v52 = vmax.f32 %v1107_v48, 0.0  ;;  %v1207_v55 = vpack.c.bf16 %v1185_v49, %v1184_v53  ;;  %v1128_v59 = vadd.f32 %v4350_v50, %v5036_v47 }
 0x1cf   : > { %v1119_v7 = vpop.f32.mrf.mxu1 }
 0x1d0   : > { %v1206_v54 = vpack.c.bf16 %v1183_v52, %v1182_v51  ;;  %v1120_v57 = vadd.f32 %v5036_v47, %v1119_v7  ;;  %v1188_v2 = vmax.f32 %v1128_v59, 0.0 }
 0x1d1   : > { %v4351_v56 = vpop.f32.mrf.mxu1 }
 0x1d2   : > { %v1131_v58 = vadd.f32 %v4351_v56, %v5036_v47  ;;  %4378 = vmatprep.mubr.msk.bf16.mxu0 %vm956_vm3, %v1206_v54  ;;  %v1186_v0 = vmax.f32 %v1120_v57, 0.0 }
 0x1d3   : > { %v1122_v60 = vpop.f32.mrf.mxu1  ;;  %4379 = vmatmul.mubr.msk.bf16.gmra.mxu0 %vm956_vm3, %v1207_v55 }
 0x1d4   : > { %v1123_v61 = vadd.f32 %v5036_v47, %v1122_v60  ;;  %v1189_v62 = vmax.f32 %v1131_v58, 0.0 }
 0x1d5   : > { %v4354_v63 = vpop.f32.mrf.mxu1 }
 0x1d6   : > { %v1187_v1 = vmax.f32 %v1123_v61, 0.0  ;;  %v1209_v5 = vpack.c.bf16 %v1189_v62, %v1188_v2  ;;  %v1144_v10 = vadd.f32 %v4354_v63, %v5036_v47 }
 0x1d7   : > { %v1135_v3 = vpop.f32.mrf.mxu1 }
 0x1d8   : > { %v1208_v4 = vpack.c.bf16 %v1187_v1, %v1186_v0  ;;  %v1136_v8 = vadd.f32 %v5036_v47, %v1135_v3  ;;  %v1192_v16 = vmax.f32 %v1144_v10, 0.0 }
 0x1d9   : > { %v4355_v6 = vpop.f32.mrf.mxu1 }
 0x1da   : > { %v1147_v9 = vadd.f32 %v4355_v6, %v5036_v47  ;;  %4382 = vmatprep.mubr.msk.bf16.mxu0 %vm956_vm3, %v1208_v4  ;;  %v1190_v14 = vmax.f32 %v1136_v8, 0.0 }
 0x1db   : > { %v1138_v11 = vpop.f32.mrf.mxu1  ;;  %4383 = vmatmul.mubr.msk.bf16.gmra.mxu0 %vm956_vm3, %v1209_v5 }
 0x1dc   : > { %v1139_v12 = vadd.f32 %v5036_v47, %v1138_v11  ;;  %v1193_v13 = vmax.f32 %v1147_v9, 0.0 }
 0x1dd   : > { %v4358_v26 = vpop.f32.mrf.mxu1 }
 0x1de   : > { %v1191_v15 = vmax.f32 %v1139_v12, 0.0  ;;  %v1211_v19 = vpack.c.bf16 %v1193_v13, %v1192_v16  ;;  %v1160_v23 = vadd.f32 %v4358_v26, %v5036_v47 }
 0x1df   : > { %v1151_v17 = vpop.f32.mrf.mxu1 }
 0x1e0   : > { %v1210_v18 = vpack.c.bf16 %v1191_v15, %v1190_v14  ;;  %v1152_v21 = vadd.f32 %v5036_v47, %v1151_v17  ;;  %v1196_v31 = vmax.f32 %v1160_v23, 0.0 }
 0x1e1   : > { %v4359_v20 = vpop.f32.mrf.mxu1 }
 0x1e2   : > { %v1163_v22 = vadd.f32 %v4359_v20, %v5036_v47  ;;  %4386 = vmatprep.mubr.msk.bf16.mxu0 %vm956_vm3, %v1210_v18  ;;  %v1194_v29 = vmax.f32 %v1152_v21, 0.0 }
 0x1e3   : > { %v1154_v24 = vpop.f32.mrf.mxu1  ;;  %4387 = vmatmul.mubr.msk.bf16.gmra.mxu0 %vm956_vm3, %v1211_v19 }
 0x1e4   : > { %v1155_v25 = vadd.f32 %v5036_v47, %v1154_v24  ;;  %v1197_v27 = vmax.f32 %v1163_v22, 0.0 }
 0x1e5   : > { %v4398_v28 = vpop.f32.mrf.mxu1 }
 0x1e6   : > { %v1195_v30 = vmax.f32 %v1155_v25, 0.0  ;;  %v1213_v35 = vpack.c.bf16 %v1197_v27, %v1196_v31  ;;  %v1995_v47 = vadd.f32 %v4398_v28, %v5094_v34 }
 0x1e7   : > { %v1986_v32 = vpop.f32.mrf.mxu1 }
 0x1e8   : > { %v1212_v33 = vpack.c.bf16 %v1195_v30, %v1194_v29  ;;  %v1987_v37 = vadd.f32 %v5094_v34, %v1986_v32  ;;  %v2243_v45 = vmax.f32 %v1995_v47, 0.0 }
 0x1e9   : > { %v4399_v36 = vpop.f32.mrf.mxu1 }
 0x1ea   : > { %v1998_v38 = vadd.f32 %v4399_v36, %v5094_v34  ;;  %4390 = vmatprep.mubr.msk.bf16.mxu0 %vm956_vm3, %v1212_v33  ;;  %v2241_v43 = vmax.f32 %v1987_v37, 0.0 }
 0x1eb   : > { %4391 = vmatmul.mubr.msk.bf16.gmra.mxu0 %vm956_vm3, %v1213_v35  ;;  %v1989_v39 = vpop.f32.mrf.mxu1 }
 0x1ec   : > { %v1990_v40 = vadd.f32 %v5094_v34, %v1989_v39  ;;  %v2244_v41 = vmax.f32 %v1998_v38, 0.0 }
 0x1ed   : > { %v4402_v42 = vpop.f32.mrf.mxu1 }
 0x1ee   : > { %v2242_v44 = vmax.f32 %v1990_v40, 0.0  ;;  %v2306_v49 = vpack.c.bf16 %v2244_v41, %v2243_v45  ;;  %v2011_v53 = vadd.f32 %v4402_v42, %v5094_v34 }
 0x1ef   : > { %v2002_v46 = vpop.f32.mrf.mxu1 }
 0x1f0   : > { %v2305_v48 = vpack.c.bf16 %v2242_v44, %v2241_v43  ;;  %v2003_v51 = vadd.f32 %v5094_v34, %v2002_v46  ;;  %v2247_v59 = vmax.f32 %v2011_v53, 0.0 }
 0x1f1   : > { %v4403_v50 = vpop.f32.mrf.mxu1 }
 0x1f2   : > { %v2014_v52 = vadd.f32 %v4403_v50, %v5094_v34  ;;  %4464 = vmatprep.mubr.msk.bf16.mxu0 %vm1470_vm4, %v2305_v48  ;;  %v2245_v57 = vmax.f32 %v2003_v51, 0.0  ;;  %v4696_v51 = vld [vmem:[%s5603_s12] sm:$0xff]  }
 0x1f3   : > { %v2005_v7 = vpop.f32.mrf.mxu1  ;;  %4465 = vmatmul.mubr.msk.bf16.vlgmr.msra.gmra.mxu0 %vm1470_vm4, %v2306_v49  ;;  %4530 = vmatprep.subr.bf16.mxu1 %v4696_v51 }
 0x1f4   : > { %v2006_v54 = vadd.f32 %v5094_v34, %v2005_v7  ;;  %v2248_v55 = vmax.f32 %v2014_v52, 0.0  ;;  %4531 = vmatpush3.bf16.msra.mxu1 %v4696_v51 }
 0x1f5   : > { %v4406_v56 = vpop.f32.mrf.mxu1 }
 0x1f6   : > { %v2246_v58 = vmax.f32 %v2006_v54, 0.0  ;;  %v2308_v62 = vpack.c.bf16 %v2248_v55, %v2247_v59  ;;  %v2027_v2 = vadd.f32 %v4406_v56, %v5094_v34 }
 0x1f7   : > { %v2018_v60 = vpop.f32.mrf.mxu1 }
 0x1f8   : > { %v2307_v61 = vpack.c.bf16 %v2246_v58, %v2245_v57  ;;  %v2019_v0 = vadd.f32 %v5094_v34, %v2018_v60  ;;  %v2251_v10 = vmax.f32 %v2027_v2, 0.0 }
 0x1f9   : > { %v4407_v63 = vpop.f32.mrf.mxu1 }
 0x1fa   : > { %v2030_v1 = vadd.f32 %v4407_v63, %v5094_v34  ;;  %4468 = vmatprep.mubr.msk.bf16.mxu0 %vm1470_vm4, %v2307_v61  ;;  %v2249_v8 = vmax.f32 %v2019_v0, 0.0 }
 0x1fb   : > { %v2021_v3 = vpop.f32.mrf.mxu1  ;;  %4469 = vmatmul.mubr.msk.bf16.gmra.mxu0 %vm1470_vm4, %v2308_v62 }
 0x1fc   : > { %v2022_v4 = vadd.f32 %v5094_v34, %v2021_v3  ;;  %v2252_v5 = vmax.f32 %v2030_v1, 0.0 }
 0x1fd   : > { %v4410_v6 = vpop.f32.mrf.mxu1 }
 0x1fe   : > { %v2250_v9 = vmax.f32 %v2022_v4, 0.0  ;;  %v2310_v13 = vpack.c.bf16 %v2252_v5, %v2251_v10  ;;  %v2043_v16 = vadd.f32 %v4410_v6, %v5094_v34 }
 0x1ff   : > { %v2034_v11 = vpop.f32.mrf.mxu1 }
 0x200   : > { %v2309_v12 = vpack.c.bf16 %v2250_v9, %v2249_v8  ;;  %v2035_v14 = vadd.f32 %v5094_v34, %v2034_v11  ;;  %v2255_v23 = vmax.f32 %v2043_v16, 0.0 }
 0x201   : > { %v4411_v26 = vpop.f32.mrf.mxu1 }
 0x202   : > { %v2046_v15 = vadd.f32 %v4411_v26, %v5094_v34  ;;  %4472 = vmatprep.mubr.msk.bf16.mxu0 %vm1470_vm4, %v2309_v12  ;;  %v2253_v21 = vmax.f32 %v2035_v14, 0.0 }
 0x203   : > { %v2037_v17 = vpop.f32.mrf.mxu1  ;;  %4473 = vmatmul.mubr.msk.bf16.gmra.mxu0 %vm1470_vm4, %v2310_v13 }
 0x204   : > { %v2038_v18 = vadd.f32 %v5094_v34, %v2037_v17  ;;  %v2256_v19 = vmax.f32 %v2046_v15, 0.0 }
 0x205   : > { %v4414_v20 = vpop.f32.mrf.mxu1 }
 0x206   : > { %v2254_v22 = vmax.f32 %v2038_v18, 0.0  ;;  %v2312_v27 = vpack.c.bf16 %v2256_v19, %v2255_v23  ;;  %v2059_v31 = vadd.f32 %v4414_v20, %v5094_v34 }
 0x207   : > { %v2050_v24 = vpop.f32.mrf.mxu1 }
 0x208   : > { %v2311_v25 = vpack.c.bf16 %v2254_v22, %v2253_v21  ;;  %v2051_v29 = vadd.f32 %v5094_v34, %v2050_v24  ;;  %v2259_v47 = vmax.f32 %v2059_v31, 0.0 }
 0x209   : > { %v4415_v28 = vpop.f32.mrf.mxu1 }
 0x20a   : > { %v2062_v30 = vadd.f32 %v4415_v28, %v5094_v34  ;;  %4476 = vmatprep.mubr.msk.bf16.mxu0 %vm1470_vm4, %v2311_v25  ;;  %v2257_v37 = vmax.f32 %v2051_v29, 0.0 }
 0x20b   : > { %v2053_v32 = vpop.f32.mrf.mxu1  ;;  %4477 = vmatmul.mubr.msk.bf16.gmra.mxu0 %vm1470_vm4, %v2312_v27 }
 0x20c   : > { %v2054_v33 = vadd.f32 %v5094_v34, %v2053_v32  ;;  %v2260_v35 = vmax.f32 %v2062_v30, 0.0 }
 0x20d   : > { %v4418_v36 = vpop.f32.mrf.mxu1 }
 0x20e   : > { %v2258_v38 = vmax.f32 %v2054_v33, 0.0  ;;  %v2314_v41 = vpack.c.bf16 %v2260_v35, %v2259_v47  ;;  %v2075_v45 = vadd.f32 %v4418_v36, %v5094_v34 }
 0x20f   : > { %v2066_v39 = vpop.f32.mrf.mxu1 }
 0x210   : > { %v2313_v40 = vpack.c.bf16 %v2258_v38, %v2257_v37  ;;  %v2067_v43 = vadd.f32 %v5094_v34, %v2066_v39  ;;  %v2263_v7 = vmax.f32 %v2075_v45, 0.0 }
 0x211   : > { %v4419_v42 = vpop.f32.mrf.mxu1 }
 0x212   : > { %v2078_v44 = vadd.f32 %v4419_v42, %v5094_v34  ;;  %4480 = vmatprep.mubr.msk.bf16.mxu0 %vm1470_vm4, %v2313_v40  ;;  %v2261_v52 = vmax.f32 %v2067_v43, 0.0 }
 0x213   : > { %v2069_v46 = vpop.f32.mrf.mxu1  ;;  %4481 = vmatmul.mubr.msk.bf16.gmra.mxu0 %vm1470_vm4, %v2314_v41 }
 0x214   : > { %v2070_v48 = vadd.f32 %v5094_v34, %v2069_v46  ;;  %v2264_v49 = vmax.f32 %v2078_v44, 0.0 }
 0x215   : > { %v4422_v50 = vpop.f32.mrf.mxu1 }
 0x216   : > { %v2262_v53 = vmax.f32 %v2070_v48, 0.0  ;;  %v2316_v56 = vpack.c.bf16 %v2264_v49, %v2263_v7  ;;  %v2091_v60 = vadd.f32 %v4422_v50, %v5094_v34 }
 0x217   : > { %v2082_v54 = vpop.f32.mrf.mxu1 }
 0x218   : > { %v2315_v55 = vpack.c.bf16 %v2262_v53, %v2261_v52  ;;  %v2083_v58 = vadd.f32 %v5094_v34, %v2082_v54  ;;  %v2267_v3 = vmax.f32 %v2091_v60, 0.0 }
 0x219   : > { %v4423_v57 = vpop.f32.mrf.mxu1 }
 0x21a   : > { %v2094_v59 = vadd.f32 %v4423_v57, %v5094_v34  ;;  %4484 = vmatprep.mubr.msk.bf16.mxu0 %vm1470_vm4, %v2315_v55  ;;  %v2265_v1 = vmax.f32 %v2083_v58, 0.0 }
 0x21b   : > { %v2085_v61 = vpop.f32.mrf.mxu1  ;;  %4485 = vmatmul.mubr.msk.bf16.gmra.mxu0 %vm1470_vm4, %v2316_v56 }
 0x21c   : > { %v2086_v62 = vadd.f32 %v5094_v34, %v2085_v61  ;;  %v2268_v63 = vmax.f32 %v2094_v59, 0.0 }
 0x21d   : > { %v4426_v0 = vpop.f32.mrf.mxu1 }
 0x21e   : > { %v2266_v2 = vmax.f32 %v2086_v62, 0.0  ;;  %v2318_v6 = vpack.c.bf16 %v2268_v63, %v2267_v3  ;;  %v2107_v11 = vadd.f32 %v4426_v0, %v5094_v34 }
 0x21f   : > { %v2098_v4 = vpop.f32.mrf.mxu1 }
 0x220   : > { %v2317_v5 = vpack.c.bf16 %v2266_v2, %v2265_v1  ;;  %v2099_v9 = vadd.f32 %v5094_v34, %v2098_v4  ;;  %v2271_v17 = vmax.f32 %v2107_v11, 0.0 }
 0x221   : > { %v4427_v8 = vpop.f32.mrf.mxu1 }
 0x222   : > { %v2110_v10 = vadd.f32 %v4427_v8, %v5094_v34  ;;  %4488 = vmatprep.mubr.msk.bf16.mxu0 %vm1470_vm4, %v2317_v5  ;;  %v2269_v15 = vmax.f32 %v2099_v9, 0.0 }
 0x223   : > { %v2101_v12 = vpop.f32.mrf.mxu1  ;;  %4489 = vmatmul.mubr.msk.bf16.gmra.mxu0 %vm1470_vm4, %v2318_v6 }
 0x224   : > { %v2102_v13 = vadd.f32 %v5094_v34, %v2101_v12  ;;  %v2272_v26 = vmax.f32 %v2110_v10, 0.0 }
 0x225   : > { %v4430_v14 = vpop.f32.mrf.mxu1 }
 0x226   : > { %v2270_v16 = vmax.f32 %v2102_v13, 0.0  ;;  %v2320_v20 = vpack.c.bf16 %v2272_v26, %v2271_v17  ;;  %v2123_v24 = vadd.f32 %v4430_v14, %v5094_v34 }
 0x227   : > { %v2114_v18 = vpop.f32.mrf.mxu1 }
 0x228   : > { %v2319_v19 = vpack.c.bf16 %v2270_v16, %v2269_v15  ;;  %v2115_v22 = vadd.f32 %v5094_v34, %v2114_v18  ;;  %v2275_v32 = vmax.f32 %v2123_v24, 0.0 }
 0x229   : > { %v4431_v21 = vpop.f32.mrf.mxu1 }
 0x22a   : > { %v2126_v23 = vadd.f32 %v4431_v21, %v5094_v34  ;;  %4492 = vmatprep.mubr.msk.bf16.mxu0 %vm1470_vm4, %v2319_v19  ;;  %v2273_v30 = vmax.f32 %v2115_v22, 0.0 }
 0x22b   : > { %v2117_v25 = vpop.f32.mrf.mxu1  ;;  %4493 = vmatmul.mubr.msk.bf16.gmra.mxu0 %vm1470_vm4, %v2320_v20 }
 0x22c   : > { %v2118_v27 = vadd.f32 %v5094_v34, %v2117_v25  ;;  %v2276_v28 = vmax.f32 %v2126_v23, 0.0 }
 0x22d   : > { %v4434_v29 = vpop.f32.mrf.mxu1 }
 0x22e   : > { %v2274_v31 = vmax.f32 %v2118_v27, 0.0  ;;  %v2322_v36 = vpack.c.bf16 %v2276_v28, %v2275_v32  ;;  %v2139_v39 = vadd.f32 %v4434_v29, %v5094_v34 }
 0x22f   : > { %v2130_v33 = vpop.f32.mrf.mxu1 }
 0x230   : > { %v2321_v35 = vpack.c.bf16 %v2274_v31, %v2273_v30  ;;  %v2131_v38 = vadd.f32 %v5094_v34, %v2130_v33  ;;  %v2279_v46 = vmax.f32 %v2139_v39, 0.0 }
 0x231   : > { %v4435_v37 = vpop.f32.mrf.mxu1 }
 0x232   : > { %v2142_v47 = vadd.f32 %v4435_v37, %v5094_v34  ;;  %4496 = vmatprep.mubr.msk.bf16.mxu0 %vm1470_vm4, %v2321_v35  ;;  %v2277_v44 = vmax.f32 %v2131_v38, 0.0 }
 0x233   : > { %v2133_v40 = vpop.f32.mrf.mxu1  ;;  %4497 = vmatmul.mubr.msk.bf16.gmra.mxu0 %vm1470_vm4, %v2322_v36 }
 0x234   : > { %v2134_v41 = vadd.f32 %v5094_v34, %v2133_v40  ;;  %v2280_v42 = vmax.f32 %v2142_v47, 0.0 }
 0x235   : > { %v4438_v43 = vpop.f32.mrf.mxu1 }
 0x236   : > { %v2278_v45 = vmax.f32 %v2134_v41, 0.0  ;;  %v2324_v50 = vpack.c.bf16 %v2280_v42, %v2279_v46  ;;  %v2155_v7 = vadd.f32 %v4438_v43, %v5094_v34 }
 0x237   : > { %v2146_v48 = vpop.f32.mrf.mxu1 }
 0x238   : > { %v2323_v49 = vpack.c.bf16 %v2278_v45, %v2277_v44  ;;  %v2147_v52 = vadd.f32 %v5094_v34, %v2146_v48  ;;  %v2283_v60 = vmax.f32 %v2155_v7, 0.0 }
 0x239   : > { %v4439_v51 = vpop.f32.mrf.mxu1 }
 0x23a   : > { %v2158_v53 = vadd.f32 %v4439_v51, %v5094_v34  ;;  %4500 = vmatprep.mubr.msk.bf16.mxu0 %vm1470_vm4, %v2323_v49  ;;  %v2281_v58 = vmax.f32 %v2147_v52, 0.0 }
 0x23b   : > { %v2149_v54 = vpop.f32.mrf.mxu1  ;;  %4501 = vmatmul.mubr.msk.bf16.gmra.mxu0 %vm1470_vm4, %v2324_v50 }
 0x23c   : > { %v2150_v55 = vadd.f32 %v5094_v34, %v2149_v54  ;;  %v2284_v56 = vmax.f32 %v2158_v53, 0.0 }
 0x23d   : > { %v4442_v57 = vpop.f32.mrf.mxu1 }
 0x23e   : > { %v2282_v59 = vmax.f32 %v2150_v55, 0.0  ;;  %v2326_v63 = vpack.c.bf16 %v2284_v56, %v2283_v60  ;;  %v2171_v3 = vadd.f32 %v4442_v57, %v5094_v34 }
 0x23f   : > { %v2162_v61 = vpop.f32.mrf.mxu1 }
 0x240   : > { %v2325_v62 = vpack.c.bf16 %v2282_v59, %v2281_v58  ;;  %v2163_v1 = vadd.f32 %v5094_v34, %v2162_v61  ;;  %v2287_v11 = vmax.f32 %v2171_v3, 0.0 }
 0x241   : > { %v4443_v0 = vpop.f32.mrf.mxu1 }
 0x242   : > { %v2174_v2 = vadd.f32 %v4443_v0, %v5094_v34  ;;  %4504 = vmatprep.mubr.msk.bf16.mxu0 %vm1470_vm4, %v2325_v62  ;;  %v2285_v9 = vmax.f32 %v2163_v1, 0.0 }
 0x243   : > { %v2165_v4 = vpop.f32.mrf.mxu1  ;;  %4505 = vmatmul.mubr.msk.bf16.gmra.mxu0 %vm1470_vm4, %v2326_v63 }
 0x244   : > { %v2166_v5 = vadd.f32 %v5094_v34, %v2165_v4  ;;  %v2288_v6 = vmax.f32 %v2174_v2, 0.0 }
 0x245   : > { %v4446_v8 = vpop.f32.mrf.mxu1 }
 0x246   : > { %v2286_v10 = vmax.f32 %v2166_v5, 0.0  ;;  %v2328_v26 = vpack.c.bf16 %v2288_v6, %v2287_v11  ;;  %v2187_v17 = vadd.f32 %v4446_v8, %v5094_v34  ;;  %v5200_v5 = vld [vmem:[%s5598_s7] ss:$0 sm:$0xff] }
 0x247   : > { %v2178_v12 = vpop.f32.mrf.mxu1 }
 0x248   : > { %v2327_v13 = vpack.c.bf16 %v2286_v10, %v2285_v9  ;;  %v2179_v15 = vadd.f32 %v5094_v34, %v2178_v12  ;;  %v2291_v24 = vmax.f32 %v2187_v17, 0.0 }
 0x249   : > { %v4447_v14 = vpop.f32.mrf.mxu1 }
 0x24a   : > { %v2190_v16 = vadd.f32 %v4447_v14, %v5094_v34  ;;  %4508 = vmatprep.mubr.msk.bf16.mxu0 %vm1470_vm4, %v2327_v13  ;;  %v2289_v22 = vmax.f32 %v2179_v15, 0.0 }
 0x24b   : > { %v2181_v18 = vpop.f32.mrf.mxu1  ;;  %4509 = vmatmul.mubr.msk.bf16.gmra.mxu0 %vm1470_vm4, %v2328_v26 }
 0x24c   : > { %v2182_v19 = vadd.f32 %v5094_v34, %v2181_v18  ;;  %v2292_v20 = vmax.f32 %v2190_v16, 0.0 }
 0x24d   : > { %v4450_v21 = vpop.f32.mrf.mxu1 }
 0x24e   : > { %v2290_v23 = vmax.f32 %v2182_v19, 0.0  ;;  %v2330_v28 = vpack.c.bf16 %v2292_v20, %v2291_v24  ;;  %v2203_v32 = vadd.f32 %v4450_v21, %v5094_v34 }
 0x24f   : > { %v2194_v25 = vpop.f32.mrf.mxu1 }
 0x250   : > { %v2329_v27 = vpack.c.bf16 %v2290_v23, %v2289_v22  ;;  %v2195_v30 = vadd.f32 %v5094_v34, %v2194_v25  ;;  %v2295_v39 = vmax.f32 %v2203_v32, 0.0 }
 0x251   : > { %v4451_v29 = vpop.f32.mrf.mxu1 }
 0x252   : > { %v2206_v31 = vadd.f32 %v4451_v29, %v5094_v34  ;;  %4512 = vmatprep.mubr.msk.bf16.mxu0 %vm1470_vm4, %v2329_v27  ;;  %v2293_v38 = vmax.f32 %v2195_v30, 0.0 }
 0x253   : > { %v2197_v33 = vpop.f32.mrf.mxu1  ;;  %4513 = vmatmul.mubr.msk.bf16.gmra.mxu0 %vm1470_vm4, %v2330_v28 }
 0x254   : > { %v2198_v35 = vadd.f32 %v5094_v34, %v2197_v33  ;;  %v2296_v36 = vmax.f32 %v2206_v31, 0.0 }
 0x255   : > { %v4454_v37 = vpop.f32.mrf.mxu1 }
 0x256   : > { %v2294_v47 = vmax.f32 %v2198_v35, 0.0  ;;  %v2332_v42 = vpack.c.bf16 %v2296_v36, %v2295_v39  ;;  %v2219_v46 = vadd.f32 %v4454_v37, %v5094_v34 }
 0x257   : > { %v2210_v40 = vpop.f32.mrf.mxu1 }
 0x258   : > { %v2331_v41 = vpack.c.bf16 %v2294_v47, %v2293_v38  ;;  %v2211_v44 = vadd.f32 %v5094_v34, %v2210_v40  ;;  %v2299_v7 = vmax.f32 %v2219_v46, 0.0 }
 0x259   : > { %v4455_v43 = vpop.f32.mrf.mxu1 }
 0x25a   : > { %v2222_v45 = vadd.f32 %v4455_v43, %v5094_v34  ;;  %4516 = vmatprep.mubr.msk.bf16.mxu0 %vm1470_vm4, %v2331_v41  ;;  %v2297_v52 = vmax.f32 %v2211_v44, 0.0 }
 0x25b   : > { %v2213_v48 = vpop.f32.mrf.mxu1  ;;  %4517 = vmatmul.mubr.msk.bf16.gmra.mxu0 %vm1470_vm4, %v2332_v42 }
 0x25c   : > { %v2214_v49 = vadd.f32 %v5094_v34, %v2213_v48  ;;  %v2300_v50 = vmax.f32 %v2222_v45, 0.0 }
 0x25d   : > { %v4458_v51 = vpop.f32.mrf.mxu1 }
 0x25e   : > { %v2298_v53 = vmax.f32 %v2214_v49, 0.0  ;;  %v2334_v56 = vpack.c.bf16 %v2300_v50, %v2299_v7  ;;  %v2235_v60 = vadd.f32 %v4458_v51, %v5094_v34 }
 0x25f   : > { %v2226_v54 = vpop.f32.mrf.mxu1 }
 0x260   : > { %v2333_v55 = vpack.c.bf16 %v2298_v53, %v2297_v52  ;;  %v2227_v58 = vadd.f32 %v5094_v34, %v2226_v54  ;;  %v2303_v2 = vmax.f32 %v2235_v60, 0.0 }
 0x261   : > { %v4459_v57 = vpop.f32.mrf.mxu1 }
 0x262   : > { %v2238_v59 = vadd.f32 %v4459_v57, %v5094_v34  ;;  %4520 = vmatprep.mubr.msk.bf16.mxu0 %vm1470_vm4, %v2333_v55  ;;  %v2301_v0 = vmax.f32 %v2227_v58, 0.0 }
 0x263   : > { %v2229_v61 = vpop.f32.mrf.mxu1  ;;  %4521 = vmatmul.mubr.msk.bf16.gmra.mxu0 %vm1470_vm4, %v2334_v56 }
 0x264   : > { %v2230_v62 = vadd.f32 %v5094_v34, %v2229_v61  ;;  %v2304_v63 = vmax.f32 %v2238_v59, 0.0 }
 0x266   : > { %v2302_v1 = vmax.f32 %v2230_v62, 0.0  ;;  %v2336_v4 = vpack.c.bf16 %v2304_v63, %v2303_v2 }
 0x268   : > { %v2335_v3 = vpack.c.bf16 %v2302_v1, %v2301_v0 }
 0x26a   : > { %4524 = vmatprep.mubr.msk.bf16.mxu0 %vm1470_vm4, %v2335_v3 }
 0x26b   : > { %4525 = vmatmul.mubr.msk.bf16.gmra.mxu0 %vm1470_vm4, %v2336_v4 }
 0x273   : > { %v4364_v6 = vpop.f32.mrf.mxu0 }
 0x274   : > { %v1320_v8 = vadd.f32 %v4364_v6, %v5200_v5 }
 0x275   : > { %v1311_v9 = vpop.f32.mrf.mxu0 }
 0x276   : > { %v1312_v34 = vadd.f32 %v5200_v5, %v1311_v9  ;;  %v1440_v11 = vmax.f32 %v1320_v8, 0.0 }
 0x277   : > { %v4365_v10 = vpop.f32.mrf.mxu0 }
 0x278   : > { %v1323_v12 = vadd.f32 %v4365_v10, %v5200_v5  ;;  %v1438_v26 = vmax.f32 %v1312_v34, 0.0  ;;  %v1480_v17 = vsel %vm1470_vm4, %v1440_v11, -inf }
 0x279   : > { %v1314_v13 = vpop.f32.mrf.mxu0 }
 0x27a   : > { %v1441_v14 = vmax.f32 %v1323_v12, 0.0  ;;  %v1315_v15 = vadd.f32 %v5200_v5, %v1314_v13  ;;  %v1471_v23 = vsel %vm1470_vm4, %v1438_v26, -inf }
 0x27b   : > { %v4368_v16 = vpop.f32.mrf.mxu0 }
 0x27c   : > { %v1481_v18 = vsel %vm1470_vm4, %v1441_v14, -inf  ;;  %v1439_v19 = vmax.f32 %v1315_v15, 0.0  ;;  %v1336_v20 = vadd.f32 %v4368_v16, %v5200_v5 }
 0x27d   : > { %v1482_v21 = vmax.f32 %v1480_v17, %v1481_v18  ;;  %v1327_v22 = vpop.f32.mrf.mxu0 }
 0x27e   : > { %v1472_v24 = vsel %vm1470_vm4, %v1439_v19, -inf  ;;  %v1328_v25 = vadd.f32 %v5200_v5, %v1327_v22  ;;  %v1444_v30 = vmax.f32 %v1336_v20, 0.0 }
 0x27f   : > { %v1483_v27 = vrot.slane %v1482_v21, 4  ;;  %v1473_v28 = vmax.f32 %v1471_v23, %v1472_v24  ;;  %v4369_v29 = vpop.f32.mrf.mxu0 }
 0x280   : > { %v1339_v31 = vadd.f32 %v4369_v29, %v5200_v5  ;;  %v1442_v35 = vmax.f32 %v1328_v25, 0.0  ;;  %v1498_v40 = vsel %vm1470_vm4, %v1444_v30, -inf }
 0x281   : > { %v1474_v32 = vrot.slane %v1473_v28, 4  ;;  %v1330_v33 = vpop.f32.mrf.mxu0  ;;  %v1484_v38 = vmax.f32 %v1482_v21, %v1483_v27 }
 0x282   : > { %v1445_v36 = vmax.f32 %v1339_v31, 0.0  ;;  %v1331_v37 = vadd.f32 %v5200_v5, %v1330_v33  ;;  %v1489_v48 = vsel %vm1470_vm4, %v1442_v35, -inf }
 0x283   : > { %v1475_v47 = vmax.f32 %v1473_v28, %v1474_v32  ;;  %v4372_v39 = vpop.f32.mrf.mxu0  ;;  %v1485_v51 = vrot.slane %v1484_v38, 2 }
 0x284   : > { %v1499_v41 = vsel %vm1470_vm4, %v1445_v36, -inf  ;;  %v1443_v42 = vmax.f32 %v1331_v37, 0.0  ;;  %v1352_v45 = vadd.f32 %v4372_v39, %v5200_v5 }
 0x285   : > { %v1476_v43 = vrot.slane %v1475_v47, 2  ;;  %v1500_v44 = vmax.f32 %v1498_v40, %v1499_v41  ;;  %v1343_v46 = vpop.f32.mrf.mxu0  ;;  %v1486_v63 = vmax.f32 %v1484_v38, %v1485_v51 }
 0x286   : > { %v1490_v49 = vsel %vm1470_vm4, %v1443_v42, -inf  ;;  %v1344_v50 = vadd.f32 %v5200_v5, %v1343_v46  ;;  %v1448_v58 = vmax.f32 %v1352_v45, 0.0 }
 0x287   : > { %v1477_v52 = vmax.f32 %v1475_v47, %v1476_v43  ;;  %v1501_v53 = vrot.slane %v1500_v44, 4  ;;  %v1491_v7 = vmax.f32 %v1489_v48, %v1490_v49  ;;  %v4373_v54 = vpop.f32.mrf.mxu0  ;;  %v1487_v15 = vrot.slane %v1486_v63, 1 }
 0x288   : > { %v1355_v55 = vadd.f32 %v4373_v54, %v5200_v5  ;;  %v1446_v60 = vmax.f32 %v1344_v50, 0.0  ;;  %v1516_v10 = vsel %vm1470_vm4, %v1448_v58, -inf }
 0x289   : > { %v1502_v56 = vmax.f32 %v1500_v44, %v1501_v53  ;;  %v1492_v57 = vrot.slane %v1491_v7, 4  ;;  %v1346_v59 = vpop.f32.mrf.mxu0  ;;  %v1478_v0 = vrot.slane %v1477_v52, 1  ;;  %v1488_v32 = vmax.f32 %v1486_v63, %v1487_v15 }
 0x28a   : > { %v1449_v61 = vmax.f32 %v1355_v55, 0.0  ;;  %v1347_v62 = vadd.f32 %v5200_v5, %v1346_v59  ;;  %v1507_v12 = vsel %vm1470_vm4, %v1446_v60, -inf }
 0x28b   : > { %v1503_v1 = vrot.slane %v1502_v56, 2  ;;  %v1493_v2 = vmax.f32 %v1491_v7, %v1492_v57  ;;  %v4376_v3 = vpop.f32.mrf.mxu0  ;;  %v1479_v16 = vmax.f32 %v1477_v52, %v1478_v0  ;;  %v4109_v54 = vpack.c.bf16 %v1488_v32, %v1488_v32 }
 0x28c   : > { %v1517_v4 = vsel %vm1470_vm4, %v1449_v61, -inf  ;;  %v1447_v6 = vmax.f32 %v1347_v62, 0.0  ;;  %v1368_v8 = vadd.f32 %v4376_v3, %v5200_v5 }
 0x28d   : > { %v1504_v9 = vmax.f32 %v1502_v56, %v1503_v1  ;;  %v1494_v34 = vrot.slane %v1493_v2, 2  ;;  %v1359_v11 = vpop.f32.mrf.mxu0  ;;  %v1518_v13 = vmax.f32 %v1516_v10, %v1517_v4  ;;  %v4108_v33 = vpack.c.bf16 %v1479_v16, %v1479_v16 }
 0x28e   : > { %v1508_v26 = vsel %vm1470_vm4, %v1447_v6, -inf  ;;  %v1360_v14 = vadd.f32 %v5200_v5, %v1359_v11  ;;  %v1452_v21 = vmax.f32 %v1368_v8, 0.0 }
 0x28f   : > { %v1495_v17 = vmax.f32 %v1493_v2, %v1494_v34  ;;  %v1509_v18 = vmax.f32 %v1507_v12, %v1508_v26  ;;  %v4377_v19 = vpop.f32.mrf.mxu0  ;;  %v1519_v20 = vrot.slane %v1518_v13, 4  ;;  %v1505_v23 = vrot.slane %v1504_v9, 1 }
 0x290   : > { %v1371_v22 = vadd.f32 %v4377_v19, %v5200_v5  ;;  %v1450_v29 = vmax.f32 %v1360_v14, 0.0  ;;  %v1534_v38 = vsel %vm1470_vm4, %v1452_v21, -inf  ;;  %v3586_v55 = vunpack.c.l.b16 %v4108_v33 }
 0x291   : > { %v1496_v24 = vrot.slane %v1495_v17, 1  ;;  %v1510_v25 = vrot.slane %v1509_v18, 4  ;;  %v1362_v27 = vpop.f32.mrf.mxu0  ;;  %v1520_v28 = vmax.f32 %v1518_v13, %v1519_v20  ;;  %v1506_v45 = vmax.f32 %v1504_v9, %v1505_v23 }
 0x292   : > { %v1453_v30 = vmax.f32 %v1371_v22, 0.0  ;;  %v1363_v31 = vadd.f32 %v5200_v5, %v1362_v27  ;;  %v1525_v46 = vsel %vm1470_vm4, %v1450_v29, -inf }
 0x293   : > { %v1497_v35 = vmax.f32 %v1495_v17, %v1496_v24  ;;  %v1511_v36 = vmax.f32 %v1509_v18, %v1510_v25  ;;  %v4380_v37 = vpop.f32.mrf.mxu0  ;;  %v1521_v41 = vrot.slane %v1520_v28, 2  ;;  %v4111_v63 = vpack.c.bf16 %v1506_v45, %v1506_v45 }
 0x294   : > { %v1535_v47 = vsel %vm1470_vm4, %v1453_v30, -inf  ;;  %v1451_v39 = vmax.f32 %v1363_v31, 0.0  ;;  %v1384_v40 = vadd.f32 %v4380_v37, %v5200_v5  ;;  %v3587_v17 = vunpack.c.l.b16 %v4109_v54 }
 0x295   : > { %v1512_v42 = vrot.slane %v1511_v36, 2  ;;  %v1536_v43 = vmax.f32 %v1534_v38, %v1535_v47  ;;  %v1375_v44 = vpop.f32.mrf.mxu0  ;;  %v4110_v50 = vpack.c.bf16 %v1497_v35, %v1497_v35  ;;  %v1522_v58 = vmax.f32 %v1520_v28, %v1521_v41 }
 0x296   : > { %v1526_v48 = vsel %vm1470_vm4, %v1451_v39, -inf  ;;  %v1376_v49 = vadd.f32 %v5200_v5, %v1375_v44  ;;  %v1456_v56 = vmax.f32 %v1384_v40, 0.0  ;;  %v3603_v27 = vsel %vm3602_vm5, %v3587_v17, %v3586_v55 }
 0x297   : > { %v1513_v51 = vmax.f32 %v1511_v36, %v1512_v42  ;;  %v1537_v52 = vrot.slane %v1536_v43, 4  ;;  %v1527_v53 = vmax.f32 %v1525_v46, %v1526_v48  ;;  %v4381_v7 = vpop.f32.mrf.mxu0  ;;  %v3588_v3 = vunpack.c.l.b16 %v4110_v50 }
 0x298   : > { %v1387_v57 = vadd.f32 %v4381_v7, %v5200_v5  ;;  %v1454_v0 = vmax.f32 %v1376_v49, 0.0  ;;  %v1552_v34 = vsel %vm1470_vm4, %v1456_v56, -inf  ;;  %v1523_v13 = vrot.slane %v1522_v58, 1 }
 0x299   : > { %v1514_v59 = vrot.slane %v1513_v51, 1  ;;  %v1538_v60 = vmax.f32 %v1536_v43, %v1537_v52  ;;  %v1528_v61 = vrot.slane %v1527_v53, 4  ;;  %v1378_v62 = vpop.f32.mrf.mxu0  ;;  %v3589_v28 = vunpack.c.l.b16 %v4111_v63 }
 0x29a   : > { %v1457_v1 = vmax.f32 %v1387_v57, 0.0  ;;  %v1379_v2 = vadd.f32 %v5200_v5, %v1378_v62  ;;  %v1543_v18 = vsel %vm1470_vm4, %v1454_v0, -inf  ;;  %v3605_v31 = vsel %vm3604_vm6, %v3588_v3, %v3603_v27 }
 0x29b   : > { %v1515_v4 = vmax.f32 %v1513_v51, %v1514_v59  ;;  %v1539_v6 = vrot.slane %v1538_v60, 2  ;;  %v1529_v8 = vmax.f32 %v1527_v53, %v1528_v61  ;;  %v4384_v9 = vpop.f32.mrf.mxu0  ;;  %v1524_v32 = vmax.f32 %v1522_v58, %v1523_v13 }
 0x29c   : > { %v1553_v10 = vsel %vm1470_vm4, %v1457_v1, -inf  ;;  %v1455_v11 = vmax.f32 %v1379_v2, 0.0  ;;  %v1400_v12 = vadd.f32 %v4384_v9, %v5200_v5  ;;  %v3607_v7 = vsel %vm3606_vm7, %v3589_v28, %v3605_v31 }
 0x29d   : > { %v1540_v26 = vmax.f32 %v1538_v60, %v1539_v6  ;;  %v1530_v14 = vrot.slane %v1529_v8, 2  ;;  %v1554_v15 = vmax.f32 %v1552_v34, %v1553_v10  ;;  %v1391_v16 = vpop.f32.mrf.mxu0  ;;  %v4112_v21 = vpack.c.bf16 %v1515_v4, %v1515_v4 }
 0x29e   : > { %v1544_v19 = vsel %vm1470_vm4, %v1455_v11, -inf  ;;  %v1392_v20 = vadd.f32 %v5200_v5, %v1391_v16  ;;  %v1460_v24 = vmax.f32 %v1400_v12, 0.0  ;;  %v4113_v50 = vpack.c.bf16 %v1524_v32, %v1524_v32 }
 0x29f   : > { %v1531_v22 = vmax.f32 %v1529_v8, %v1530_v14  ;;  %v1555_v23 = vrot.slane %v1554_v15, 4  ;;  %v4385_v25 = vpop.f32.mrf.mxu0  ;;  %v1545_v29 = vmax.f32 %v1543_v18, %v1544_v19  ;;  %v1541_v33 = vrot.slane %v1540_v26, 1 }
 0x2a0   : > { %v1403_v30 = vadd.f32 %v4385_v25, %v5200_v5  ;;  %v1458_v38 = vmax.f32 %v1392_v20, 0.0  ;;  %v3590_v40 = vunpack.c.l.b16 %v4112_v21  ;;  %v1570_v43 = vsel %vm1470_vm4, %v1460_v24, -inf }
 0x2a1   : > { %v1532_v35 = vrot.slane %v1531_v22, 1  ;;  %v1394_v36 = vpop.f32.mrf.mxu0  ;;  %v1546_v37 = vrot.slane %v1545_v29, 4  ;;  %v1556_v42 = vmax.f32 %v1554_v15, %v1555_v23  ;;  %v1542_v54 = vmax.f32 %v1540_v26, %v1541_v33 }
 0x2a2   : > { %v1461_v47 = vmax.f32 %v1403_v30, 0.0  ;;  %v1395_v39 = vadd.f32 %v5200_v5, %v1394_v36  ;;  %v1561_v55 = vsel %vm1470_vm4, %v1458_v38, -inf  ;;  %v3609_v1 = vsel %vm3608_vm8, %v3590_v40, %v3607_v7 }
 0x2a3   : > { %v1533_v41 = vmax.f32 %v1531_v22, %v1532_v35  ;;  %v4388_v44 = vpop.f32.mrf.mxu0  ;;  %v1547_v45 = vmax.f32 %v1545_v29, %v1546_v37  ;;  %v1557_v58 = vrot.slane %v1556_v42, 2  ;;  %v3591_v2 = vunpack.c.l.b16 %v4113_v50 }
 0x2a4   : > { %v1571_v46 = vsel %vm1470_vm4, %v1461_v47, -inf  ;;  %v1459_v48 = vmax.f32 %v1395_v39, 0.0  ;;  %v1416_v49 = vadd.f32 %v4388_v44, %v5200_v5  ;;  %v4115_v9 = vpack.c.bf16 %v1542_v54, %v1542_v54 }
 0x2a5   : > { %v4114_v51 = vpack.c.bf16 %v1533_v41, %v1533_v41  ;;  %v1572_v52 = vmax.f32 %v1570_v43, %v1571_v46  ;;  %v1407_v53 = vpop.f32.mrf.mxu0  ;;  %v1548_v59 = vrot.slane %v1547_v45, 2  ;;  %v1558_v12 = vmax.f32 %v1556_v42, %v1557_v58 }
 0x2a6   : > { %v1562_v56 = vsel %vm1470_vm4, %v1459_v48, -inf  ;;  %v1408_v57 = vadd.f32 %v5200_v5, %v1407_v53  ;;  %v1464_v63 = vmax.f32 %v1416_v49, 0.0  ;;  %v3611_v15 = vsel %vm3610_vm9, %v3591_v2, %v3609_v1 }
 0x2a7   : > { %v1573_v60 = vrot.slane %v1572_v52, 4  ;;  %v1563_v61 = vmax.f32 %v1561_v55, %v1562_v56  ;;  %v4389_v62 = vpop.f32.mrf.mxu0  ;;  %v3592_v3 = vunpack.c.l.b16 %v4114_v51  ;;  %v1549_v13 = vmax.f32 %v1547_v45, %v1548_v59 }
 0x2a8   : > { %v1419_v0 = vadd.f32 %v4389_v62, %v5200_v5  ;;  %v1462_v34 = vmax.f32 %v1408_v57, 0.0  ;;  %v1588_v17 = vsel %vm1470_vm4, %v1464_v63, -inf  ;;  %v3593_v25 = vunpack.c.l.b16 %v4115_v9  ;;  %v5293_v63 = vld [vmem:[%s5602_s11] ss:$0 sm:$0xff] }
 0x2a9   : > { %v1574_v4 = vmax.f32 %v1572_v52, %v1573_v60  ;;  %v1564_v6 = vrot.slane %v1563_v61, 4  ;;  %v1410_v8 = vpop.f32.mrf.mxu0  ;;  %v3613_v24 = vsel %vm3612_vm10, %v3592_v3, %v3611_v15  ;;  %v1559_v30 = vrot.slane %v1558_v12, 1 }
 0x2aa   : > { %v1465_v10 = vmax.f32 %v1419_v0, 0.0  ;;  %v1411_v11 = vadd.f32 %v5200_v5, %v1410_v8  ;;  %v1579_v27 = vsel %vm1470_vm4, %v1462_v34, -inf  ;;  %v1550_v36 = vrot.slane %v1549_v13, 1 }
 0x2ab   : > { %v1565_v26 = vmax.f32 %v1563_v61, %v1564_v6  ;;  %v4392_v14 = vpop.f32.mrf.mxu0  ;;  %v1575_v16 = vrot.slane %v1574_v4, 2  ;;  %v3615_v47 = vsel %vm3614_vm11, %v3593_v25, %v3613_v24  ;;  %v1560_v48 = vmax.f32 %v1558_v12, %v1559_v30 }
 0x2ac   : > { %v1589_v18 = vsel %vm1470_vm4, %v1465_v10, -inf  ;;  %v1463_v19 = vmax.f32 %v1411_v11, 0.0  ;;  %v1432_v22 = vadd.f32 %v4392_v14, %v5200_v5  ;;  %v1551_v52 = vmax.f32 %v1549_v13, %v1550_v36 }
 0x2ad   : > { %v1566_v20 = vrot.slane %v1565_v26, 2  ;;  %v1590_v21 = vmax.f32 %v1588_v17, %v1589_v18  ;;  %v1423_v23 = vpop.f32.mrf.mxu0  ;;  %v1576_v37 = vmax.f32 %v1574_v4, %v1575_v16  ;;  %v3623_v54 = vpack.c.b16 %v3615_v47, %v3615_v47 }
 0x2ae   : > { %v1580_v28 = vsel %vm1470_vm4, %v1463_v19, -inf  ;;  %v1424_v29 = vadd.f32 %v5200_v5, %v1423_v23  ;;  %v1468_v42 = vmax.f32 %v1432_v22, 0.0  ;;  %v4117_v0 = vpack.c.bf16 %v1560_v48, %v1560_v48 }
 0x2af   : > { %v1567_v31 = vmax.f32 %v1565_v26, %v1566_v20  ;;  %v1591_v32 = vrot.slane %v1590_v21, 4  ;;  %v1581_v33 = vmax.f32 %v1579_v27, %v1580_v28  ;;  %v4393_v35 = vpop.f32.mrf.mxu0  ;;  %v1577_v55 = vrot.slane %v1576_v37, 1  ;;  %3628 = vst.msk [vmem:[%s5284_s20] sm:$0xf] %vm3627_vm12, %v3623_v54 }
 0x2b0   : > { %v1435_v38 = vadd.f32 %v4393_v35, %v5200_v5  ;;  %v1466_v44 = vmax.f32 %v1424_v29, 0.0  ;;  %v4116_v4 = vpack.c.bf16 %v1551_v52, %v1551_v52  ;;  %v3595_v17 = vunpack.c.l.b16 %v4117_v0 }
 0x2b1   : > { %v1568_v39 = vrot.slane %v1567_v31, 1  ;;  %v1592_v40 = vmax.f32 %v1590_v21, %v1591_v32  ;;  %v1582_v41 = vrot.slane %v1581_v33, 4  ;;  %v1426_v43 = vpop.f32.mrf.mxu0  ;;  %v1578_v26 = vmax.f32 %v1576_v37, %v1577_v55 }
 0x2b2   : > { %v1469_v45 = vmax.f32 %v1435_v38, 0.0  ;;  %v1427_v46 = vadd.f32 %v5200_v5, %v1426_v43  ;;  %v1606_v5 = vsel %vm1470_vm4, %v1468_v42, -inf  ;;  %v1597_v60 = vsel %vm1470_vm4, %v1466_v44, -inf }
 0x2b3   : > { %v1593_v49 = vrot.slane %v1592_v40, 2  ;;  %v1583_v50 = vmax.f32 %v1581_v33, %v1582_v41  ;;  %v4466_v51 = vpop.f32.mrf.mxu0  ;;  %v1569_v56 = vmax.f32 %v1567_v31, %v1568_v39  ;;  %v3594_v22 = vunpack.c.l.b16 %v4116_v4 }
 0x2b4   : > { %v1607_v53 = vsel %vm1470_vm4, %v1469_v45, -inf  ;;  %v1467_v7 = vmax.f32 %v1427_v46, 0.0  ;;  %v2499_v12 = vadd.f32 %v4466_v51, %v5293_v63  ;;  %v4119_v32 = vpack.c.bf16 %v1578_v26, %v1578_v26 }
 0x2b5   : > { %v1584_v57 = vrot.slane %v1583_v50, 2  ;;  %v2490_v58 = vpop.f32.mrf.mxu0  ;;  %v1594_v59 = vmax.f32 %v1592_v40, %v1593_v49  ;;  %v1608_v61 = vmax.f32 %v1606_v5, %v1607_v53  ;;  %v4118_v34 = vpack.c.bf16 %v1569_v56, %v1569_v56 }
 0x2b6   : > { %v1598_v62 = vsel %vm1470_vm4, %v1467_v7, -inf  ;;  %v2491_v8 = vadd.f32 %v5293_v63, %v2490_v58  ;;  %v2747_v30 = vmax.f32 %v2499_v12, 0.0  ;;  %v3616_v39 = vsel %vm3602_vm5, %v3595_v17, %v3594_v22 }
 0x2b7   : > { %v1585_v1 = vmax.f32 %v1583_v50, %v1584_v57  ;;  %v1599_v2 = vmax.f32 %v1597_v60, %v1598_v62  ;;  %v4467_v3 = vpop.f32.mrf.mxu0  ;;  %v1609_v6 = vrot.slane %v1608_v61, 4  ;;  %v1595_v14 = vrot.slane %v1594_v59, 1 }
 0x2b8   : > { %v2502_v9 = vadd.f32 %v4467_v3, %v5293_v63  ;;  %v2745_v24 = vmax.f32 %v2491_v8, 0.0  ;;  %v3596_v27 = vunpack.c.l.b16 %v4118_v34  ;;  %v3597_v49 = vunpack.c.l.b16 %v4119_v32 }
 0x2b9   : > { %v1586_v10 = vrot.slane %v1585_v1, 1  ;;  %v1600_v11 = vrot.slane %v1599_v2, 4  ;;  %v2493_v13 = vpop.f32.mrf.mxu0  ;;  %v1610_v15 = vmax.f32 %v1608_v61, %v1609_v6  ;;  %v1596_v33 = vmax.f32 %v1594_v59, %v1595_v14 }
 0x2ba   : > { %v2494_v16 = vadd.f32 %v5293_v63, %v2493_v13  ;;  %v2748_v20 = vmax.f32 %v2502_v9, 0.0  ;;  %v3617_v43 = vsel %vm3604_vm6, %v3596_v27, %v3616_v39 }
 0x2bb   : > { %v1587_v18 = vmax.f32 %v1585_v1, %v1586_v10  ;;  %v1601_v19 = vmax.f32 %v1599_v2, %v1600_v11  ;;  %v4470_v21 = vpop.f32.mrf.mxu0  ;;  %v1611_v23 = vrot.slane %v1610_v15, 2  ;;  %v4121_v50 = vpack.c.bf16 %v1596_v33, %v1596_v33 }
 0x2bc   : > { %v2746_v25 = vmax.f32 %v2494_v16, 0.0  ;;  %v2810_v38 = vpack.c.bf16 %v2748_v20, %v2747_v30  ;;  %v2515_v46 = vadd.f32 %v4470_v21, %v5293_v63  ;;  %v3618_v5 = vsel %vm3606_vm7, %v3597_v49, %v3617_v43 }
 0x2bd   : > { %v4120_v28 = vpack.c.bf16 %v1587_v18, %v1587_v18  ;;  %v1602_v29 = vrot.slane %v1601_v19, 2  ;;  %v2506_v31 = vpop.f32.mrf.mxu0  ;;  %v1612_v35 = vmax.f32 %v1610_v15, %v1611_v23  ;;  %v3599_v62 = vunpack.c.l.b16 %v4121_v50 }
 0x2be   : > { %v2809_v36 = vpack.c.bf16 %v2746_v25, %v2745_v24  ;;  %v2507_v41 = vadd.f32 %v5293_v63, %v2506_v31  ;;  %v2751_v59 = vmax.f32 %v2515_v46, 0.0 }
 0x2bf   : > { %v1603_v37 = vmax.f32 %v1601_v19, %v1602_v29  ;;  %v4471_v47 = vpop.f32.mrf.mxu0  ;;  %v1613_v40 = vrot.slane %v1612_v35, 1  ;;  %v3598_v44 = vunpack.c.l.b16 %v4120_v28 }
 0x2c0   : > { %v2518_v42 = vadd.f32 %v4471_v47, %v5293_v63  ;;  %4532 = vmatprep.mubr.msk.bf16.mxu1 %vm1470_vm4, %v2809_v36  ;;  %v2749_v56 = vmax.f32 %v2507_v41, 0.0 }
 0x2c1   : > { %v1604_v45 = vrot.slane %v1603_v37, 1  ;;  %v2509_v48 = vpop.f32.mrf.mxu0  ;;  %4533 = vmatmul.mubr.msk.bf16.vlgmr.msra.gmra.mxu1 %vm1470_vm4, %v2810_v38  ;;  %v1614_v51 = vmax.f32 %v1612_v35, %v1613_v40  ;;  %v3619_v61 = vsel %vm3608_vm8, %v3598_v44, %v3618_v5 }
 0x2c2   : > { %v2510_v52 = vadd.f32 %v5293_v63, %v2509_v48  ;;  %v2752_v7 = vmax.f32 %v2518_v42, 0.0  ;;  %v3620_v9 = vsel %vm3610_vm9, %v3599_v62, %v3619_v61 }
 0x2c3   : > { %v1605_v53 = vmax.f32 %v1603_v37, %v1604_v45  ;;  %v4474_v54 = vpop.f32.mrf.mxu0  ;;  %v4123_v55 = vpack.c.bf16 %v1614_v51, %v1614_v51 }
 0x2c4   : > { %v2750_v57 = vmax.f32 %v2510_v52, 0.0  ;;  %v2812_v2 = vpack.c.bf16 %v2752_v7, %v2751_v59  ;;  %v2531_v34 = vadd.f32 %v4474_v54, %v5293_v63 }
 0x2c5   : > { %v4122_v58 = vpack.c.bf16 %v1605_v53, %v1605_v53  ;;  %v2522_v60 = vpop.f32.mrf.mxu0  ;;  %v3601_v4 = vunpack.c.l.b16 %v4123_v55 }
 0x2c6   : > { %v2811_v0 = vpack.c.bf16 %v2750_v57, %v2749_v56  ;;  %v2523_v6 = vadd.f32 %v5293_v63, %v2522_v60  ;;  %v2755_v18 = vmax.f32 %v2531_v34, 0.0 }
 0x2c7   : > { %v3600_v1 = vunpack.c.l.b16 %v4122_v58  ;;  %v4475_v3 = vpop.f32.mrf.mxu0 }
 0x2c8   : > { %v2534_v8 = vadd.f32 %v4475_v3, %v5293_v63  ;;  %4536 = vmatprep.mubr.msk.bf16.mxu1 %vm1470_vm4, %v2811_v0  ;;  %v2753_v16 = vmax.f32 %v2523_v6, 0.0 }
 0x2c9   : > { %v2525_v10 = vpop.f32.mrf.mxu0  ;;  %4537 = vmatmul.mubr.msk.bf16.gmra.mxu1 %vm1470_vm4, %v2812_v2  ;;  %v3621_v11 = vsel %vm3612_vm10, %v3600_v1, %v3620_v9 }
 0x2ca   : > { %v2526_v12 = vadd.f32 %v5293_v63, %v2525_v10  ;;  %v3622_v13 = vsel %vm3614_vm11, %v3601_v4, %v3621_v11  ;;  %v2756_v26 = vmax.f32 %v2534_v8, 0.0 }
 0x2cb   : > { %v4478_v14 = vpop.f32.mrf.mxu0  ;;  %v3624_v15 = vpack.c.b16 %v3622_v13, %v3622_v13 }
 0x2cc   : > { %v2754_v17 = vmax.f32 %v2526_v12, 0.0  ;;  %v2814_v21 = vpack.c.bf16 %v2756_v26, %v2755_v18  ;;  %v2547_v25 = vadd.f32 %v4478_v14, %v5293_v63 }
 0x2cd   : > { %v2538_v19 = vpop.f32.mrf.mxu0  ;;  %3629 = vst.msk [vmem:[%s5284_s20 + $0x4] sm:$0xf] %vm3627_vm12, %v3624_v15 }
 0x2ce   : > { %v2813_v20 = vpack.c.bf16 %v2754_v17, %v2753_v16  ;;  %v2539_v23 = vadd.f32 %v5293_v63, %v2538_v19  ;;  %v2759_v33 = vmax.f32 %v2547_v25, 0.0 }
 0x2cf   : > { %v4479_v22 = vpop.f32.mrf.mxu0 }
 0x2d0   : > { %v2550_v24 = vadd.f32 %v4479_v22, %v5293_v63  ;;  %4540 = vmatprep.mubr.msk.bf16.mxu1 %vm1470_vm4, %v2813_v20  ;;  %v2757_v31 = vmax.f32 %v2539_v23, 0.0 }
 0x2d1   : > { %v2541_v27 = vpop.f32.mrf.mxu0  ;;  %4541 = vmatmul.mubr.msk.bf16.gmra.mxu1 %vm1470_vm4, %v2814_v21 }
 0x2d2   : > { %v2542_v28 = vadd.f32 %v5293_v63, %v2541_v27  ;;  %v2760_v29 = vmax.f32 %v2550_v24, 0.0 }
 0x2d3   : > { %v4482_v30 = vpop.f32.mrf.mxu0 }
 0x2d4   : > { %v2758_v32 = vmax.f32 %v2542_v28, 0.0  ;;  %v2816_v37 = vpack.c.bf16 %v2760_v29, %v2759_v33  ;;  %v2563_v40 = vadd.f32 %v4482_v30, %v5293_v63 }
 0x2d5   : > { %v2554_v35 = vpop.f32.mrf.mxu0 }
 0x2d6   : > { %v2815_v36 = vpack.c.bf16 %v2758_v32, %v2757_v31  ;;  %v2555_v47 = vadd.f32 %v5293_v63, %v2554_v35  ;;  %v2763_v48 = vmax.f32 %v2563_v40, 0.0 }
 0x2d7   : > { %v4483_v38 = vpop.f32.mrf.mxu0 }
 0x2d8   : > { %v2566_v39 = vadd.f32 %v4483_v38, %v5293_v63  ;;  %4544 = vmatprep.mubr.msk.bf16.mxu1 %vm1470_vm4, %v2815_v36  ;;  %v2761_v45 = vmax.f32 %v2555_v47, 0.0 }
 0x2d9   : > { %v2557_v41 = vpop.f32.mrf.mxu0  ;;  %4545 = vmatmul.mubr.msk.bf16.gmra.mxu1 %vm1470_vm4, %v2816_v37 }
 0x2da   : > { %v2558_v42 = vadd.f32 %v5293_v63, %v2557_v41  ;;  %v2764_v43 = vmax.f32 %v2566_v39, 0.0 }
 0x2db   : > { %v4486_v44 = vpop.f32.mrf.mxu0 }
 0x2dc   : > { %v2762_v46 = vmax.f32 %v2558_v42, 0.0  ;;  %v2818_v51 = vpack.c.bf16 %v2764_v43, %v2763_v48  ;;  %v2579_v54 = vadd.f32 %v4486_v44, %v5293_v63 }
 0x2dd   : > { %v2570_v49 = vpop.f32.mrf.mxu0 }
 0x2de   : > { %v2817_v50 = vpack.c.bf16 %v2762_v46, %v2761_v45  ;;  %v2571_v53 = vadd.f32 %v5293_v63, %v2570_v49  ;;  %v2767_v60 = vmax.f32 %v2579_v54, 0.0 }
 0x2df   : > { %v4487_v52 = vpop.f32.mrf.mxu0 }
 0x2e0   : > { %v2582_v7 = vadd.f32 %v4487_v52, %v5293_v63  ;;  %4548 = vmatprep.mubr.msk.bf16.mxu1 %vm1470_vm4, %v2817_v50  ;;  %v2765_v58 = vmax.f32 %v2571_v53, 0.0 }
 0x2e1   : > { %v2573_v55 = vpop.f32.mrf.mxu0  ;;  %4549 = vmatmul.mubr.msk.bf16.gmra.mxu1 %vm1470_vm4, %v2818_v51 }
 0x2e2   : > { %v2574_v56 = vadd.f32 %v5293_v63, %v2573_v55  ;;  %v2768_v57 = vmax.f32 %v2582_v7, 0.0 }
 0x2e3   : > { %v4490_v5 = vpop.f32.mrf.mxu0 }
 0x2e4   : > { %v2766_v59 = vmax.f32 %v2574_v56, 0.0  ;;  %v2820_v0 = vpack.c.bf16 %v2768_v57, %v2767_v60  ;;  %v2595_v4 = vadd.f32 %v4490_v5, %v5293_v63 }
 0x2e5   : > { %v2586_v61 = vpop.f32.mrf.mxu0 }
 0x2e6   : > { %v2819_v62 = vpack.c.bf16 %v2766_v59, %v2765_v58  ;;  %v2587_v2 = vadd.f32 %v5293_v63, %v2586_v61  ;;  %v2771_v12 = vmax.f32 %v2595_v4, 0.0 }
 0x2e7   : > { %v4491_v1 = vpop.f32.mrf.mxu0 }
 0x2e8   : > { %v2598_v3 = vadd.f32 %v4491_v1, %v5293_v63  ;;  %4552 = vmatprep.mubr.msk.bf16.mxu1 %vm1470_vm4, %v2819_v62  ;;  %v2769_v10 = vmax.f32 %v2587_v2, 0.0 }
 0x2e9   : > { %v2589_v6 = vpop.f32.mrf.mxu0  ;;  %4553 = vmatmul.mubr.msk.bf16.gmra.mxu1 %vm1470_vm4, %v2820_v0 }
 0x2ea   : > { %v2590_v8 = vadd.f32 %v5293_v63, %v2589_v6  ;;  %v2772_v9 = vmax.f32 %v2598_v3, 0.0 }
 0x2eb   : > { %v4494_v34 = vpop.f32.mrf.mxu0 }
 0x2ec   : > { %v2770_v11 = vmax.f32 %v2590_v8, 0.0  ;;  %v2822_v14 = vpack.c.bf16 %v2772_v9, %v2771_v12  ;;  %v2611_v18 = vadd.f32 %v4494_v34, %v5293_v63 }
 0x2ed   : > { %v2602_v13 = vpop.f32.mrf.mxu0 }
 0x2ee   : > { %v2821_v26 = vpack.c.bf16 %v2770_v11, %v2769_v10  ;;  %v2603_v16 = vadd.f32 %v5293_v63, %v2602_v13  ;;  %v2775_v25 = vmax.f32 %v2611_v18, 0.0 }
 0x2ef   : > { %v4495_v15 = vpop.f32.mrf.mxu0 }
 0x2f0   : > { %v2614_v17 = vadd.f32 %v4495_v15, %v5293_v63  ;;  %4556 = vmatprep.mubr.msk.bf16.mxu1 %vm1470_vm4, %v2821_v26  ;;  %v2773_v23 = vmax.f32 %v2603_v16, 0.0 }
 0x2f1   : > { %v2605_v19 = vpop.f32.mrf.mxu0  ;;  %4557 = vmatmul.mubr.msk.bf16.gmra.mxu1 %vm1470_vm4, %v2822_v14 }
 0x2f2   : > { %v2606_v20 = vadd.f32 %v5293_v63, %v2605_v19  ;;  %v2776_v21 = vmax.f32 %v2614_v17, 0.0 }
 0x2f3   : > { %v4498_v22 = vpop.f32.mrf.mxu0 }
 0x2f4   : > { %v2774_v24 = vmax.f32 %v2606_v20, 0.0  ;;  %v2824_v29 = vpack.c.bf16 %v2776_v21, %v2775_v25  ;;  %v2627_v33 = vadd.f32 %v4498_v22, %v5293_v63 }
 0x2f5   : > { %v2618_v27 = vpop.f32.mrf.mxu0 }
 0x2f6   : > { %v2823_v28 = vpack.c.bf16 %v2774_v24, %v2773_v23  ;;  %v2619_v31 = vadd.f32 %v5293_v63, %v2618_v27  ;;  %v2779_v40 = vmax.f32 %v2627_v33, 0.0 }
 0x2f7   : > { %v4499_v30 = vpop.f32.mrf.mxu0 }
 0x2f8   : > { %v2630_v32 = vadd.f32 %v4499_v30, %v5293_v63  ;;  %4560 = vmatprep.mubr.msk.bf16.mxu1 %vm1470_vm4, %v2823_v28  ;;  %v2777_v47 = vmax.f32 %v2619_v31, 0.0 }
 0x2f9   : > { %v2621_v35 = vpop.f32.mrf.mxu0  ;;  %4561 = vmatmul.mubr.msk.bf16.gmra.mxu1 %vm1470_vm4, %v2824_v29 }
 0x2fa   : > { %v2622_v36 = vadd.f32 %v5293_v63, %v2621_v35  ;;  %v2780_v37 = vmax.f32 %v2630_v32, 0.0 }
 0x2fb   : > { %v4502_v38 = vpop.f32.mrf.mxu0 }
 0x2fc   : > { %v2778_v39 = vmax.f32 %v2622_v36, 0.0  ;;  %v2826_v43 = vpack.c.bf16 %v2780_v37, %v2779_v40  ;;  %v2643_v48 = vadd.f32 %v4502_v38, %v5293_v63 }
 0x2fd   : > { %v2634_v41 = vpop.f32.mrf.mxu0 }
 0x2fe   : > { %v2825_v42 = vpack.c.bf16 %v2778_v39, %v2777_v47  ;;  %v2635_v45 = vadd.f32 %v5293_v63, %v2634_v41  ;;  %v2783_v54 = vmax.f32 %v2643_v48, 0.0 }
 0x2ff   : > { %v4503_v44 = vpop.f32.mrf.mxu0 }
 0x300   : > { %v2646_v46 = vadd.f32 %v4503_v44, %v5293_v63  ;;  %4564 = vmatprep.mubr.msk.bf16.mxu1 %vm1470_vm4, %v2825_v42  ;;  %v2781_v53 = vmax.f32 %v2635_v45, 0.0 }
 0x301   : > { %v2637_v49 = vpop.f32.mrf.mxu0  ;;  %4565 = vmatmul.mubr.msk.bf16.gmra.mxu1 %vm1470_vm4, %v2826_v43 }
 0x302   : > { %v2638_v50 = vadd.f32 %v5293_v63, %v2637_v49  ;;  %v2784_v51 = vmax.f32 %v2646_v46, 0.0 }
 0x303   : > { %v4506_v52 = vpop.f32.mrf.mxu0 }
 0x304   : > { %v2782_v7 = vmax.f32 %v2638_v50, 0.0  ;;  %v2828_v57 = vpack.c.bf16 %v2784_v51, %v2783_v54  ;;  %v2659_v60 = vadd.f32 %v4506_v52, %v5293_v63 }
 0x305   : > { %v2650_v55 = vpop.f32.mrf.mxu0 }
 0x306   : > { %v2827_v56 = vpack.c.bf16 %v2782_v7, %v2781_v53  ;;  %v2651_v58 = vadd.f32 %v5293_v63, %v2650_v55  ;;  %v2787_v4 = vmax.f32 %v2659_v60, 0.0 }
 0x307   : > { %v4507_v5 = vpop.f32.mrf.mxu0 }
 0x308   : > { %v2662_v59 = vadd.f32 %v4507_v5, %v5293_v63  ;;  %4568 = vmatprep.mubr.msk.bf16.mxu1 %vm1470_vm4, %v2827_v56  ;;  %v2785_v2 = vmax.f32 %v2651_v58, 0.0 }
 0x309   : > { %v2653_v61 = vpop.f32.mrf.mxu0  ;;  %4569 = vmatmul.mubr.msk.bf16.gmra.mxu1 %vm1470_vm4, %v2828_v57 }
 0x30a   : > { %v2654_v62 = vadd.f32 %v5293_v63, %v2653_v61  ;;  %v2788_v0 = vmax.f32 %v2662_v59, 0.0 }
 0x30b   : > { %v4510_v1 = vpop.f32.mrf.mxu0 }
 0x30c   : > { %v2786_v3 = vmax.f32 %v2654_v62, 0.0  ;;  %v2830_v9 = vpack.c.bf16 %v2788_v0, %v2787_v4  ;;  %v2675_v12 = vadd.f32 %v4510_v1, %v5293_v63 }
 0x30d   : > { %v2666_v6 = vpop.f32.mrf.mxu0 }
 0x30e   : > { %v2829_v8 = vpack.c.bf16 %v2786_v3, %v2785_v2  ;;  %v2667_v10 = vadd.f32 %v5293_v63, %v2666_v6  ;;  %v2791_v18 = vmax.f32 %v2675_v12, 0.0 }
 0x30f   : > { %v4511_v34 = vpop.f32.mrf.mxu0 }
 0x310   : > { %v2678_v11 = vadd.f32 %v4511_v34, %v5293_v63  ;;  %4572 = vmatprep.mubr.msk.bf16.mxu1 %vm1470_vm4, %v2829_v8  ;;  %v2789_v16 = vmax.f32 %v2667_v10, 0.0 }
 0x311   : > { %v2669_v13 = vpop.f32.mrf.mxu0  ;;  %4573 = vmatmul.mubr.msk.bf16.gmra.mxu1 %vm1470_vm4, %v2830_v9 }
 0x312   : > { %v2670_v26 = vadd.f32 %v5293_v63, %v2669_v13  ;;  %v2792_v14 = vmax.f32 %v2678_v11, 0.0 }
 0x313   : > { %v4514_v15 = vpop.f32.mrf.mxu0 }
 0x314   : > { %v2790_v17 = vmax.f32 %v2670_v26, 0.0  ;;  %v2832_v21 = vpack.c.bf16 %v2792_v14, %v2791_v18  ;;  %v2691_v25 = vadd.f32 %v4514_v15, %v5293_v63 }
 0x315   : > { %v2682_v19 = vpop.f32.mrf.mxu0 }
 0x316   : > { %v2831_v20 = vpack.c.bf16 %v2790_v17, %v2789_v16  ;;  %v2683_v23 = vadd.f32 %v5293_v63, %v2682_v19  ;;  %v2795_v33 = vmax.f32 %v2691_v25, 0.0 }
 0x317   : > { %v4515_v22 = vpop.f32.mrf.mxu0 }
 0x318   : > { %v2694_v24 = vadd.f32 %v4515_v22, %v5293_v63  ;;  %4576 = vmatprep.mubr.msk.bf16.mxu1 %vm1470_vm4, %v2831_v20  ;;  %v2793_v31 = vmax.f32 %v2683_v23, 0.0 }
 0x319   : > { %v2685_v27 = vpop.f32.mrf.mxu0  ;;  %4577 = vmatmul.mubr.msk.bf16.gmra.mxu1 %vm1470_vm4, %v2832_v21 }
 0x31a   : > { %v2686_v28 = vadd.f32 %v5293_v63, %v2685_v27  ;;  %v2796_v29 = vmax.f32 %v2694_v24, 0.0  ;;  %v5405_v24 = vld [vmem:[%s5604_s13] ss:$0 sm:$0xff] }
 0x31b   : > { %v4518_v30 = vpop.f32.mrf.mxu0 }
 0x31c   : > { %v2794_v32 = vmax.f32 %v2686_v28, 0.0  ;;  %v2834_v37 = vpack.c.bf16 %v2796_v29, %v2795_v33  ;;  %v2707_v40 = vadd.f32 %v4518_v30, %v5293_v63 }
 0x31d   : > { %v2698_v35 = vpop.f32.mrf.mxu0 }
 0x31e   : > { %v2833_v36 = vpack.c.bf16 %v2794_v32, %v2793_v31  ;;  %v2699_v47 = vadd.f32 %v5293_v63, %v2698_v35  ;;  %v2799_v48 = vmax.f32 %v2707_v40, 0.0 }
 0x31f   : > { %v4519_v38 = vpop.f32.mrf.mxu0 }
 0x320   : > { %v2710_v39 = vadd.f32 %v4519_v38, %v5293_v63  ;;  %4580 = vmatprep.mubr.msk.bf16.mxu1 %vm1470_vm4, %v2833_v36  ;;  %v2797_v45 = vmax.f32 %v2699_v47, 0.0 }
 0x321   : > { %v2701_v41 = vpop.f32.mrf.mxu0  ;;  %4581 = vmatmul.mubr.msk.bf16.gmra.mxu1 %vm1470_vm4, %v2834_v37 }
 0x322   : > { %v2702_v42 = vadd.f32 %v5293_v63, %v2701_v41  ;;  %v2800_v43 = vmax.f32 %v2710_v39, 0.0 }
 0x323   : > { %v4522_v44 = vpop.f32.mrf.mxu0 }
 0x324   : > { %v2798_v46 = vmax.f32 %v2702_v42, 0.0  ;;  %v2836_v51 = vpack.c.bf16 %v2800_v43, %v2799_v48  ;;  %v2723_v54 = vadd.f32 %v4522_v44, %v5293_v63 }
 0x325   : > { %v2714_v49 = vpop.f32.mrf.mxu0 }
 0x326   : > { %v2835_v50 = vpack.c.bf16 %v2798_v46, %v2797_v45  ;;  %v2715_v53 = vadd.f32 %v5293_v63, %v2714_v49  ;;  %v2803_v60 = vmax.f32 %v2723_v54, 0.0 }
 0x327   : > { %v4523_v52 = vpop.f32.mrf.mxu0 }
 0x328   : > { %v2726_v7 = vadd.f32 %v4523_v52, %v5293_v63  ;;  %4584 = vmatprep.mubr.msk.bf16.mxu1 %vm1470_vm4, %v2835_v50  ;;  %v2801_v58 = vmax.f32 %v2715_v53, 0.0 }
 0x329   : > { %v2717_v55 = vpop.f32.mrf.mxu0  ;;  %4585 = vmatmul.mubr.msk.bf16.gmra.mxu1 %vm1470_vm4, %v2836_v51 }
 0x32a   : > { %v2718_v56 = vadd.f32 %v5293_v63, %v2717_v55  ;;  %v2804_v57 = vmax.f32 %v2726_v7, 0.0 }
 0x32b   : > { %v4526_v5 = vpop.f32.mrf.mxu0 }
 0x32c   : > { %v2802_v59 = vmax.f32 %v2718_v56, 0.0  ;;  %v2838_v0 = vpack.c.bf16 %v2804_v57, %v2803_v60  ;;  %v2739_v4 = vadd.f32 %v4526_v5, %v5293_v63 }
 0x32d   : > { %v2730_v61 = vpop.f32.mrf.mxu0 }
 0x32e   : > { %v2837_v62 = vpack.c.bf16 %v2802_v59, %v2801_v58  ;;  %v2731_v2 = vadd.f32 %v5293_v63, %v2730_v61  ;;  %v2807_v11 = vmax.f32 %v2739_v4, 0.0 }
 0x32f   : > { %v4527_v1 = vpop.f32.mrf.mxu0 }
 0x330   : > { %v2742_v3 = vadd.f32 %v4527_v1, %v5293_v63  ;;  %4588 = vmatprep.mubr.msk.bf16.mxu1 %vm1470_vm4, %v2837_v62  ;;  %v2805_v34 = vmax.f32 %v2731_v2, 0.0 }
 0x331   : > { %v2733_v6 = vpop.f32.mrf.mxu0  ;;  %4589 = vmatmul.mubr.msk.bf16.gmra.mxu1 %vm1470_vm4, %v2838_v0 }
 0x332   : > { %v2734_v8 = vadd.f32 %v5293_v63, %v2733_v6  ;;  %v2808_v9 = vmax.f32 %v2742_v3, 0.0 }
 0x334   : > { %v2806_v10 = vmax.f32 %v2734_v8, 0.0  ;;  %v2840_v13 = vpack.c.bf16 %v2808_v9, %v2807_v11 }
 0x336   : > { %v2839_v12 = vpack.c.bf16 %v2806_v10, %v2805_v34 }
 0x338   : > { %4592 = vmatprep.mubr.msk.bf16.mxu1 %vm1470_vm4, %v2839_v12 }
 0x339   : > { %4593 = vmatmul.mubr.msk.bf16.gmra.mxu1 %vm1470_vm4, %v2840_v13 }
 0x381   : > { %v4534_v26 = vpop.f32.mrf.mxu1 }
 0x382   : > { %v3003_v28 = vadd.f32 %v4534_v26, %v5405_v24 }
 0x383   : > { %v2994_v14 = vpop.f32.mrf.mxu1 }
 0x384   : > { %v2995_v30 = vadd.f32 %v5405_v24, %v2994_v14  ;;  %v3251_v36 = vmax.f32 %v3003_v28, 0.0 }
 0x385   : > { %v4535_v15 = vpop.f32.mrf.mxu1 }
 0x386   : > { %v3249_v47 = vmax.f32 %v2995_v30, 0.0  ;;  %v5416_v41 = vadd.f32 %v4535_v15, %v5405_v24  ;;  %v3317_v49 = vsel %vm3313_vm13, %v3251_v36, -inf }
 0x387   : > { %v2997_v16 = vpop.f32.mrf.mxu1 }
 0x388   : > { %v2998_v27 = vadd.f32 %v5405_v24, %v2997_v16  ;;  %v3314_v53 = vsel %vm3313_vm13, %v3249_v47, -inf  ;;  %v3252_v56 = vmax.f32 %v5416_v41, 0.0 }
 0x389   : > { %v4538_v17 = vpop.f32.mrf.mxu1 }
 0x38a   : > { %v3250_v32 = vmax.f32 %v2998_v27, 0.0  ;;  %v3019_v42 = vadd.f32 %v4538_v17, %v5405_v24 }
 0x38b   : > { %v3010_v18 = vpop.f32.mrf.mxu1 }
 0x38c   : > { %v3011_v37 = vadd.f32 %v5405_v24, %v3010_v18  ;;  %v3315_v44 = vsel %vm3313_vm13, %v3250_v32, -inf  ;;  %v3255_v5 = vmax.f32 %v3019_v42, 0.0 }
 0x38d   : > { %v4539_v19 = vpop.f32.mrf.mxu1  ;;  %v3316_v57 = vmax.f32 %v3314_v53, %v3315_v44 }
 0x38e   : > { %v3253_v50 = vmax.f32 %v3011_v37, 0.0  ;;  %v3022_v2 = vadd.f32 %v4539_v19, %v5405_v24  ;;  %v3330_v19 = vsel %vm3313_vm13, %v3255_v5, -inf }
 0x38f   : > { %v3013_v20 = vpop.f32.mrf.mxu1  ;;  %v3318_v47 = vmax.f32 %v3316_v57, %v3317_v49 }
 0x390   : > { %v3014_v33 = vadd.f32 %v5405_v24, %v3013_v20  ;;  %v3327_v1 = vsel %vm3313_vm13, %v3253_v50, -inf  ;;  %v3256_v20 = vmax.f32 %v3022_v2, 0.0 }
 0x391   : > { %v4542_v21 = vpop.f32.mrf.mxu1 }
 0x392   : > { %v3254_v45 = vmax.f32 %v3014_v33, 0.0  ;;  %v3035_v51 = vadd.f32 %v4542_v21, %v5405_v24 }
 0x393   : > { %v3026_v63 = vpop.f32.mrf.mxu1 }
 0x394   : > { %v3027_v39 = vadd.f32 %v5405_v24, %v3026_v63  ;;  %v3328_v60 = vsel %vm3313_vm13, %v3254_v45, -inf  ;;  %v3259_v3 = vmax.f32 %v3035_v51, 0.0 }
 0x395   : > { %v4543_v22 = vpop.f32.mrf.mxu1  ;;  %v3329_v11 = vmax.f32 %v3327_v1, %v3328_v60 }
 0x396   : > { %v3257_v7 = vmax.f32 %v3027_v39, 0.0  ;;  %v3038_v4 = vadd.f32 %v4543_v22, %v5405_v24  ;;  %v3343_v21 = vsel %vm3313_vm13, %v3259_v3, -inf  ;;  %v3332_v39 = vsel %vm3313_vm13, %v3256_v20, -inf }
 0x397   : > { %v3029_v23 = vpop.f32.mrf.mxu1 }
 0x398   : > { %v3030_v35 = vadd.f32 %v5405_v24, %v3029_v23  ;;  %v3340_v8 = vsel %vm3313_vm13, %v3257_v7, -inf  ;;  %v3260_v23 = vmax.f32 %v3038_v4, 0.0 }
 0x399   : > { %v4546_v25 = vpop.f32.mrf.mxu1 }
 0x39a   : > { %v3258_v46 = vmax.f32 %v3030_v35, 0.0  ;;  %v3051_v58 = vadd.f32 %v4546_v25, %v5405_v24 }
 0x39b   : > { %v3042_v29 = vpop.f32.mrf.mxu1 }
 0x39c   : > { %v3043_v48 = vadd.f32 %v5405_v24, %v3042_v29  ;;  %v3341_v61 = vsel %vm3313_vm13, %v3258_v46, -inf  ;;  %v3263_v13 = vmax.f32 %v3051_v58, 0.0  ;;  %v3331_v29 = vmax.f32 %v3329_v11, %v3330_v19 }
 0x39d   : > { %v4547_v31 = vpop.f32.mrf.mxu1  ;;  %v3342_v12 = vmax.f32 %v3340_v8, %v3341_v61 }
 0x39e   : > { %v3261_v62 = vmax.f32 %v3043_v48, 0.0  ;;  %v3054_v26 = vadd.f32 %v4547_v31, %v5405_v24  ;;  %v3356_v31 = vsel %vm3313_vm13, %v3263_v13, -inf  ;;  %v3319_v48 = vsel %vm3313_vm13, %v3252_v56, -inf }
 0x39f   : > { %v3045_v38 = vpop.f32.mrf.mxu1  ;;  %v3344_v30 = vmax.f32 %v3342_v12, %v3343_v21  ;;  %v3333_v50 = vmax.f32 %v3331_v29, %v3332_v39 }
 0x3a0   : > { %v3046_v40 = vadd.f32 %v5405_v24, %v3045_v38  ;;  %v3353_v15 = vsel %vm3313_vm13, %v3261_v62, -inf  ;;  %v3264_v35 = vmax.f32 %v3054_v26, 0.0 }
 0x3a1   : > { %v4550_v43 = vpop.f32.mrf.mxu1  ;;  %v3334_v62 = vrot.slane %v3333_v50, 4 }
 0x3a2   : > { %v3262_v54 = vmax.f32 %v3046_v40, 0.0  ;;  %v3067_v0 = vadd.f32 %v4550_v43, %v5405_v24  ;;  %v3345_v43 = vsel %vm3313_vm13, %v3260_v23, -inf  ;;  %v3358_v53 = vsel %vm3313_vm13, %v3264_v35, -inf }
 0x3a3   : > { %v3058_v52 = vpop.f32.mrf.mxu1  ;;  %v3346_v51 = vmax.f32 %v3344_v30, %v3345_v43 }
 0x3a4   : > { %v3059_v55 = vadd.f32 %v5405_v24, %v3058_v52  ;;  %v3354_v9 = vsel %vm3313_vm13, %v3262_v54, -inf  ;;  %v3267_v16 = vmax.f32 %v3067_v0, 0.0 }
 0x3a5   : > { %v4551_v59 = vpop.f32.mrf.mxu1  ;;  %v3355_v63 = vmax.f32 %v3353_v15, %v3354_v9  ;;  %v3347_v2 = vrot.slane %v3346_v51, 4 }
 0x3a6   : > { %v3265_v34 = vmax.f32 %v3059_v55, 0.0  ;;  %v3070_v17 = vadd.f32 %v4551_v59, %v5405_v24  ;;  %v3369_v36 = vsel %vm3313_vm13, %v3267_v16, -inf  ;;  %v3320_v55 = vmax.f32 %v3318_v47, %v3319_v48 }
 0x3a7   : > { %v3061_v6 = vpop.f32.mrf.mxu1  ;;  %v3357_v40 = vmax.f32 %v3355_v63, %v3356_v31 }
 0x3a8   : > { %v3062_v10 = vadd.f32 %v5405_v24, %v3061_v6  ;;  %v3366_v25 = vsel %vm3313_vm13, %v3265_v34, -inf  ;;  %v3268_v37 = vmax.f32 %v3070_v17, 0.0  ;;  %v3321_v6 = vrot.slane %v3320_v55, 4 }
 0x3a9   : > { %v4554_v14 = vpop.f32.mrf.mxu1  ;;  %v3359_v57 = vmax.f32 %v3357_v40, %v3358_v53  ;;  %v3348_v17 = vmax.f32 %v3346_v51, %v3347_v2 }
 0x3aa   : > { %v3266_v18 = vmax.f32 %v3062_v10, 0.0  ;;  %v3083_v38 = vadd.f32 %v4554_v14, %v5405_v24  ;;  %v3371_v49 = vsel %vm3313_vm13, %v3268_v37, -inf  ;;  %v3335_v14 = vmax.f32 %v3333_v50, %v3334_v62 }
 0x3ab   : > { %v3074_v22 = vpop.f32.mrf.mxu1  ;;  %v3360_v8 = vrot.slane %v3359_v57, 4  ;;  %v3322_v20 = vmax.f32 %v3320_v55, %v3321_v6  ;;  %v3349_v35 = vrot.slane %v3348_v17, 2 }
 0x3ac   : > { %v3367_v27 = vsel %vm3313_vm13, %v3266_v18, -inf  ;;  %v3075_v28 = vadd.f32 %v5405_v24, %v3074_v22  ;;  %v3271_v7 = vmax.f32 %v3083_v38, 0.0  ;;  %v3336_v30 = vrot.slane %v3335_v14, 2 }
 0x3ad   : > { %v3368_v32 = vmax.f32 %v3366_v25, %v3367_v27  ;;  %v4555_v33 = vpop.f32.mrf.mxu1  ;;  %v3361_v21 = vmax.f32 %v3359_v57, %v3360_v8  ;;  %v3323_v38 = vrot.slane %v3322_v20, 2 }
 0x3ae   : > { %v3269_v44 = vmax.f32 %v3075_v28, 0.0  ;;  %v3086_v45 = vadd.f32 %v4555_v33, %v5405_v24  ;;  %v3382_v3 = vsel %vm3313_vm13, %v3271_v7, -inf }
 0x3af   : > { %v3370_v41 = vmax.f32 %v3368_v32, %v3369_v36  ;;  %v3077_v42 = vpop.f32.mrf.mxu1  ;;  %v3362_v47 = vrot.slane %v3361_v21, 2  ;;  %v3324_v7 = vmax.f32 %v3322_v20, %v3323_v38 }
 0x3b0   : > { %v3078_v46 = vadd.f32 %v5405_v24, %v3077_v42  ;;  %v3379_v59 = vsel %vm3313_vm13, %v3269_v44, -inf  ;;  %v3272_v60 = vmax.f32 %v3086_v45, 0.0 }
 0x3b1   : > { %v4558_v52 = vpop.f32.mrf.mxu1  ;;  %v3372_v5 = vmax.f32 %v3370_v41, %v3371_v49 }
 0x3b2   : > { %v3270_v54 = vmax.f32 %v3078_v46, 0.0  ;;  %v3099_v4 = vadd.f32 %v4558_v52, %v5405_v24  ;;  %v3384_v11 = vsel %vm3313_vm13, %v3272_v60, -inf  ;;  %v3337_v46 = vmax.f32 %v3335_v14, %v3336_v30 }
 0x3b3   : > { %v3090_v58 = vpop.f32.mrf.mxu1  ;;  %v3373_v9 = vrot.slane %v3372_v5, 4  ;;  %v3350_v52 = vmax.f32 %v3348_v17, %v3349_v35 }
 0x3b4   : > { %v3380_v61 = vsel %vm3313_vm13, %v3270_v54, -inf  ;;  %v3091_v56 = vadd.f32 %v5405_v24, %v3090_v58  ;;  %v3275_v18 = vmax.f32 %v3099_v4, 0.0  ;;  %v3363_v54 = vmax.f32 %v3361_v21, %v3362_v47 }
 0x3b5   : > { %v3381_v0 = vmax.f32 %v3379_v59, %v3380_v61  ;;  %v4559_v1 = vpop.f32.mrf.mxu1  ;;  %v3374_v63 = vmax.f32 %v3372_v5, %v3373_v9  ;;  %v3338_v61 = vrot.slane %v3337_v46, 1  ;;  %v3351_v2 = vrot.slane %v3350_v52, 1 }
 0x3b6   : > { %v3273_v12 = vmax.f32 %v3091_v56, 0.0  ;;  %v3102_v13 = vadd.f32 %v4559_v1, %v5405_v24  ;;  %v3395_v36 = vsel %vm3313_vm13, %v3275_v18, -inf  ;;  %v3325_v4 = vrot.slane %v3324_v7, 1 }
 0x3b7   : > { %v3383_v34 = vmax.f32 %v3381_v0, %v3382_v3  ;;  %v3093_v10 = vpop.f32.mrf.mxu1  ;;  %v3375_v39 = vrot.slane %v3374_v63, 2  ;;  %v3364_v6 = vrot.slane %v3363_v54, 1 }
 0x3b8   : > { %v3094_v26 = vadd.f32 %v5405_v24, %v3093_v10  ;;  %v3392_v25 = vsel %vm3313_vm13, %v3273_v12, -inf  ;;  %v3276_v27 = vmax.f32 %v3102_v13, 0.0  ;;  %v3339_v12 = vmax.f32 %v3337_v46, %v3338_v61 }
 0x3b9   : > { %v3385_v15 = vmax.f32 %v3383_v34, %v3384_v11  ;;  %v4562_v16 = vpop.f32.mrf.mxu1  ;;  %v3376_v5 = vmax.f32 %v3374_v63, %v3375_v39  ;;  %v3326_v17 = vmax.f32 %v3324_v7, %v3325_v4  ;;  %v3365_v18 = vmax.f32 %v3363_v54, %v3364_v6 }
 0x3ba   : > { %v3274_v19 = vmax.f32 %v3094_v26, 0.0  ;;  %v3115_v37 = vadd.f32 %v4562_v16, %v5405_v24  ;;  %v3397_v42 = vsel %vm3313_vm13, %v3276_v27, -inf  ;;  %v3352_v16 = vmax.f32 %v3350_v52, %v3351_v2 }
 0x3bb   : > { %v3386_v22 = vrot.slane %v3385_v15, 4  ;;  %v3106_v23 = vpop.f32.mrf.mxu1  ;;  %v3377_v10 = vrot.slane %v3376_v5, 1  ;;  %v4124_v30 = vpack.c.bf16 %v3326_v17, %v3326_v17 }
 0x3bc   : > { %v3393_v28 = vsel %vm3313_vm13, %v3274_v19, -inf  ;;  %v3107_v29 = vadd.f32 %v5405_v24, %v3106_v23  ;;  %v3279_v53 = vmax.f32 %v3115_v37, 0.0 }
 0x3bd   : > { %v3387_v31 = vmax.f32 %v3385_v15, %v3386_v22  ;;  %v3394_v32 = vmax.f32 %v3392_v25, %v3393_v28  ;;  %v4563_v33 = vpop.f32.mrf.mxu1  ;;  %v3378_v63 = vmax.f32 %v3376_v5, %v3377_v10  ;;  %v4125_v22 = vpack.c.bf16 %v3339_v12, %v3339_v12 }
 0x3be   : > { %v3277_v43 = vmax.f32 %v3107_v29, 0.0  ;;  %v3118_v44 = vadd.f32 %v4563_v33, %v5405_v24  ;;  %v3408_v3 = vsel %vm3313_vm13, %v3279_v53, -inf  ;;  %v4126_v28 = vpack.c.bf16 %v3352_v16, %v3352_v16 }
 0x3bf   : > { %v3396_v40 = vmax.f32 %v3394_v32, %v3395_v36  ;;  %v3109_v41 = vpop.f32.mrf.mxu1  ;;  %v3388_v48 = vrot.slane %v3387_v31, 2  ;;  %v4128_v35 = vpack.c.bf16 %v3378_v63, %v3378_v63  ;;  %v3695_v36 = vunpack.c.l.b16 %v4125_v22 }
 0x3c0   : > { %v3110_v45 = vadd.f32 %v5405_v24, %v3109_v41  ;;  %v3405_v58 = vsel %vm3313_vm13, %v3277_v43, -inf  ;;  %v3280_v59 = vmax.f32 %v3118_v44, 0.0  ;;  %v3696_v39 = vunpack.c.l.b16 %v4126_v28 }
 0x3c1   : > { %v3398_v50 = vmax.f32 %v3396_v40, %v3397_v42  ;;  %v5470_v51 = vpop.f32.mrf.mxu1  ;;  %v3389_v56 = vmax.f32 %v3387_v31, %v3388_v48  ;;  %v4127_v31 = vpack.c.bf16 %v3365_v18, %v3365_v18  ;;  %v3694_v41 = vunpack.c.l.b16 %v4124_v30 }
 0x3c2   : > { %v3278_v49 = vmax.f32 %v3110_v45, 0.0  ;;  %v3410_v11 = vsel %vm3313_vm13, %v3280_v59, -inf  ;;  %v3698_v45 = vunpack.c.l.b16 %v4128_v35 }
 0x3c3   : > { %v3399_v55 = vrot.slane %v3398_v50, 4  ;;  %v5472_v57 = vpop.f32.mrf.mxu1  ;;  %v3390_v14 = vrot.slane %v3389_v56, 1  ;;  %v3697_v42 = vunpack.c.l.b16 %v4127_v31  ;;  %v3710_v52 = vsel %vm3602_vm5, %v3695_v36, %v3694_v41 }
 0x3c4   : > { %v3406_v60 = vsel %vm3313_vm13, %v3278_v49, -inf  ;;  %v3711_v49 = vsel %vm3604_vm6, %v3696_v39, %v3710_v52 }
 0x3c5   : > { %v3400_v62 = vmax.f32 %v3398_v50, %v3399_v55  ;;  %v3407_v0 = vmax.f32 %v3405_v58, %v3406_v60  ;;  %v5476_v1 = vpop.f32.mrf.mxu1  ;;  %v3391_v27 = vmax.f32 %v3389_v56, %v3390_v14  ;;  %v3712_v55 = vsel %vm3606_vm7, %v3697_v42, %v3711_v49 }
 0x3c6   : > { %v3713_v5 = vsel %vm3608_vm8, %v3698_v45, %v3712_v55 }
 0x3c7   : > { %v3401_v8 = vrot.slane %v3400_v62, 2  ;;  %v3409_v9 = vmax.f32 %v3407_v0, %v3408_v3  ;;  %v3125_v34 = vpop.f32.mrf.mxu1  ;;  %v4129_v47 = vpack.c.bf16 %v3391_v27, %v3391_v27  ;;  %v3123_v3 = vadd.f32 %v5405_v24, %v5472_v57 }
 0x3c8   : > { %v3126_v61 = vadd.f32 %v5405_v24, %v3125_v34  ;;  %v5504_v57 = vadd.f32 %v5476_v1, %v5405_v24 }
 0x3c9   : > { %v3411_v13 = vmax.f32 %v3409_v9, %v3410_v11  ;;  %v5480_v26 = vpop.f32.mrf.mxu1  ;;  %v3402_v15 = vmax.f32 %v3400_v62, %v3401_v8  ;;  %v3699_v50 = vunpack.c.l.b16 %v4129_v47  ;;  %v3131_v62 = vadd.f32 %v5470_v51, %v5405_v24 }
 0x3ca   : > { %v3282_v8 = vmax.f32 %v3126_v61, 0.0  ;;  %v3281_v12 = vmax.f32 %v3123_v3, 0.0 }
 0x3cb   : > { %v3412_v19 = vrot.slane %v3411_v13, 4  ;;  %v3138_v20 = vpop.f32.mrf.mxu1  ;;  %v3403_v21 = vrot.slane %v3402_v15, 1  ;;  %v3714_v60 = vsel %vm3610_vm9, %v3699_v50, %v3713_v5  ;;  %v3283_v34 = vmax.f32 %v3131_v62, 0.0 }
 0x3cc   : > { %v3139_v11 = vadd.f32 %v5405_v24, %v3138_v20  ;;  %v3419_v17 = vsel %vm3313_vm13, %v3282_v8, -inf  ;;  %v3418_v27 = vsel %vm3313_vm13, %v3281_v12, -inf }
 0x3cd   : > { %v3413_v23 = vmax.f32 %v3411_v13, %v3412_v19  ;;  %v5482_v25 = vpop.f32.mrf.mxu1  ;;  %v3404_v29 = vmax.f32 %v3402_v15, %v3403_v21  ;;  %v3147_v15 = vadd.f32 %v5480_v26, %v5405_v24  ;;  %v3421_v21 = vsel %vm3313_vm13, %v3283_v34, -inf }
 0x3ce   : > { %v3285_v63 = vmax.f32 %v3139_v11, 0.0  ;;  %v3284_v26 = vmax.f32 %v5504_v57, 0.0  ;;  %v3420_v30 = vmax.f32 %v3418_v27, %v3419_v17  ;;  %v3150_v39 = vadd.f32 %v5482_v25, %v5405_v24 }
 0x3cf   : > { %v3141_v32 = vpop.f32.mrf.mxu1  ;;  %v3414_v33 = vrot.slane %v3413_v23, 2  ;;  %v4130_v40 = vpack.c.bf16 %v3404_v29, %v3404_v29  ;;  %v3287_v31 = vmax.f32 %v3147_v15, 0.0 }
 0x3d0   : > { %v3142_v9 = vadd.f32 %v5405_v24, %v3141_v32  ;;  %v3431_v47 = vsel %vm3313_vm13, %v3285_v63, -inf  ;;  %v3422_v12 = vmax.f32 %v3420_v30, %v3421_v21 }
 0x3d1   : > { %v4574_v37 = vpop.f32.mrf.mxu1  ;;  %v3415_v38 = vmax.f32 %v3413_v23, %v3414_v33  ;;  %v3700_v53 = vunpack.c.l.b16 %v4130_v40  ;;  %v3434_v5 = vsel %vm3313_vm13, %v3287_v31, -inf }
 0x3d2   : > { %v3286_v18 = vmax.f32 %v3142_v9, 0.0  ;;  %v3163_v22 = vadd.f32 %v4574_v37, %v5405_v24 }
 0x3d3   : > { %v3154_v43 = vpop.f32.mrf.mxu1  ;;  %v3416_v44 = vrot.slane %v3415_v38, 1  ;;  %v3715_v56 = vsel %vm3612_vm10, %v3700_v53, %v3714_v60 }
 0x3d4   : > { %v3155_v13 = vadd.f32 %v5405_v24, %v3154_v43  ;;  %v3432_v35 = vsel %vm3313_vm13, %v3286_v18, -inf  ;;  %v3291_v40 = vmax.f32 %v3163_v22, 0.0 }
 0x3d5   : > { %v4575_v46 = vpop.f32.mrf.mxu1  ;;  %v3417_v48 = vmax.f32 %v3415_v38, %v3416_v44  ;;  %v3433_v50 = vmax.f32 %v3431_v47, %v3432_v35 }
 0x3d6   : > { %v3289_v1 = vmax.f32 %v3155_v13, 0.0  ;;  %v3166_v41 = vadd.f32 %v4575_v46, %v5405_v24 }
 0x3d7   : > { %v3157_v7 = vpop.f32.mrf.mxu1  ;;  %v4131_v54 = vpack.c.bf16 %v3417_v48, %v3417_v48  ;;  %v3435_v3 = vmax.f32 %v3433_v50, %v3434_v5 }
 0x3d8   : > { %v3158_v10 = vadd.f32 %v5405_v24, %v3157_v7  ;;  %v3444_v43 = vsel %vm3313_vm13, %v3289_v1, -inf }
 0x3d9   : > { %v4578_v58 = vpop.f32.mrf.mxu1  ;;  %v3701_v59 = vunpack.c.l.b16 %v4131_v54 }
 0x3da   : > { %v3290_v19 = vmax.f32 %v3158_v10, 0.0  ;;  %v3179_v32 = vadd.f32 %v4578_v58, %v5405_v24  ;;  %v3288_v58 = vmax.f32 %v3150_v39, 0.0 }
 0x3db   : > { %v3170_v0 = vpop.f32.mrf.mxu1  ;;  %v3716_v2 = vsel %vm3614_vm11, %v3701_v59, %v3715_v56  ;;  %v3447_v59 = vsel %vm3313_vm13, %v3291_v40, -inf  ;;  %v3292_v56 = vmax.f32 %v3166_v41, 0.0 }
 0x3dc   : > { %v3724_v4 = vpack.c.b16 %v3716_v2, %v3716_v2  ;;  %v3171_v20 = vadd.f32 %v5405_v24, %v3170_v0  ;;  %v3445_v36 = vsel %vm3313_vm13, %v3290_v19, -inf  ;;  %v3295_v53 = vmax.f32 %v3179_v32, 0.0 }
 0x3dd   : > { %v4579_v6 = vpop.f32.mrf.mxu1  ;;  %v3446_v52 = vmax.f32 %v3444_v43, %v3445_v36  ;;  %v3436_v13 = vsel %vm3313_vm13, %v3288_v58, -inf }
 0x3de   : > { %3726 = vrot.lane.b32.xlu0 %v3724_v4, %s4738_s26  ;;  %v3293_v38 = vmax.f32 %v3171_v20, 0.0  ;;  %v3182_v49 = vadd.f32 %v4579_v6, %v5405_v24  ;;  %v3460_v6 = vsel %vm3313_vm13, %v3295_v53, -inf  ;;  %v3423_v20 = vsel %vm3313_vm13, %v3284_v26, -inf }
 0x3df   : > { %v3173_v51 = vpop.f32.mrf.mxu1  ;;  %v3448_v4 = vmax.f32 %v3446_v52, %v3447_v59  ;;  %v3437_v63 = vmax.f32 %v3435_v3, %v3436_v13 }
 0x3e0   : > { %v3174_v14 = vadd.f32 %v5405_v24, %v3173_v51  ;;  %v3457_v54 = vsel %vm3313_vm13, %v3293_v38, -inf  ;;  %v3296_v10 = vmax.f32 %v3182_v49, 0.0 }
 0x3e1   : > { %v4582_v16 = vpop.f32.mrf.mxu1  ;;  %v3438_v38 = vrot.slane %v3437_v63, 4 }
 0x3e2   : > { %v3294_v28 = vmax.f32 %v3174_v14, 0.0  ;;  %v3195_v37 = vadd.f32 %v4582_v16, %v5405_v24  ;;  %v3449_v16 = vsel %vm3313_vm13, %v3292_v56, -inf  ;;  %v3462_v27 = vsel %vm3313_vm13, %v3296_v10, -inf }
 0x3e3   : > { %v3186_v23 = vpop.f32.mrf.mxu1  ;;  %v3450_v22 = vmax.f32 %v3448_v4, %v3449_v16 }
 0x3e4   : > { %v3187_v29 = vadd.f32 %v5405_v24, %v3186_v23  ;;  %v3458_v44 = vsel %vm3313_vm13, %v3294_v28, -inf  ;;  %v3299_v25 = vmax.f32 %v3195_v37, 0.0 }
 0x3e5   : > { %v4583_v33 = vpop.f32.mrf.mxu1  ;;  %v3459_v60 = vmax.f32 %v3457_v54, %v3458_v44  ;;  %v3451_v39 = vrot.slane %v3450_v22, 4 }
 0x3e6   : > { %v3297_v45 = vmax.f32 %v3187_v29, 0.0  ;;  %v3198_v55 = vadd.f32 %v4583_v33, %v5405_v24  ;;  %v3473_v34 = vsel %vm3313_vm13, %v3299_v25, -inf  ;;  %v3424_v29 = vmax.f32 %v3422_v12, %v3423_v20 }
 0x3e7   : > { %v3189_v42 = vpop.f32.mrf.mxu1  ;;  %v3461_v14 = vmax.f32 %v3459_v60, %v3460_v6 }
 0x3e8   : > { %v3190_v48 = vadd.f32 %v5405_v24, %v3189_v42  ;;  %v3470_v62 = vsel %vm3313_vm13, %v3297_v45, -inf  ;;  %v3300_v11 = vmax.f32 %v3198_v55, 0.0  ;;  %v3425_v42 = vrot.slane %v3424_v29, 4 }
 0x3e9   : > { %v4586_v7 = vpop.f32.mrf.mxu1  ;;  %v3463_v30 = vmax.f32 %v3461_v14, %v3462_v27  ;;  %v3452_v55 = vmax.f32 %v3450_v22, %v3451_v39 }
 0x3ea   : > { %v3298_v46 = vmax.f32 %v3190_v48, 0.0  ;;  %v3211_v51 = vadd.f32 %v4586_v7, %v5405_v24  ;;  %v3475_v21 = vsel %vm3313_vm13, %v3300_v11, -inf  ;;  %v3439_v7 = vmax.f32 %v3437_v63, %v3438_v38 }
 0x3eb   : > { %v3202_v61 = vpop.f32.mrf.mxu1  ;;  %v3464_v43 = vrot.slane %v3463_v30, 4  ;;  %v3426_v58 = vmax.f32 %v3424_v29, %v3425_v42  ;;  %v3453_v10 = vrot.slane %v3452_v55, 2 }
 0x3ec   : > { %v3471_v0 = vsel %vm3313_vm13, %v3298_v46, -inf  ;;  %v3203_v2 = vadd.f32 %v5405_v24, %v3202_v61  ;;  %v3303_v1 = vmax.f32 %v3211_v51, 0.0  ;;  %v3440_v4 = vrot.slane %v3439_v7, 2 }
 0x3ed   : > { %v3472_v8 = vmax.f32 %v3470_v62, %v3471_v0  ;;  %v4587_v9 = vpop.f32.mrf.mxu1  ;;  %v3465_v59 = vmax.f32 %v3463_v30, %v3464_v43  ;;  %v3427_v51 = vrot.slane %v3426_v58, 2  ;;  %v3454_v22 = vmax.f32 %v3452_v55, %v3453_v10 }
 0x3ee   : > { %v3301_v17 = vmax.f32 %v3203_v2, 0.0  ;;  %v3214_v18 = vadd.f32 %v4587_v9, %v5405_v24  ;;  %v3486_v40 = vsel %vm3313_vm13, %v3303_v1, -inf }
 0x3ef   : > { %v3474_v57 = vmax.f32 %v3472_v8, %v3473_v34  ;;  %v3205_v15 = vpop.f32.mrf.mxu1  ;;  %v3466_v12 = vrot.slane %v3465_v59, 2 }
 0x3f0   : > { %v3206_v19 = vadd.f32 %v5405_v24, %v3205_v15  ;;  %v3483_v33 = vsel %vm3313_vm13, %v3301_v17, -inf  ;;  %v3304_v35 = vmax.f32 %v3214_v18, 0.0 }
 0x3f1   : > { %v4590_v23 = vpop.f32.mrf.mxu1  ;;  %v3476_v31 = vmax.f32 %v3474_v57, %v3475_v21  ;;  %v3428_v21 = vmax.f32 %v3426_v58, %v3427_v51  ;;  %v3467_v1 = vmax.f32 %v3465_v59, %v3466_v12 }
 0x3f2   : > { %v3302_v28 = vmax.f32 %v3206_v19, 0.0  ;;  %v3227_v41 = vadd.f32 %v4590_v23, %v5405_v24  ;;  %v3488_v50 = vsel %vm3313_vm13, %v3304_v35, -inf  ;;  %v3441_v19 = vmax.f32 %v3439_v7, %v3440_v4 }
 0x3f3   : > { %v3218_v32 = vpop.f32.mrf.mxu1  ;;  %v3477_v44 = vrot.slane %v3476_v31, 4 }
 0x3f4   : > { %v3484_v36 = vsel %vm3313_vm13, %v3302_v28, -inf  ;;  %v3219_v26 = vadd.f32 %v5405_v24, %v3218_v32  ;;  %v3307_v46 = vmax.f32 %v3227_v41, 0.0 }
 0x3f5   : > { %v3485_v37 = vmax.f32 %v3483_v33, %v3484_v36  ;;  %v4591_v47 = vpop.f32.mrf.mxu1  ;;  %v3478_v60 = vmax.f32 %v3476_v31, %v3477_v44  ;;  %v3442_v33 = vrot.slane %v3441_v19, 1 }
 0x3f6   : > { %v3305_v52 = vmax.f32 %v3219_v26, 0.0  ;;  %v3230_v53 = vadd.f32 %v4591_v47, %v5405_v24  ;;  %v3499_v34 = vsel %vm3313_vm13, %v3307_v46, -inf  ;;  %v3468_v47 = vrot.slane %v3467_v1, 1 }
 0x3f7   : > { %v3487_v45 = vmax.f32 %v3485_v37, %v3486_v40  ;;  %v3221_v48 = vpop.f32.mrf.mxu1  ;;  %v3479_v13 = vrot.slane %v3478_v60, 2  ;;  %v3429_v37 = vrot.slane %v3428_v21, 1  ;;  %v3443_v43 = vmax.f32 %v3441_v19, %v3442_v33 }
 0x3f8   : > { %v3222_v49 = vadd.f32 %v5405_v24, %v3221_v48  ;;  %v3496_v62 = vsel %vm3313_vm13, %v3305_v52, -inf  ;;  %v3308_v0 = vmax.f32 %v3230_v53, 0.0  ;;  %v3469_v53 = vmax.f32 %v3467_v1, %v3468_v47 }
 0x3f9   : > { %v3489_v54 = vmax.f32 %v3487_v45, %v3488_v50  ;;  %v4594_v25 = vpop.f32.mrf.mxu1  ;;  %v3480_v29 = vmax.f32 %v3478_v60, %v3479_v13  ;;  %v3430_v52 = vmax.f32 %v3428_v21, %v3429_v37 }
 0x3fa   : > { %v3306_v5 = vmax.f32 %v3222_v49, 0.0  ;;  %v3243_v11 = vadd.f32 %v4594_v25, %v5405_v24  ;;  %v3501_v15 = vsel %vm3313_vm13, %v3308_v0, -inf  ;;  %v4133_v25 = vpack.c.bf16 %v3443_v43, %v3443_v43 }
 0x3fb   : > { %v3490_v61 = vrot.slane %v3489_v54, 4  ;;  %v3234_v56 = vpop.f32.mrf.mxu1  ;;  %v3481_v41 = vrot.slane %v3480_v29, 1  ;;  %v4132_v59 = vpack.c.bf16 %v3430_v52, %v3430_v52  ;;  %v4135_v60 = vpack.c.bf16 %v3469_v53, %v3469_v53 }
 0x3fc   : > { %v3497_v2 = vsel %vm3313_vm13, %v3306_v5, -inf  ;;  %v3235_v3 = vadd.f32 %v5405_v24, %v3234_v56  ;;  %v3311_v23 = vmax.f32 %v3243_v11, 0.0 }
 0x3fd   : > { %v3491_v6 = vmax.f32 %v3489_v54, %v3490_v61  ;;  %v3498_v8 = vmax.f32 %v3496_v62, %v3497_v2  ;;  %v4595_v9 = vpop.f32.mrf.mxu1  ;;  %v3482_v54 = vmax.f32 %v3480_v29, %v3481_v41  ;;  %v3703_v62 = vunpack.c.l.b16 %v4133_v25 }
 0x3fe   : > { %v3309_v16 = vmax.f32 %v3235_v3, 0.0  ;;  %v3246_v17 = vadd.f32 %v4595_v9, %v5405_v24  ;;  %v3512_v38 = vsel %vm3313_vm13, %v3311_v23, -inf }
 0x3ff   : > { %v3500_v14 = vmax.f32 %v3498_v8, %v3499_v34  ;;  %v3237_v57 = vpop.f32.mrf.mxu1  ;;  %v3492_v20 = vrot.slane %v3491_v6, 2  ;;  %v4136_v56 = vpack.c.bf16 %v3482_v54, %v3482_v54  ;;  %v3705_v8 = vunpack.c.l.b16 %v4135_v60 }
 0x400   : > { %v3238_v18 = vadd.f32 %v5405_v24, %v3237_v57  ;;  %v3509_v30 = vsel %vm3313_vm13, %v3309_v16, -inf  ;;  %v3312_v31 = vmax.f32 %v3246_v17, 0.0  ;;  %v3455_v24 = vrot.slane %v3454_v22, 1 }
 0x401   : > { %v3502_v63 = vmax.f32 %v3500_v14, %v3501_v15  ;;  %v3493_v35 = vmax.f32 %v3491_v6, %v3492_v20  ;;  %v3702_v6 = vunpack.c.l.b16 %v4132_v59  ;;  %v3706_v10 = vunpack.c.l.b16 %v4136_v56 }
 0x402   : > { %v3310_v27 = vmax.f32 %v3238_v18, 0.0  ;;  %v3514_v42 = vsel %vm3313_vm13, %v3312_v31, -inf  ;;  %v3456_v50 = vmax.f32 %v3454_v22, %v3455_v24  ;;  %v4739_v22 = vmov 0  }
 0x403   : > { %v3503_v28 = vrot.slane %v3502_v63, 4  ;;  %v3494_v44 = vrot.slane %v3493_v35, 1  ;;  %v3717_v51 = vsel %vm3602_vm5, %v3703_v62, %v3702_v6 }
 0x404   : > { %v3510_v32 = vsel %vm3313_vm13, %v3310_v27, -inf  ;;  %v4134_v5 = vpack.c.bf16 %v3456_v50, %v3456_v50 }
 0x405   : > { %v3504_v36 = vmax.f32 %v3502_v63, %v3503_v28  ;;  %v3511_v26 = vmax.f32 %v3509_v30, %v3510_v32  ;;  %v3495_v55 = vmax.f32 %v3493_v35, %v3494_v44 }
 0x406   : > { %v3704_v3 = vunpack.c.l.b16 %v4134_v5 }
 0x407   : > { %v3505_v39 = vrot.slane %v3504_v36, 2  ;;  %v3513_v40 = vmax.f32 %v3511_v26, %v3512_v38  ;;  %v4137_v2 = vpack.c.bf16 %v3495_v55, %v3495_v55 }
 0x408   : > { %v3718_v13 = vsel %vm3604_vm6, %v3704_v3, %v3717_v51 }
 0x409   : > { %v3506_v45 = vmax.f32 %v3504_v36, %v3505_v39  ;;  %v3515_v48 = vmax.f32 %v3513_v40, %v3514_v42  ;;  %v3707_v11 = vunpack.c.l.b16 %v4137_v2  ;;  %v3719_v57 = vsel %vm3606_vm7, %v3705_v8, %v3718_v13 }
 0x40a   : > { %v3720_v15 = vsel %vm3608_vm8, %v3706_v10, %v3719_v57 }
 0x40b   : > { %v3516_v49 = vrot.slane %v3515_v48, 4  ;;  %v3507_v7 = vrot.slane %v3506_v45, 1  ;;  %v3721_v17 = vsel %vm3610_vm9, %v3707_v11, %v3720_v15 }
 0x40d   : > { %v3517_v46 = vmax.f32 %v3515_v48, %v3516_v49  ;;  %v3508_v58 = vmax.f32 %v3506_v45, %v3507_v7 }
 0x40f   : > { %v3518_v61 = vrot.slane %v3517_v46, 2  ;;  %v4138_v4 = vpack.c.bf16 %v3508_v58, %v3508_v58 }
 0x411   : > { %v3519_v0 = vmax.f32 %v3517_v46, %v3518_v61  ;;  %v3708_v12 = vunpack.c.l.b16 %v4138_v4 }
 0x413   : > { %v3520_v9 = vrot.slane %v3519_v0, 1  ;;  %v3722_v18 = vsel %vm3612_vm10, %v3708_v12, %v3721_v17 }
 0x415   : > { %v3521_v34 = vmax.f32 %v3519_v0, %v3520_v9 }
 0x417   : > { %v4139_v14 = vpack.c.bf16 %v3521_v34, %v3521_v34 }
 0x419   : > { %v3709_v16 = vunpack.c.l.b16 %v4139_v14 }
 0x41b   : > { %v3723_v19 = vsel %vm3614_vm11, %v3709_v16, %v3722_v18 }
 0x41c   : > { %v3725_v20 = vpack.c.b16 %v3723_v19, %v3723_v19 }
 0x41e   : > { %3728 = vrot.lane.b32.xlu0 %v3725_v20, %s4738_s26 }
 0x450   : > { %v3727_v63 = vpop.permute.xlu0 %3726 }
 0x451   : > { %3733 = vst.msk [vmem:[%s5284_s20] sm:$0xf] %vm3732_vm14, %v3727_v63 }
 0x452   : > { %3736 = vst.msk [vmem:[%s5284_s20] sm:$0xf] %vm3735_vm15, %v4739_v22 }
 0x490   : > { %v3729_v23 = vpop.permute.xlu0 %3728 }
 0x491   : > { %3734 = vst.msk [vmem:[%s5284_s20 + $0x4] sm:$0xf] %vm3732_vm14, %v3729_v23 }
 0x492   : > { %3737 = vst.msk [vmem:[%s5284_s20 + $0x4] sm:$0xf] %vm3735_vm15, %v4739_v22 }
 0x493 PF: > { %s24_s17 = sadd.s32 1, %s4735_s17   ;;  %s5607_s29 = smov %s4727_s15 }
 0x494   : > { %p21_p8 = scmp.ge.s32.totalorder %s24_s17, 6   ;;  %s5608_s30 = smov %s4731_s16 }
 0x495   : > { %s5609_s15 = smov %s5612_s18  ;;  %s5610_s16 = smov %s5616_s19 }
 0x496   :  { %23 = sbr.rel (!%p21_p8) target bundleno = 3 (0x3), region = 109 }

// kernel: a_call__.3
= control target key start
LH: loop header
LB: loop body
LE: loop exit
PB: predicated region body
PF: predicated region fallthrough
CT: control target
= control target key end

     0   :  { %s4350_s0 = inlined_call_operand.vmem [shape: bf16[2,16,16,128], index: 0, kind: input, shape index: {}]   ;;  %s4351_s1 = inlined_call_operand.vmem [shape: bf16[2,16,32,128], index: 1, kind: input, shape index: {}]   ;;  %s4352_s2 = inlined_call_operand.vmem [shape: bf16[128,64], index: 2, kind: input, shape index: {}]   ;;  %s4353_s3 = inlined_call_operand.vmem [shape: f32[1,64], index: 3, kind: input, shape index: {}]   ;;  %s4354_s4 = inlined_call_operand.vmem [shape: bf16[64,64], index: 4, kind: input, shape index: {}]   ;;  %s4355_s5 = inlined_call_operand.vmem [shape: f32[1,64], index: 5, kind: input, shape index: {}]   ;;  %s4356_s6 = inlined_call_operand.vmem [shape: bf16[64,128], index: 6, kind: input, shape index: {}]   ;;  %s4357_s7 = inlined_call_operand.vmem [shape: f32[1,128], index: 7, kind: input, shape index: {}]   ;;  %s4358_s8 = inlined_call_operand.vmem [shape: bf16[128,64], index: 8, kind: input, shape index: {}]   ;;  %s4359_s9 = inlined_call_operand.vmem [shape: f32[1,64], index: 9, kind: input, shape index: {}]   ;;  %s4360_s10 = inlined_call_operand.vmem [shape: bf16[64,96], index: 10, kind: input, shape index: {}]   ;;  %s4361_s11 = inlined_call_operand.vmem [shape: f32[1,96], index: 11, kind: input, shape index: {}]   ;;  %s4362_s12 = inlined_call_operand.vmem [shape: bf16[96,128], index: 12, kind: input, shape index: {}]   ;;  %s4363_s13 = inlined_call_operand.vmem [shape: f32[1,128], index: 13, kind: input, shape index: {}]   ;;  %s4364_s14 = inlined_call_operand.vmem [shape: f32[2,16,3], index: 14, kind: input, shape index: {}]   ;;  %s4365_s15 = inlined_call_operand.vmem [shape: bf16[128,29], index: 15, kind: input, shape index: {}]   ;;  %s4366_s16 = inlined_call_operand.vmem [shape: bf16[128,29], index: 16, kind: input, shape index: {}]   ;;  %s4367_s17 = inlined_call_operand.vmem [shape: f32[1,29], index: 17, kind: input, shape index: {}]   ;;  %s4368_s18 = inlined_call_operand.hbm [shape: f32[2,16,32], index: 18, kind: output, shape index: {}]  }
   0x1   :  { %4384 = sst [smem:[#allocation17_spill]] %s4350_s0 }
   0x2   :  { %4385 = sst [smem:[#allocation18_spill]] %s4351_s1 }
   0x3   :  { %4386 = sst [smem:[#allocation19_spill]] %s4352_s2 }
   0x4   :  { %4387 = sst [smem:[#allocation20_spill]] %s4353_s3 }
   0x5   :  { %4388 = sst [smem:[#allocation21_spill]] %s4364_s14 }
   0x6   :  { %4389 = sst [smem:[#allocation22_spill]] %s4367_s17 }
   0x7   :  { %4390 = sst [smem:[#allocation23_spill]] %s4368_s18 }
   0x8   :  { %23 = vsyncpa [#allocation3], 0 }
   0x9   :  { %25 = vsyncpa [#allocation3 + $0x1], 0  ;;  %s3726_s27 = smov 0   ;;  %s3728_s28 = smov 0  }
   0xa   :  { %s3730_s29 = smov 0   ;;  %s3732_s30 = smov 0  }
   0xb   :  { %s3734_s0 = smov 0   ;;  %s3736_s19 = smov 0  }
   0xc   :  { %s3738_s1 = smov 0   ;;  %s3740_s20 = smov 0  }
   0xd LB: > { %4391 = sst [smem:[#allocation5_spill]] %s3597_s27  ;;  %s2859_s21 = sadd.s32 4294967295, %s3625_s20   ;;  %s3625_s20 = sphi %s3740_s20, %s31_s20   ;;  %s3621_s1 = sphi %s3738_s1, %s4424_s1   ;;  %s3617_s19 = sphi %s3736_s19, %s4423_s19   ;;  %s3613_s0 = sphi %s3734_s0, %s4422_s0   ;;  %s3609_s30 = sphi %s3732_s30, %s4421_s30   ;;  %s3605_s29 = sphi %s3730_s29, %s4420_s29   ;;  %s3601_s28 = sphi %s3728_s28, %s4419_s28   ;;  %s3597_s27 = sphi %s3726_s27, %s4418_s27  }
   0xe   : > { %4392 = sst [smem:[#allocation6_spill]] %s3601_s28  ;;  %s2860_s22 = sadd.s32 4294967294, %s3625_s20  }
   0xf   : > { %4393 = sst [smem:[#allocation7_spill]] %s3605_s29  ;;  %s40_s2 = sadd.s32 1, %s3617_s19 }
  0x10   : > { %4394 = sst [smem:[#allocation8_spill]] %s3613_s0  ;;  %p41_p0 = scmp.ge.s32.totalorder %s40_s2, 2 }
  0x11   : > { %4395 = sst [smem:[#allocation9_spill]] %s3617_s19  ;;  %s43_s23 = sadd.s32 1, %s3621_s1 }
  0x12   : > { %4396 = sst [smem:[#allocation10_spill]] %s3621_s1  ;;  %p461_p1 = scmp.ne.s32.totalorder %s3605_s29, %s3601_s28 }
  0x13   : > { %4397 = sst [smem:[#allocation11_spill]] %s3625_s20  ;;  %p462_p2 = scmp.eq.s32.totalorder %s2859_s21, 3 }
  0x14   : > { %s4426_s2 = smov (%p41_p0, %s40_s2), 0  ;;  %s4428_s23 = smov (!%p41_p0, %s43_s23), %s3621_s1 }
  0x15   : > { %4398 = sst [smem:[#allocation12_spill]] %s4426_s2  ;;  %s447_s24 = ssub.s32 %s3617_s19, %s4426_s2 }
  0x16   : > { %p3777_p3 = por %p462_p2, %p461_p1  ;;  %p45_p4 = scmp.ge.s32.totalorder %s4428_s23, 2 }
  0x17   : > { %p467_p5 = scmp.ne.s32.totalorder %s3601_s28, %s3597_s27  ;;  %p468_p6 = scmp.eq.s32.totalorder %s2860_s22, 3 }
  0x18   : > { %s4399_s25 = scalar_select %p3777_p3, 1, 0 }
  0x19   : > { %p2863_p7 = scmp.ge.s32.totalorder %s3625_s20, 1  ;;  %s4430_s23 = smov (%p45_p4, %s4428_s23), 0 }
  0x1a   : > { %4400 = sst [smem:[#allocation13_spill]] %s4399_s25  ;;  %p3786_p8 = por %p468_p6, %p467_p5 }
  0x1b   : > { %4401 = sst [smem:[#allocation14_spill]] %s4430_s23  ;;  %p570_p9 = scmp.lt.s32.totalorder %s3625_s20, 5 }
  0x1c   : > { %s4402_s26 = scalar_select %p3786_p8, 1, 0 }
  0x1d   : > { %s446_s21 = ssub.s32 %s3621_s1, %s4430_s23  ;;  %s451_s18 = sadd.s32 1, %s3605_s29 }
  0x1e   : > { %4403 = sst [smem:[#allocation15_spill]] %s4402_s26  ;;  %s448_s17 = sor.u32 %s447_s24, %s446_s21 }
  0x1f   : > { %p571_p10 = pnand %p2863_p7, %p570_p9  ;;  %p449_p11 = scmp.eq.s32.totalorder %s448_s17, 0 }
  0x20   : > { %s4405_s22 = sld [smem:[#allocation19_spill]] (!%p571_p10)  ;;  %s2865_s25 = sshll.u32 (!%p571_p10), %s3609_s30, 3 }
  0x21   : > { %s3795_s2 = scalar_select %p449_p11, %s3605_s29, %s451_s18  }
  0x22   : > { %574 = sbr.rel (%p571_p10) target bundleno = 1329 (0x531), region = 92  ;;  %p648_p12 = scmp.lt.s32.totalorder (!%p571_p10), %s3613_s0, 1 }
  0x23   : > { %4404 = sst [smem:[#allocation16_spill]] %s3795_s2  ;;  %p650_p13 = scmp.lt.s32.totalorder (!%p571_p10), %s2865_s25, 15 }
  0x24   : > { %s4406_s29 = sld [smem:[#allocation17_spill]] (!%p571_p10)  ;;  %p671_p0 = scmp.lt.s32.totalorder (!%p571_p10), %s3609_s30, 1 }
  0x25   : > { %s4408_s3 = sld [smem:[#allocation20_spill]] (!%p571_p10) }
  0x26   : > { %s4410_s14 = sld [smem:[#allocation8_spill]] (!%p571_p10) }
  0x27   : > { %v3459_v0 = vld [vmem:[%s4405_s22 + $0x38] sm:$0xff]   ;;  %v3460_v1 = vld [vmem:[%s4405_s22 + $0x30] sm:$0xff]   ;;  %s3806_s17 = scalar_select %p648_p12, %s3613_s0, 1  ;;  %v3461_v2 = vld [vmem:[%s4405_s22 + $0x28] sm:$0xff]   ;;  %vm973_vm0 = vcmask 523264   ;;  %vm3628_vm1 = vmmov 0  }
  0x28   : > { %3133 = vmatprep.subr.bf16.mxu0 %v3459_v0  ;;  %s4432_s25 = smov (!%p650_p13, %s2865_s25), 15  ;;  %v3462_v3 = vld [vmem:[%s4405_s22 + $0x20] sm:$0xff]   ;;  %v3475_v4 = vld [vmem:[%s4354_s4 + $0x18] sm:$0xff]   ;;  %v3464_v7 = vld [vmem:[%s4405_s22 + $0x10] sm:$0xff]   ;;  %vm2465_vm2 = vcmask 1041409   ;;  %vm2467_vm3 = vcmask 1042434  }
  0x29   : > { %3134 = vmatpush3.bf16.msra.mxu0 %v3459_v0  ;;  %s2867_s19 = sshll.u32 %s3806_s17, 5  ;;  %s2866_s24 = sshll.u32 %s4432_s25, 1  ;;  %3165 = vmatprep.subr.bf16.mxu1 %v3475_v4  ;;  %v3463_v6 = vld [vmem:[%s4405_s22 + $0x18] sm:$0xff]   ;;  %v3465_v8 = vld [vmem:[%s4405_s22 + $0x8] sm:$0xff]   ;;  %v3466_v9 = vld [vmem:[%s4405_s22] sm:$0xff]   ;;  %vm2110_vm4 = vcmask 785408  }
  0x2a   : > { %3135 = vmatprep.subr.bf16.mxu0 %v3460_v1  ;;  %s654_s21 = sadd.s32 %s2867_s19, %s2866_s24  ;;  %s2870_s18 = sshll.u32 %s4432_s25, 2  ;;  %3166 = vmatpush3.bf16.msra.mxu1 %v3475_v4  ;;  %v3476_v17 = vld [vmem:[%s4354_s4 + $0x10] sm:$0xff]   ;;  %v3477_v18 = vld [vmem:[%s4354_s4 + $0x8] sm:$0xff]   ;;  %v3478_v19 = vld [vmem:[%s4358_s8 + $0x38] sm:$0xff]   ;;  %vm2469_vm5 = vcmask 1043459   ;;  %vm2471_vm6 = vcmask 1044484  }
  0x2b   : > { %s2868_s23 = sshll.u32 %s654_s21, 2  ;;  %s2871_s27 = sshll.u32 %s3806_s17, 6  ;;  %3167 = vmatprep.subr.bf16.mxu1 %v3476_v17  ;;  %v3479_v20 = vld [vmem:[%s4354_s4] sm:$0xff]   ;;  %v3480_v21 = vld [vmem:[%s4358_s8 + $0x30] sm:$0xff]   ;;  %v3481_v22 = vld [vmem:[%s4358_s8 + $0x28] sm:$0xff]   ;;  %vm2473_vm7 = vcmask 1045509  }
  0x2c   : > { %s3818_s26 = scalar_lea.vmem %s4406_s29, %s2868_s23  ;;  %s665_s29 = sadd.s32 %s2871_s27, %s2870_s18  ;;  %v3482_v23 = vld [vmem:[%s4358_s8 + $0x20] sm:$0xff]   ;;  %v3483_v24 = vld [vmem:[%s4358_s8 + $0x18] sm:$0xff]   ;;  %v3484_v25 = vld [vmem:[%s4358_s8 + $0x10] sm:$0xff]   ;;  %vm2475_vm8 = vcmask 1046534   ;;  %vm2477_vm9 = vcmask 1047559   ;;  %vm2715_vm10 = vcmask 23552  }
  0x2d   : > { %3136 = vmatpush3.bf16.msra.mxu0 %v3460_v1  ;;  %v3467_v5 = vld [vmem:[%s3818_s26] sm:$0xff]   ;;  %s2872_s20 = sshll.u32 %s665_s29, 2  ;;  %s4407_s18 = sld [smem:[#allocation18_spill]]  ;;  %v3468_v10 = vld [vmem:[%s3818_s26 + $0x8] sm:$0xff]   ;;  %v3469_v11 = vld [vmem:[%s3818_s26 + $0x10] sm:$0xff]   ;;  %vm2721_vm11 = vcmask 261144  }
  0x2e   : > { %3137 = vmatprep.subr.bf16.mxu0 %v3461_v2  ;;  %3149 = vmatprep.mubr.bf16.mxu0 %v3467_v5  ;;  %v3470_v12 = vld [vmem:[%s3818_s26 + $0x18] sm:$0xff]   ;;  %v3471_v13 = vld [vmem:[%s3818_s26 + $0x20] sm:$0xff]   ;;  %v3472_v14 = vld [vmem:[%s3818_s26 + $0x28] sm:$0xff]   ;;  %s672_s2 = scalar_select %p671_p0, %s3609_s30, 1 }
  0x2f   : > { %v3473_v15 = vld [vmem:[%s3818_s26 + $0x30] sm:$0xff]   ;;  %v3474_v16 = vld [vmem:[%s3818_s26 + $0x38] sm:$0xff]   ;;  %3168 = vmatpush3.bf16.msra.mxu1 %v3476_v17  ;;  %v3485_v26 = vld [vmem:[%s4358_s8 + $0x8] sm:$0xff]   ;;  %s2873_s26 = sshll.u32 %s3806_s17, 1  ;;  %s4411_s19 = sld [smem:[#allocation21_spill]] }
  0x30   : > { %3169 = vmatprep.subr.bf16.mxu1 %v3477_v18  ;;  %v3486_v27 = vld [vmem:[%s4358_s8] sm:$0xff]   ;;  %v3503_v31 = vld [vmem:[%s4356_s6 + $0x18] sm:$0xff]   ;;  %v3504_v63 = vld [vmem:[%s4356_s6 + $0x10] sm:$0xff]   ;;  %s674_s23 = sadd.s32 %s2873_s26, %s672_s2  ;;  %s3629_s17 = smov 3  }
  0x31   : > { %3138 = vmatpush3.bf16.msra.mxu0 %v3461_v2  ;;  %v2875_v47 = vld [vmem:[%s4408_s3] ss:$0 sm:$0xff]  ;;  %s2874_s21 = sshll.u32 %s674_s23, 3  ;;  %s4412_s3 = sld [smem:[#allocation22_spill]] }
  0x32   : > { %3139 = vmatprep.subr.bf16.mxu0 %v3462_v3  ;;  %s3005_s2 = sshll.u32 %s4410_s14, 1  ;;  %s3630_s0 = smov [#allocation2]  }
  0x33   : > { %s3840_s27 = scalar_lea.vmem %s4407_s18, %s2872_s20  ;;  %3170 = vmatpush3.bf16.msra.mxu1 %v3477_v18  ;;  %s4409_s20 = sld [smem:[#allocation6_spill]] }
  0x34   : > { %3171 = vmatprep.subr.bf16.mxu1 %v3479_v20  ;;  %v3487_v28 = vld [vmem:[%s3840_s27] sm:$0xff]   ;;  %v3488_v29 = vld [vmem:[%s3840_s27 + $0x8] sm:$0xff]   ;;  %v3489_v30 = vld [vmem:[%s3840_s27 + $0x10] sm:$0xff]   ;;  %s2735_s26 = sadd.s32 %s3609_s30, %s3005_s2  ;;  %s4414_s18 = sld [smem:[#allocation23_spill]] }
  0x35   : > { %3140 = vmatpush3.bf16.msra.mxu0 %v3462_v3  ;;  %v3490_v32 = vld [vmem:[%s3840_s27 + $0x18] sm:$0xff]   ;;  %v3491_v33 = vld [vmem:[%s3840_s27 + $0x20] sm:$0xff]   ;;  %v3492_v34 = vld [vmem:[%s3840_s27 + $0x28] sm:$0xff]   ;;  %s676_s24 = scalar_lea.vmem %s4411_s19, %s2874_s21  ;;  %s3006_s23 = sshll.u32 %s2735_s26, 7 }
  0x36   : > { %3141 = vmatprep.subr.bf16.mxu0 %v3463_v6  ;;  %v3493_v35 = vld [vmem:[%s3840_s27 + $0x30] sm:$0xff]   ;;  %v3494_v36 = vld [vmem:[%s3840_s27 + $0x38] sm:$0xff]   ;;  %v3495_v37 = vld [vmem:[%s3840_s27 + $0x40] sm:$0xff]   ;;  %s3537_s14 = sshll.u32 %s3630_s0, 4  ;;  %s3538_s14 = int_to_ptr.vmem [resolvable:$false] %s3537_s14 }
  0x37   : > { %3172 = vmatpush3.bf16.msra.mxu1 %v3479_v20  ;;  %v3496_v38 = vld [vmem:[%s3840_s27 + $0x48] sm:$0xff]   ;;  %v3497_v39 = vld [vmem:[%s3840_s27 + $0x50] sm:$0xff]   ;;  %v3498_v40 = vld [vmem:[%s3840_s27 + $0x58] sm:$0xff]   ;;  %s3539_s30 = scalar_lea.vmem %s3538_s14, 256 }
  0x38   : > { %3189 = vmatprep.subr.bf16.mxu1 %v3503_v31  ;;  %v3499_v41 = vld [vmem:[%s3840_s27 + $0x60] sm:$0xff]   ;;  %v3500_v42 = vld [vmem:[%s3840_s27 + $0x68] sm:$0xff]   ;;  %v3501_v43 = vld [vmem:[%s3840_s27 + $0x70] sm:$0xff]  }
  0x39   : > { %3142 = vmatpush3.bf16.msra.mxu0 %v3463_v6  ;;  %v3502_v44 = vld [vmem:[%s3840_s27 + $0x78] sm:$0xff]   ;;  %s644_s25 = sand.u32 1, %s4409_s20  }
  0x3a   : > { %3143 = vmatprep.subr.bf16.mxu0 %v3464_v7  ;;  %s2864_s27 = sshll.u32 %s644_s25, 3  ;;  %s4304_s19 = scalar_lea.hbm %s4414_s18, %s3006_s23 }
  0x3b   : > { %s646_s29 = scalar_lea.vmem [#allocation2], %s2864_s27 }
  0x3c   : > { %s2739_s21 = sshll.u32 %s646_s29, 4  ;;  %s2740_s21 = int_to_ptr.vmem [resolvable:$true] %s2739_s21 }
  0x3d   : > { %3144 = vmatpush3.bf16.msra.mxu0 %v3464_v7  ;;  %v3505_v7 = vld [vmem:[%s4356_s6 + $0x8] sm:$0xff]   ;;  %p3540_p5 = scmp.lt.s32.totalorder %s2740_s21, %s3538_s14 }
  0x3e   : > { %3145 = vmatprep.subr.bf16.mxu0 %v3465_v8 }
  0x41   : > { %3146 = vmatpush3.bf16.msra.mxu0 %v3465_v8 }
  0x42   : > { %3147 = vmatprep.subr.bf16.mxu0 %v3466_v9 }
  0x45   : > { %3148 = vmatpush3.bf16.msra.mxu0 %v3466_v9 }
  0x46   : > { %3213 = vmatprep.subr.bf16.mxu0 %v3478_v19 }
  0x48   : > { %3150 = vmatmul.mubr.bf16.vlgmr.msra.gmra.mxu0 %v3468_v10 }
  0x49   : > { %3153 = vmatprep.mubr.bf16.mxu0 %v3469_v11  ;;  %3214 = vmatpush3.bf16.msra.mxu0 %v3478_v19 }
  0x4a   : > { %3215 = vmatprep.subr.bf16.mxu0 %v3480_v21 }
  0x4d   : > { %3216 = vmatpush3.bf16.msra.mxu0 %v3480_v21 }
  0x4e   : > { %3217 = vmatprep.subr.bf16.mxu0 %v3481_v22 }
  0x50   : > { %3154 = vmatmul.mubr.bf16.gmra.mxu0 %v3470_v12 }
  0x51   : > { %3157 = vmatprep.mubr.bf16.mxu0 %v3471_v13  ;;  %3218 = vmatpush3.bf16.msra.mxu0 %v3481_v22 }
  0x52   : > { %3219 = vmatprep.subr.bf16.mxu0 %v3482_v23 }
  0x55   : > { %3220 = vmatpush3.bf16.msra.mxu0 %v3482_v23 }
  0x56   : > { %3221 = vmatprep.subr.bf16.mxu0 %v3483_v24 }
  0x58   : > { %3158 = vmatmul.mubr.bf16.gmra.mxu0 %v3472_v14 }
  0x59   : > { %3161 = vmatprep.mubr.bf16.mxu0 %v3473_v15  ;;  %3222 = vmatpush3.bf16.msra.mxu0 %v3483_v24 }
  0x5a   : > { %3223 = vmatprep.subr.bf16.mxu0 %v3484_v25 }
  0x5d   : > { %3224 = vmatpush3.bf16.msra.mxu0 %v3484_v25 }
  0x5e   : > { %3225 = vmatprep.subr.bf16.mxu0 %v3485_v26 }
  0x60   : > { %3162 = vmatmul.mubr.bf16.gmra.mxu0 %v3474_v16 }
  0x61   : > { %3226 = vmatpush3.bf16.msra.mxu0 %v3485_v26  ;;  %3229 = vmatprep.mubr.bf16.mxu0 %v3487_v28 }
  0x62   : > { %3227 = vmatprep.subr.bf16.mxu0 %v3486_v27 }
  0x65   : > { %3228 = vmatpush3.bf16.msra.mxu0 %v3486_v27 }
  0x68   : > { %3230 = vmatmul.mubr.bf16.vlgmr.msra.gmra.mxu0 %v3488_v29 }
  0x69   : > { %3233 = vmatprep.mubr.bf16.mxu0 %v3489_v30 }
  0x70   : > { %3234 = vmatmul.mubr.bf16.gmra.mxu0 %v3490_v32 }
  0x71   : > { %3237 = vmatprep.mubr.bf16.mxu0 %v3491_v33 }
  0x78   : > { %3238 = vmatmul.mubr.bf16.gmra.mxu0 %v3492_v34 }
  0x79   : > { %3241 = vmatprep.mubr.bf16.mxu0 %v3493_v35 }
  0x80   : > { %3242 = vmatmul.mubr.bf16.gmra.mxu0 %v3494_v36 }
  0x81   : > { %3245 = vmatprep.mubr.bf16.mxu0 %v3495_v37 }
  0x88   : > { %3246 = vmatmul.mubr.bf16.gmra.mxu0 %v3496_v38 }
  0x89   : > { %3249 = vmatprep.mubr.bf16.mxu0 %v3497_v39 }
  0x90   : > { %3250 = vmatmul.mubr.bf16.gmra.mxu0 %v3498_v40  ;;  %v3506_v40 = vld [vmem:[%s4356_s6] sm:$0xff]  }
  0x91   : > { %3253 = vmatprep.mubr.bf16.mxu0 %v3499_v41  ;;  %v3507_v41 = vld [vmem:[%s4360_s10 + $0x18] sm:$0xff]  }
  0x98   : > { %3254 = vmatmul.mubr.bf16.gmra.mxu0 %v3500_v42 }
  0x99   : > { %3257 = vmatprep.mubr.bf16.mxu0 %v3501_v43 }
  0xa0   : > { %3258 = vmatmul.mubr.bf16.gmra.mxu0 %v3502_v44 }
 0x108   : > { %v3151_v45 = vpop.f32.mrf.mxu0 }
 0x109   : > { %v856_v51 = vadd.f32 %v3151_v45, %v2875_v47 }
 0x10a   : > { %v847_v46 = vpop.f32.mrf.mxu0 }
 0x10b   : > { %v848_v49 = vadd.f32 %v2875_v47, %v847_v46  ;;  %v912_v58 = vmax.f32 %v856_v51, 0.0 }
 0x10c   : > { %v3152_v48 = vpop.f32.mrf.mxu0 }
 0x10d   : > { %v859_v50 = vadd.f32 %v3152_v48, %v2875_v47  ;;  %v910_v56 = vmax.f32 %v848_v49, 0.0  ;;  %v3512_v48 = vld [vmem:[%s4362_s12 + $0x20] sm:$0xff]  }
 0x10e   : > { %v850_v52 = vpop.f32.mrf.mxu0 }
 0x10f   : > { %v851_v53 = vadd.f32 %v2875_v47, %v850_v52  ;;  %v913_v54 = vmax.f32 %v859_v50, 0.0 }
 0x110   : > { %v3155_v55 = vpop.f32.mrf.mxu0 }
 0x111   : > { %v911_v57 = vmax.f32 %v851_v53, 0.0  ;;  %v927_v61 = vpack.c.bf16 %v913_v54, %v912_v58  ;;  %v872_v2 = vadd.f32 %v3155_v55, %v2875_v47  ;;  %v3957_v58 = vld [vmem:[%s4355_s5] ss:$0 sm:$0xff] }
 0x112   : > { %v863_v59 = vpop.f32.mrf.mxu0 }
 0x113   : > { %v926_v60 = vpack.c.bf16 %v911_v57, %v910_v56  ;;  %v864_v0 = vadd.f32 %v2875_v47, %v863_v59  ;;  %v916_v10 = vmax.f32 %v872_v2, 0.0 }
 0x114   : > { %v3156_v62 = vpop.f32.mrf.mxu0 }
 0x115   : > { %v875_v1 = vadd.f32 %v3156_v62, %v2875_v47  ;;  %3173 = vmatprep.mubr.msk.bf16.mxu1 %vm973_vm0, %v926_v60  ;;  %v914_v8 = vmax.f32 %v864_v0, 0.0 }
 0x116   : > { %v866_v3 = vpop.f32.mrf.mxu0  ;;  %3174 = vmatmul.mubr.msk.bf16.vlgmr.msra.gmra.mxu1 %vm973_vm0, %v927_v61 }
 0x117   : > { %v867_v4 = vadd.f32 %v2875_v47, %v866_v3  ;;  %3190 = vmatpush3.bf16.msra.mxu1 %v3503_v31  ;;  %v917_v5 = vmax.f32 %v875_v1, 0.0 }
 0x118   : > { %v3159_v6 = vpop.f32.mrf.mxu0  ;;  %3191 = vmatprep.subr.bf16.mxu1 %v3504_v63 }
 0x119   : > { %v915_v9 = vmax.f32 %v867_v4, 0.0  ;;  %v929_v13 = vpack.c.bf16 %v917_v5, %v916_v10  ;;  %v888_v17 = vadd.f32 %v3159_v6, %v2875_v47 }
 0x11a   : > { %v879_v11 = vpop.f32.mrf.mxu0 }
 0x11b   : > { %v928_v12 = vpack.c.bf16 %v915_v9, %v914_v8  ;;  %3192 = vmatpush3.bf16.msra.mxu1 %v3504_v63  ;;  %v880_v15 = vadd.f32 %v2875_v47, %v879_v11  ;;  %v920_v24 = vmax.f32 %v888_v17, 0.0 }
 0x11c   : > { %v3160_v14 = vpop.f32.mrf.mxu0  ;;  %3193 = vmatprep.subr.bf16.mxu1 %v3505_v7 }
 0x11d   : > { %v891_v16 = vadd.f32 %v3160_v14, %v2875_v47  ;;  %3177 = vmatprep.mubr.msk.bf16.mxu1 %vm973_vm0, %v928_v12  ;;  %v918_v22 = vmax.f32 %v880_v15, 0.0  ;;  %v3508_v12 = vld [vmem:[%s4360_s10 + $0x10] sm:$0xff]  }
 0x11e   : > { %v882_v18 = vpop.f32.mrf.mxu0  ;;  %3178 = vmatmul.mubr.msk.bf16.gmra.mxu1 %vm973_vm0, %v929_v13 }
 0x11f   : > { %v883_v19 = vadd.f32 %v2875_v47, %v882_v18  ;;  %3194 = vmatpush3.bf16.msra.mxu1 %v3505_v7  ;;  %v921_v20 = vmax.f32 %v891_v16, 0.0 }
 0x120   : > { %v3163_v21 = vpop.f32.mrf.mxu0  ;;  %3195 = vmatprep.subr.bf16.mxu1 %v3506_v40 }
 0x121   : > { %v919_v23 = vmax.f32 %v883_v19, 0.0  ;;  %v931_v27 = vpack.c.bf16 %v921_v20, %v920_v24  ;;  %v904_v31 = vadd.f32 %v3163_v21, %v2875_v47  ;;  %v3509_v21 = vld [vmem:[%s4360_s10 + $0x8] sm:$0xff]  }
 0x122   : > { %v895_v25 = vpop.f32.mrf.mxu0 }
 0x123   : > { %v930_v26 = vpack.c.bf16 %v919_v23, %v918_v22  ;;  %v896_v29 = vadd.f32 %v2875_v47, %v895_v25  ;;  %v924_v37 = vmax.f32 %v904_v31, 0.0  ;;  %3196 = vmatpush3.bf16.msra.mxu1 %v3506_v40 }
 0x124   : > { %v3164_v28 = vpop.f32.mrf.mxu0  ;;  %3261 = vmatprep.subr.bf16.mxu1 %v3507_v41 }
 0x125   : > { %v907_v30 = vadd.f32 %v3164_v28, %v2875_v47  ;;  %3181 = vmatprep.mubr.msk.bf16.mxu1 %vm973_vm0, %v930_v26  ;;  %v922_v35 = vmax.f32 %v896_v29, 0.0 }
 0x126   : > { %v898_v32 = vpop.f32.mrf.mxu0  ;;  %3182 = vmatmul.mubr.msk.bf16.gmra.mxu1 %vm973_vm0, %v931_v27 }
 0x127   : > { %v899_v33 = vadd.f32 %v2875_v47, %v898_v32  ;;  %v925_v34 = vmax.f32 %v907_v30, 0.0  ;;  %v3511_v47 = vld [vmem:[%s4362_s12 + $0x28] sm:$0xff]   ;;  %v3510_v30 = vld [vmem:[%s4360_s10] sm:$0xff]  }
 0x128   : > { %v3924_v42 = vpop.f32.mrf.mxu0  ;;  %3301 = vmatprep.subr.bf16.mxu0 %v3511_v47 }
 0x129   : > { %v923_v36 = vmax.f32 %v899_v33, 0.0  ;;  %v933_v39 = vpack.c.bf16 %v925_v34, %v924_v37  ;;  %3302 = vmatpush3.bf16.msra.mxu0 %v3511_v47 }
 0x12a   : > { %v3926_v43 = vpop.f32.mrf.mxu0  ;;  %3303 = vmatprep.subr.bf16.mxu0 %v3512_v48 }
 0x12b   : > { %v932_v38 = vpack.c.bf16 %v923_v36, %v922_v35 }
 0x12c   : > { %v3928_v44 = vpop.f32.mrf.mxu0 }
 0x12d   : > { %3185 = vmatprep.mubr.msk.bf16.mxu1 %vm973_vm0, %v932_v38  ;;  %3304 = vmatpush3.bf16.msra.mxu0 %v3512_v48 }
 0x12e   : > { %3186 = vmatmul.mubr.msk.bf16.gmra.mxu1 %vm973_vm0, %v933_v39  ;;  %v3930_v45 = vpop.f32.mrf.mxu0  ;;  %v3997_v39 = vld [vmem:[%s4359_s9] ss:$0 sm:$0xff] }
 0x130   : > { %v3932_v46 = vpop.f32.mrf.mxu0 }
 0x132   : > { %v3940_v49 = vpop.f32.mrf.mxu0 }
 0x134   : > { %v3942_v50 = vpop.f32.mrf.mxu0 }
 0x136   : > { %v3944_v51 = vpop.f32.mrf.mxu0 }
 0x138   : > { %v3946_v52 = vpop.f32.mrf.mxu0 }
 0x13a   : > { %v3948_v53 = vpop.f32.mrf.mxu0 }
 0x13c   : > { %v3950_v54 = vpop.f32.mrf.mxu0 }
 0x13e   : > { %v3952_v56 = vpop.f32.mrf.mxu0 }
 0x140   : > { %v3959_v60 = vpop.f32.mrf.mxu0 }
 0x142   : > { %v3965_v4 = vpop.f32.mrf.mxu0 }
 0x144   : > { %v3970_v13 = vpop.f32.mrf.mxu0 }
 0x146   : > { %v3981_v22 = vpop.f32.mrf.mxu0 }
 0x148   : > { %v3986_v31 = vpop.f32.mrf.mxu0 }
 0x14a   : > { %v3999_v40 = vpop.f32.mrf.mxu0 }
 0x1d6   : > { %v3175_v55 = vpop.f32.mrf.mxu1 }
 0x1d7   : > { %v1041_v63 = vadd.f32 %v3175_v55, %v3957_v58 }
 0x1d8   : > { %v1032_v57 = vpop.f32.mrf.mxu1 }
 0x1d9   : > { %v1033_v61 = vadd.f32 %v3957_v58, %v1032_v57  ;;  %v1097_v7 = vmax.f32 %v1041_v63, 0.0 }
 0x1da   : > { %v3176_v59 = vpop.f32.mrf.mxu1 }
 0x1db   : > { %v1044_v62 = vadd.f32 %v3176_v59, %v3957_v58  ;;  %v1095_v5 = vmax.f32 %v1033_v61, 0.0  ;;  %v1585_v59 = vadd.f32 %v3997_v39, %v3926_v43  ;;  %v1588_v61 = vadd.f32 %v3997_v39, %v3930_v45 }
 0x1dc   : > { %v1035_v0 = vpop.f32.mrf.mxu1 }
 0x1dd   : > { %v1036_v1 = vadd.f32 %v3957_v58, %v1035_v0  ;;  %v1098_v2 = vmax.f32 %v1044_v62, 0.0  ;;  %v4005_v0 = vpop.f32.mrf.mxu0  ;;  %v1711_v43 = vmax.f32 %v1585_v59, 0.0  ;;  %v1712_v45 = vmax.f32 %v1588_v61, 0.0 }
 0x1de   : > { %v3179_v3 = vpop.f32.mrf.mxu1  ;;  %v1644_v59 = vadd.f32 %v3970_v13, %v3997_v39  ;;  %v1660_v13 = vadd.f32 %v4005_v0, %v3997_v39 }
 0x1df   : > { %v1096_v6 = vmax.f32 %v1036_v1, 0.0  ;;  %v1112_v10 = vpack.c.bf16 %v1098_v2, %v1097_v7  ;;  %v1057_v16 = vadd.f32 %v3179_v3, %v3957_v58 }
 0x1e0   : > { %v1048_v8 = vpop.f32.mrf.mxu1 }
 0x1e1   : > { %v1111_v9 = vpack.c.bf16 %v1096_v6, %v1095_v5  ;;  %v1049_v14 = vadd.f32 %v3957_v58, %v1048_v8  ;;  %v1101_v25 = vmax.f32 %v1057_v16, 0.0  ;;  %v1651_v8 = vpop.f32.mrf.mxu0  ;;  %v1604_v16 = vadd.f32 %v3997_v39, %v3944_v51 }
 0x1e2   : > { %v3180_v11 = vpop.f32.mrf.mxu1 }
 0x1e3   : > { %v1060_v15 = vadd.f32 %v3180_v11, %v3957_v58  ;;  %3197 = vmatprep.mubr.msk.bf16.mxu1 %vm973_vm0, %v1111_v9  ;;  %v1099_v23 = vmax.f32 %v1049_v14, 0.0  ;;  %v1743_v14 = vpack.c.bf16 %v1712_v45, %v1711_v43 }
 0x1e4   : > { %v1051_v17 = vpop.f32.mrf.mxu1  ;;  %3198 = vmatmul.mubr.msk.bf16.vlgmr.msra.gmra.mxu1 %vm973_vm0, %v1112_v10 }
 0x1e5   : > { %v1052_v18 = vadd.f32 %v3957_v58, %v1051_v17  ;;  %3262 = vmatpush3.bf16.msra.mxu1 %v3507_v41  ;;  %v1102_v19 = vmax.f32 %v1060_v15, 0.0  ;;  %v1601_v15 = vadd.f32 %v3997_v39, %v3940_v49  ;;  %v1593_v17 = vadd.f32 %v3924_v42, %v3997_v39 }
 0x1e6   : > { %v3183_v20 = vpop.f32.mrf.mxu1  ;;  %3263 = vmatprep.subr.bf16.mxu1 %v3508_v12  ;;  %v1716_v49 = vmax.f32 %v1604_v16, 0.0  ;;  %v1617_v42 = vadd.f32 %v3997_v39, %v3948_v53 }
 0x1e7   : > { %v1100_v24 = vmax.f32 %v1052_v18, 0.0  ;;  %v1114_v28 = vpack.c.bf16 %v1102_v19, %v1101_v25  ;;  %v1073_v34 = vadd.f32 %v3183_v20, %v3957_v58  ;;  %v4021_v19 = vpop.f32.mrf.mxu0  ;;  %v1715_v20 = vmax.f32 %v1601_v15, 0.0 }
 0x1e8   : > { %v1064_v26 = vpop.f32.mrf.mxu1 }
 0x1e9   : > { %v1113_v27 = vpack.c.bf16 %v1100_v24, %v1099_v23  ;;  %3264 = vmatpush3.bf16.msra.mxu1 %v3508_v12  ;;  %v1065_v32 = vadd.f32 %v3957_v58, %v1064_v26  ;;  %v1105_v48 = vmax.f32 %v1073_v34, 0.0  ;;  %v1664_v51 = vpop.f32.mrf.mxu0  ;;  %v1745_v24 = vpack.c.bf16 %v1716_v49, %v1715_v20 }
 0x1ea   : > { %v3184_v29 = vpop.f32.mrf.mxu1  ;;  %3265 = vmatprep.subr.bf16.mxu1 %v3509_v21  ;;  %v1609_v26 = vadd.f32 %v3932_v46, %v3997_v39  ;;  %v1636_v46 = vadd.f32 %v3997_v39, %v3981_v22  ;;  %v1649_v22 = vadd.f32 %v3997_v39, %v3999_v40 }
 0x1eb   : > { %v1076_v33 = vadd.f32 %v3184_v29, %v3957_v58  ;;  %3201 = vmatprep.mubr.msk.bf16.mxu1 %vm973_vm0, %v1113_v27  ;;  %v1103_v41 = vmax.f32 %v1065_v32, 0.0  ;;  %v1612_v27 = vadd.f32 %v3942_v50, %v3997_v39  ;;  %v1719_v29 = vmax.f32 %v1617_v42, 0.0 }
 0x1ec   : > { %v1067_v35 = vpop.f32.mrf.mxu1  ;;  %3202 = vmatmul.mubr.msk.bf16.gmra.mxu1 %vm973_vm0, %v1114_v28  ;;  %v3252_v28 = vpop.f32.mrf.mxu0  ;;  %v1717_v32 = vmax.f32 %v1609_v26, 0.0  ;;  %v1625_v50 = vadd.f32 %v3946_v52, %v3997_v39 }
 0x1ed   : > { %v1068_v36 = vadd.f32 %v3957_v58, %v1067_v35  ;;  %3266 = vmatpush3.bf16.msra.mxu1 %v3509_v21  ;;  %v1106_v37 = vmax.f32 %v1076_v33, 0.0  ;;  %v1713_v21 = vmax.f32 %v1593_v17, 0.0  ;;  %v1718_v33 = vmax.f32 %v1612_v27, 0.0 }
 0x1ee   : > { %v3187_v38 = vpop.f32.mrf.mxu1  ;;  %3267 = vmatprep.subr.bf16.mxu1 %v3510_v30  ;;  %v1667_v53 = vpop.f32.mrf.mxu0  ;;  %v1676_v0 = vadd.f32 %v3252_v28, %v3997_v39 }
 0x1ef   : > { %v1104_v47 = vmax.f32 %v1068_v36, 0.0  ;;  %v1116_v62 = vpack.c.bf16 %v1106_v37, %v1105_v48  ;;  %v1089_v3 = vadd.f32 %v3187_v38, %v3957_v58  ;;  %v1746_v35 = vpack.c.bf16 %v1718_v33, %v1717_v32 }
 0x1f0   : > { %v1080_v55 = vpop.f32.mrf.mxu1  ;;  %v1628_v36 = vadd.f32 %v3950_v54, %v3997_v39  ;;  %v3255_v37 = vpop.f32.mrf.mxu0  ;;  %v1641_v54 = vadd.f32 %v3959_v60, %v3997_v39  ;;  %v1668_v43 = vadd.f32 %v3997_v39, %v1667_v53  ;;  %v1657_v60 = vadd.f32 %v3986_v31, %v3997_v39 }
 0x1f1   : > { %v1115_v57 = vpack.c.bf16 %v1104_v47, %v1103_v41  ;;  %3268 = vmatpush3.bf16.msra.mxu1 %v3510_v30  ;;  %v1081_v1 = vadd.f32 %v3957_v58, %v1080_v55  ;;  %v1109_v11 = vmax.f32 %v1089_v3, 0.0  ;;  %v1724_v41 = vmax.f32 %v1636_v46, 0.0 }
 0x1f2   : > { %v3188_v63 = vpop.f32.mrf.mxu1  ;;  %v1721_v47 = vmax.f32 %v1625_v50, 0.0  ;;  %v1722_v48 = vmax.f32 %v1628_v36, 0.0  ;;  %v1673_v31 = vadd.f32 %v4021_v19, %v3997_v39  ;;  %v1734_v49 = vmax.f32 %v1676_v0, 0.0  ;;  %v3513_v19 = vld [vmem:[%s4362_s12 + $0x18] sm:$0xff]   ;;  %v3514_v36 = vld [vmem:[%s4362_s12 + $0x10] sm:$0xff]  }
 0x1f3   : > { %v1092_v2 = vadd.f32 %v3188_v63, %v3957_v58  ;;  %3205 = vmatprep.mubr.msk.bf16.mxu1 %vm973_vm0, %v1115_v57  ;;  %v1107_v9 = vmax.f32 %v1081_v1, 0.0  ;;  %v1652_v57 = vadd.f32 %v3997_v39, %v1651_v8  ;;  %v1725_v1 = vmax.f32 %v1641_v54, 0.0  ;;  %3305 = vmatprep.subr.bf16.mxu0 %v3513_v19 }
 0x1f4   : > { %v1083_v5 = vpop.f32.mrf.mxu1  ;;  %3206 = vmatmul.mubr.msk.bf16.gmra.mxu1 %vm973_vm0, %v1116_v62  ;;  %v1748_v52 = vpack.c.bf16 %v1722_v48, %v1721_v47  ;;  %v1727_v62 = vmax.f32 %v1649_v22, 0.0  ;;  %v1732_v8 = vmax.f32 %v1668_v43, 0.0  ;;  %v1733_v20 = vmax.f32 %v1673_v31, 0.0  ;;  %3306 = vmatpush3.bf16.msra.mxu0 %v3513_v19  ;;  %v3519_v47 = vld [vmem:[%s4362_s12] sm:$0xff]   ;;  %v3521_v48 = vld [vmem:[%s4365_s15 + $0x18] sm:$0xff]  }
 0x1f5   : > { %v1084_v6 = vadd.f32 %v3957_v58, %v1083_v5  ;;  %v1110_v7 = vmax.f32 %v1092_v2, 0.0  ;;  %v1596_v58 = vadd.f32 %v3928_v44, %v3997_v39  ;;  %v1620_v44 = vadd.f32 %v3997_v39, %v3952_v56  ;;  %3307 = vmatprep.subr.bf16.mxu0 %v3514_v36  ;;  %v3524_v22 = vld [vmem:[%s4365_s15] sm:$0xff]  }
 0x1f6   : > { %v1633_v56 = vadd.f32 %v3997_v39, %v3965_v4  ;;  %v1680_v4 = vpop.f32.mrf.mxu0  ;;  %v1728_v63 = vmax.f32 %v1652_v57, 0.0  ;;  %v1726_v2 = vmax.f32 %v1644_v59, 0.0  ;;  %v1665_v5 = vadd.f32 %v3997_v39, %v1664_v51 }
 0x1f7   : > { %v1108_v10 = vmax.f32 %v1084_v6, 0.0  ;;  %v1118_v18 = vpack.c.bf16 %v1110_v7, %v1109_v11  ;;  %v1714_v23 = vmax.f32 %v1596_v58, 0.0  ;;  %v1720_v30 = vmax.f32 %v1620_v44, 0.0 }
 0x1f8   : > { %v1723_v38 = vmax.f32 %v1633_v56, 0.0  ;;  %v3256_v61 = vpop.f32.mrf.mxu0  ;;  %v1751_v40 = vpack.c.bf16 %v1728_v63, %v1727_v62  ;;  %v1750_v6 = vpack.c.bf16 %v1726_v2, %v1725_v1  ;;  %v1731_v7 = vmax.f32 %v1665_v5, 0.0  ;;  %3308 = vmatpush3.bf16.msra.mxu0 %v3514_v36 }
 0x1f9   : > { %v1117_v12 = vpack.c.bf16 %v1108_v10, %v1107_v9  ;;  %v1744_v25 = vpack.c.bf16 %v1714_v23, %v1713_v21  ;;  %v1747_v34 = vpack.c.bf16 %v1720_v30, %v1719_v29  ;;  %v1729_v9 = vmax.f32 %v1657_v60, 0.0 }
 0x1fa   : > { %v1749_v55 = vpack.c.bf16 %v1724_v41, %v1723_v38  ;;  %v1683_v3 = vpop.f32.mrf.mxu0  ;;  %v1730_v10 = vmax.f32 %v1660_v13, 0.0  ;;  %v1754_v42 = vpack.c.bf16 %v1734_v49, %v1733_v20  ;;  %v1689_v44 = vadd.f32 %v3255_v37, %v3997_v39  ;;  %v3518_v37 = vld [vmem:[%s4365_s15 + $0x28] sm:$0xff]   ;;  %v3520_v41 = vld [vmem:[%s4365_s15 + $0x20] sm:$0xff]  }
 0x1fb   : > { %3209 = vmatprep.mubr.msk.bf16.mxu1 %vm973_vm0, %v1117_v12  ;;  %v1753_v12 = vpack.c.bf16 %v1732_v8, %v1731_v7  ;;  %v1684_v15 = vadd.f32 %v3997_v39, %v1683_v3  ;;  %v3627_v50 = vmov 0.0   ;;  %v3515_v38 = vld [vmem:[%s4362_s12 + $0x8] sm:$0xff]  }
 0x1fc   : > { %3210 = vmatmul.mubr.msk.bf16.gmra.mxu1 %vm973_vm0, %v1118_v18  ;;  %v3259_v45 = vpop.f32.mrf.mxu0  ;;  %v1752_v16 = vpack.c.bf16 %v1730_v10, %v1729_v9  ;;  %v1737_v28 = vmax.f32 %v1689_v44, 0.0  ;;  %3345 = vmatprep.subr.bf16.mxu1 %v3627_v50 }
 0x1fd   : > { %3269 = vmatprep.mubr.msk.bf16.mxu1 %vm973_vm0, %v1743_v14  ;;  %v1681_v14 = vadd.f32 %v3997_v39, %v1680_v4  ;;  %v1736_v58 = vmax.f32 %v1684_v15, 0.0  ;;  %v1705_v33 = vadd.f32 %v3259_v45, %v3997_v39  ;;  %3309 = vmatprep.subr.bf16.mxu0 %v3515_v38  ;;  %v3522_v4 = vld [vmem:[%s4365_s15 + $0x10] sm:$0xff]  }
 0x1fe   : > { %v1696_v11 = vpop.f32.mrf.mxu0  ;;  %3310 = vmatpush3.bf16.msra.mxu0 %v3515_v38 }
 0x1ff   : > { %v1735_v18 = vmax.f32 %v1681_v14, 0.0  ;;  %v1697_v51 = vadd.f32 %v3997_v39, %v1696_v11  ;;  %3311 = vmatprep.subr.bf16.mxu0 %v3519_v47 }
 0x200   : > { %v3260_v17 = vpop.f32.mrf.mxu0 }
 0x201   : > { %v1755_v23 = vpack.c.bf16 %v1736_v58, %v1735_v18  ;;  %v1739_v26 = vmax.f32 %v1697_v51, 0.0  ;;  %v1708_v53 = vadd.f32 %v3260_v17, %v3997_v39 }
 0x202   : > { %v1699_v21 = vpop.f32.mrf.mxu0  ;;  %3312 = vmatpush3.bf16.msra.mxu0 %v3519_v47 }
 0x203   : > { %v1742_v56 = vmax.f32 %v1708_v53, 0.0 }
 0x204   : > { %3270 = vmatmul.mubr.msk.bf16.vlgmr.msra.gmra.mxu1 %vm973_vm0, %v1744_v25  ;;  %v1692_v25 = vadd.f32 %v3256_v61, %v3997_v39 }
 0x205   : > { %3273 = vmatprep.mubr.msk.bf16.mxu1 %vm973_vm0, %v1745_v24  ;;  %v1700_v24 = vadd.f32 %v3997_v39, %v1699_v21  ;;  %v3517_v39 = vld [vmem:[%s4365_s15 + $0x30] sm:$0xff]  }
 0x206   : > { %v1738_v29 = vmax.f32 %v1692_v25, 0.0 }
 0x207   : > { %v1740_v27 = vmax.f32 %v1700_v24, 0.0 }
 0x208   : > { %v1756_v32 = vpack.c.bf16 %v1738_v29, %v1737_v28 }
 0x209   : > { %v1757_v30 = vpack.c.bf16 %v1740_v27, %v1739_v26 }
 0x20c   : > { %3274 = vmatmul.mubr.msk.bf16.gmra.mxu1 %vm973_vm0, %v1746_v35  ;;  %v3516_v35 = vld [vmem:[%s4365_s15 + $0x38] sm:$0xff]  }
 0x20d   : > { %3277 = vmatprep.mubr.msk.bf16.mxu1 %vm973_vm0, %v1747_v34  ;;  %v1741_v34 = vmax.f32 %v1705_v33, 0.0  ;;  %3346 = vmatpush3.bf16.msra.mxu1 %v3516_v35 }
 0x20e   : > { %3347 = vmatprep.subr.bf16.mxu1 %v3627_v50 }
 0x20f   : > { %v1758_v46 = vpack.c.bf16 %v1742_v56, %v1741_v34 }
 0x211   : > { %3348 = vmatpush3.bf16.msra.mxu1 %v3517_v39 }
 0x212   : > { %3349 = vmatprep.subr.bf16.mxu1 %v3627_v50 }
 0x214   : > { %3278 = vmatmul.mubr.msk.bf16.gmra.mxu1 %vm973_vm0, %v1748_v52  ;;  %v4131_v52 = vld [vmem:[%s4357_s7] ss:$0 sm:$0xff] }
 0x215   : > { %3281 = vmatprep.mubr.msk.bf16.mxu1 %vm973_vm0, %v1749_v55  ;;  %3350 = vmatpush3.bf16.msra.mxu1 %v3518_v37  ;;  %v3523_v55 = vld [vmem:[%s4365_s15 + $0x8] sm:$0xff]  }
 0x216   : > { %3351 = vmatprep.subr.bf16.mxu1 %v3627_v50 }
 0x219   : > { %3352 = vmatpush3.bf16.msra.mxu1 %v3520_v41 }
 0x21a   : > { %3353 = vmatprep.subr.bf16.mxu1 %v3627_v50 }
 0x21c   : > { %3282 = vmatmul.mubr.msk.bf16.gmra.mxu1 %vm973_vm0, %v1750_v6 }
 0x21d   : > { %3285 = vmatprep.mubr.msk.bf16.mxu1 %vm973_vm0, %v1751_v40  ;;  %3354 = vmatpush3.bf16.msra.mxu1 %v3521_v48 }
 0x21e   : > { %3355 = vmatprep.subr.bf16.mxu1 %v3627_v50 }
 0x221   : > { %3356 = vmatpush3.bf16.msra.mxu1 %v3522_v4 }
 0x222   : > { %3357 = vmatprep.subr.bf16.mxu1 %v3627_v50 }
 0x224   : > { %3286 = vmatmul.mubr.msk.bf16.gmra.mxu1 %vm973_vm0, %v1752_v16 }
 0x225   : > { %3289 = vmatprep.mubr.msk.bf16.mxu1 %vm973_vm0, %v1753_v12  ;;  %3358 = vmatpush3.bf16.msra.mxu1 %v3523_v55 }
 0x226   : > { %3359 = vmatprep.subr.bf16.mxu1 %v3627_v50 }
 0x229   : > { %3360 = vmatpush3.bf16.msra.mxu1 %v3524_v22 }
 0x22a   : > { %3365 = vmatprep.subr.bf16.mxu1 %v3627_v50 }
 0x22c   : > { %3290 = vmatmul.mubr.msk.bf16.gmra.mxu1 %vm973_vm0, %v1754_v42 }
 0x22d   : > { %3293 = vmatprep.mubr.msk.bf16.mxu1 %vm973_vm0, %v1755_v23 }
 0x234   : > { %3294 = vmatmul.mubr.msk.bf16.gmra.mxu1 %vm973_vm0, %v1756_v32 }
 0x235   : > { %3297 = vmatprep.mubr.msk.bf16.mxu1 %vm973_vm0, %v1757_v30 }
 0x23c   : > { %3298 = vmatmul.mubr.msk.bf16.gmra.mxu1 %vm973_vm0, %v1758_v46 }
 0x23d   : > { %3361 = vmatprep.mubr.msk.bf16.mxu1 %vm3628_vm1, %v3627_v50 }
 0x2a4   : > { %v3199_v57 = vpop.f32.mrf.mxu1 }
 0x2a5   : > { %v1225_v59 = vadd.f32 %v3199_v57, %v4131_v52 }
 0x2a6   : > { %v1216_v54 = vpop.f32.mrf.mxu1 }
 0x2a7   : > { %v1217_v62 = vadd.f32 %v4131_v52, %v1216_v54  ;;  %v1281_v2 = vmax.f32 %v1225_v59, 0.0 }
 0x2a8   : > { %v3200_v61 = vpop.f32.mrf.mxu1 }
 0x2a9   : > { %v1228_v63 = vadd.f32 %v3200_v61, %v4131_v52  ;;  %v1279_v43 = vmax.f32 %v1217_v62, 0.0 }
 0x2aa   : > { %v1219_v1 = vpop.f32.mrf.mxu1 }
 0x2ab   : > { %v1282_v3 = vmax.f32 %v1228_v63, 0.0  ;;  %v1220_v40 = vadd.f32 %v4131_v52, %v1219_v1 }
 0x2ac   : > { %v3203_v5 = vpop.f32.mrf.mxu1 }
 0x2ad   : > { %v1302_v6 = vmax.f32 %v1281_v2, %v1282_v3  ;;  %v1280_v60 = vmax.f32 %v1220_v40, 0.0  ;;  %v1241_v13 = vadd.f32 %v3203_v5, %v4131_v52 }
 0x2ae   : > { %v1232_v45 = vpop.f32.mrf.mxu1 }
 0x2af   : > { %v1303_v7 = vrot.slane %v1302_v6, 4  ;;  %v1295_v8 = vmax.f32 %v1279_v43, %v1280_v60  ;;  %v1233_v11 = vadd.f32 %v4131_v52, %v1232_v45  ;;  %v1285_v14 = vmax.f32 %v1241_v13, 0.0 }
 0x2b0   : > { %v3204_v9 = vpop.f32.mrf.mxu1 }
 0x2b1   : > { %v1296_v10 = vrot.slane %v1295_v8, 4  ;;  %v1244_v12 = vadd.f32 %v3204_v9, %v4131_v52  ;;  %v1304_v16 = vmax.f32 %v1302_v6, %v1303_v7  ;;  %v1283_v58 = vmax.f32 %v1233_v11, 0.0 }
 0x2b2   : > { %v1235_v15 = vpop.f32.mrf.mxu1 }
 0x2b3   : > { %v1297_v31 = vmax.f32 %v1295_v8, %v1296_v10  ;;  %v1286_v0 = vmax.f32 %v1244_v12, 0.0  ;;  %v1236_v17 = vadd.f32 %v4131_v52, %v1235_v15  ;;  %v1305_v23 = vrot.slane %v1304_v16, 2 }
 0x2b4   : > { %v3207_v18 = vpop.f32.mrf.mxu1 }
 0x2b5   : > { %v1316_v20 = vmax.f32 %v1285_v14, %v1286_v0  ;;  %v1284_v49 = vmax.f32 %v1236_v17, 0.0  ;;  %v1298_v51 = vrot.slane %v1297_v31, 2  ;;  %v1257_v42 = vadd.f32 %v3207_v18, %v4131_v52 }
 0x2b6   : > { %v1248_v21 = vpop.f32.mrf.mxu1  ;;  %v1306_v30 = vmax.f32 %v1304_v16, %v1305_v23 }
 0x2b7   : > { %v1317_v24 = vrot.slane %v1316_v20, 4  ;;  %v1309_v19 = vmax.f32 %v1283_v58, %v1284_v49  ;;  %v1249_v27 = vadd.f32 %v4131_v52, %v1248_v21  ;;  %v1299_v32 = vmax.f32 %v1297_v31, %v1298_v51 }
 0x2b8   : > { %v3208_v44 = vpop.f32.mrf.mxu1  ;;  %v1289_v53 = vmax.f32 %v1257_v42, 0.0  ;;  %v1307_v47 = vrot.slane %v1306_v30, 1 }
 0x2b9   : > { %v1318_v25 = vmax.f32 %v1316_v20, %v1317_v24  ;;  %v1310_v26 = vrot.slane %v1309_v19, 4  ;;  %v1260_v28 = vadd.f32 %v3208_v44, %v4131_v52  ;;  %v1287_v36 = vmax.f32 %v1249_v27, 0.0 }
 0x2ba   : > { %v1251_v29 = vpop.f32.mrf.mxu1  ;;  %v1300_v48 = vrot.slane %v1299_v32, 1  ;;  %v1308_v40 = vmax.f32 %v1306_v30, %v1307_v47 }
 0x2bb   : > { %v1311_v33 = vmax.f32 %v1309_v19, %v1310_v26  ;;  %v1290_v34 = vmax.f32 %v1260_v28, 0.0  ;;  %v1252_v56 = vadd.f32 %v4131_v52, %v1251_v29  ;;  %v1319_v35 = vrot.slane %v1318_v25, 2 }
 0x2bc   : > { %v3211_v46 = vpop.f32.mrf.mxu1  ;;  %v1301_v5 = vmax.f32 %v1299_v32, %v1300_v48  ;;  %v2426_v31 = vpack.c.bf16 %v1308_v40, %v1308_v40 }
 0x2bd   : > { %v1312_v39 = vrot.slane %v1311_v33, 2  ;;  %v1330_v37 = vmax.f32 %v1289_v53, %v1290_v34  ;;  %v1288_v38 = vmax.f32 %v1252_v56, 0.0  ;;  %v1273_v55 = vadd.f32 %v3211_v46, %v4131_v52 }
 0x2be   : > { %v1264_v41 = vpop.f32.mrf.mxu1  ;;  %v1320_v59 = vmax.f32 %v1318_v25, %v1319_v35  ;;  %v2425_v0 = vpack.c.bf16 %v1301_v5, %v1301_v5  ;;  %v2458_v27 = vunpack.c.l.b16 %v2426_v31 }
 0x2bf   : > { %v1313_v4 = vmax.f32 %v1311_v33, %v1312_v39  ;;  %v1331_v22 = vrot.slane %v1330_v37, 4  ;;  %v1323_v57 = vmax.f32 %v1287_v36, %v1288_v38  ;;  %v1265_v62 = vadd.f32 %v4131_v52, %v1264_v41 }
 0x2c0   : > { %v3212_v54 = vpop.f32.mrf.mxu1  ;;  %v1293_v43 = vmax.f32 %v1273_v55, 0.0  ;;  %v1321_v9 = vrot.slane %v1320_v59, 1  ;;  %v2457_v28 = vunpack.c.l.b16 %v2425_v0 }
 0x2c1   : > { %v1314_v61 = vrot.slane %v1313_v4, 1  ;;  %v1332_v63 = vmax.f32 %v1330_v37, %v1331_v22  ;;  %v1324_v1 = vrot.slane %v1323_v57, 4  ;;  %v1276_v2 = vadd.f32 %v3212_v54, %v4131_v52 }
 0x2c2   : > { %v1267_v3 = vpop.f32.mrf.mxu1  ;;  %v1291_v10 = vmax.f32 %v1265_v62, 0.0  ;;  %v1322_v21 = vmax.f32 %v1320_v59, %v1321_v9 }
 0x2c3   : > { %v1268_v6 = vadd.f32 %v4131_v52, %v1267_v3  ;;  %v1315_v60 = vmax.f32 %v1313_v4, %v1314_v61  ;;  %v1333_v13 = vrot.slane %v1332_v63, 2  ;;  %v1325_v45 = vmax.f32 %v1323_v57, %v1324_v1  ;;  %v4152_v52 = vld [vmem:[%s4361_s11] ss:$0 sm:$0xff] }
 0x2c4   : > { %v1294_v7 = vmax.f32 %v1276_v2, 0.0  ;;  %v3271_v8 = vpop.f32.mrf.mxu1  ;;  %v2428_v46 = vpack.c.bf16 %v1322_v21, %v1322_v21  ;;  %v2466_v4 = vsel %vm2465_vm2, %v2458_v27, %v2457_v28 }
 0x2c5   : > { %v1292_v11 = vmax.f32 %v1268_v6, 0.0  ;;  %v1334_v12 = vmax.f32 %v1332_v63, %v1333_v13  ;;  %v1326_v14 = vrot.slane %v1325_v45, 2  ;;  %v2427_v18 = vpack.c.bf16 %v1315_v60, %v1315_v60 }
 0x2c6   : > { %v1344_v15 = vmax.f32 %v1293_v43, %v1294_v7  ;;  %v1880_v16 = vpop.f32.mrf.mxu1  ;;  %v1889_v25 = vadd.f32 %v3271_v8, %v4152_v52  ;;  %v2460_v3 = vunpack.c.l.b16 %v2428_v46 }
 0x2c7   : > { %v1337_v17 = vmax.f32 %v1291_v10, %v1292_v11  ;;  %v1327_v58 = vmax.f32 %v1325_v45, %v1326_v14  ;;  %v1881_v51 = vadd.f32 %v4152_v52, %v1880_v16  ;;  %v1335_v19 = vrot.slane %v1334_v12, 1 }
 0x2c8   : > { %v1345_v20 = vrot.slane %v1344_v15, 4  ;;  %v3272_v49 = vpop.f32.mrf.mxu1  ;;  %v2459_v32 = vunpack.c.l.b16 %v2427_v18  ;;  %v2009_v47 = vmax.f32 %v1889_v25, 0.0 }
 0x2c9   : > { %v1338_v23 = vrot.slane %v1337_v17, 4  ;;  %v1892_v24 = vadd.f32 %v3272_v49, %v4152_v52  ;;  %v1328_v42 = vrot.slane %v1327_v58, 1  ;;  %v2007_v39 = vmax.f32 %v1881_v51, 0.0 }
 0x2ca   : > { %v1346_v44 = vmax.f32 %v1344_v15, %v1345_v20  ;;  %v1883_v26 = vpop.f32.mrf.mxu1  ;;  %v1336_v37 = vmax.f32 %v1334_v12, %v1335_v19  ;;  %v2468_v57 = vsel %vm2467_vm3, %v2459_v32, %v2466_v4 }
 0x2cb   : > { %v1339_v29 = vmax.f32 %v1337_v17, %v1338_v23  ;;  %v1884_v30 = vadd.f32 %v4152_v52, %v1883_v26  ;;  %v1329_v33 = vmax.f32 %v1327_v58, %v1328_v42  ;;  %v2010_v34 = vmax.f32 %v1892_v24, 0.0 }
 0x2cc   : > { %v1347_v53 = vrot.slane %v1346_v44, 2  ;;  %v3275_v56 = vpop.f32.mrf.mxu1  ;;  %v2430_v40 = vpack.c.bf16 %v1336_v37, %v1336_v37  ;;  %v2470_v45 = vsel %vm2469_vm5, %v2460_v3, %v2468_v57 }
 0x2cd   : > { %v1340_v35 = vrot.slane %v1339_v29, 2  ;;  %v2008_v36 = vmax.f32 %v1884_v30, 0.0  ;;  %v2429_v38 = vpack.c.bf16 %v1329_v33, %v1329_v33  ;;  %v2040_v59 = vpack.c.bf16 %v2010_v34, %v2009_v47 }
 0x2ce   : > { %v1348_v41 = vmax.f32 %v1346_v44, %v1347_v53  ;;  %v1896_v48 = vpop.f32.mrf.mxu1  ;;  %v1905_v43 = vadd.f32 %v3275_v56, %v4152_v52  ;;  %v2462_v15 = vunpack.c.l.b16 %v2430_v40 }
 0x2cf   : > { %v1341_v55 = vmax.f32 %v1339_v29, %v1340_v35  ;;  %v2039_v22 = vpack.c.bf16 %v2008_v36, %v2007_v39  ;;  %v2461_v62 = vunpack.c.l.b16 %v2429_v38  ;;  %v1897_v1 = vadd.f32 %v4152_v52, %v1896_v48 }
 0x2d0   : > { %v1349_v54 = vrot.slane %v1348_v41, 1  ;;  %v3276_v61 = vpop.f32.mrf.mxu1  ;;  %v2013_v16 = vmax.f32 %v1905_v43, 0.0 }
 0x2d1   : > { %v1342_v63 = vrot.slane %v1341_v55, 1  ;;  %v1908_v2 = vadd.f32 %v3276_v61, %v4152_v52  ;;  %3313 = vmatprep.mubr.msk.bf16.mxu0 %vm2110_vm4, %v2039_v22  ;;  %v2472_v10 = vsel %vm2471_vm6, %v2461_v62, %v2470_v45  ;;  %v2011_v12 = vmax.f32 %v1897_v1, 0.0 }
 0x2d2   : > { %v1350_v5 = vmax.f32 %v1348_v41, %v1349_v54  ;;  %v1899_v6 = vpop.f32.mrf.mxu1  ;;  %3314 = vmatmul.mubr.msk.bf16.vlgmr.msra.gmra.mxu0 %vm2110_vm4, %v2040_v59  ;;  %v2474_v49 = vsel %vm2473_vm7, %v2462_v15, %v2472_v10 }
 0x2d3   : > { %v1343_v60 = vmax.f32 %v1341_v55, %v1342_v63  ;;  %v1900_v13 = vadd.f32 %v4152_v52, %v1899_v6  ;;  %v2014_v8 = vmax.f32 %v1908_v2, 0.0 }
 0x2d4   : > { %v2432_v7 = vpack.c.bf16 %v1350_v5, %v1350_v5  ;;  %v3279_v9 = vpop.f32.mrf.mxu1 }
 0x2d5   : > { %v2431_v11 = vpack.c.bf16 %v1343_v60, %v1343_v60  ;;  %v2012_v14 = vmax.f32 %v1900_v13, 0.0  ;;  %v2042_v58 = vpack.c.bf16 %v2014_v8, %v2013_v16  ;;  %v1921_v24 = vadd.f32 %v3279_v9, %v4152_v52 }
 0x2d6   : > { %v1912_v31 = vpop.f32.mrf.mxu1  ;;  %v2464_v18 = vunpack.c.l.b16 %v2432_v7 }
 0x2d7   : > { %v2463_v0 = vunpack.c.l.b16 %v2431_v11  ;;  %v2041_v17 = vpack.c.bf16 %v2012_v14, %v2011_v12  ;;  %v1913_v21 = vadd.f32 %v4152_v52, %v1912_v31  ;;  %v2017_v30 = vmax.f32 %v1921_v24, 0.0 }
 0x2d8   : > { %v3280_v20 = vpop.f32.mrf.mxu1 }
 0x2d9   : > { %v1924_v23 = vadd.f32 %v3280_v20, %v4152_v52  ;;  %3317 = vmatprep.mubr.msk.bf16.mxu0 %vm2110_vm4, %v2041_v17  ;;  %v2476_v51 = vsel %vm2475_vm8, %v2463_v0, %v2474_v49  ;;  %v2015_v28 = vmax.f32 %v1913_v21, 0.0 }
 0x2da   : > { %v1915_v19 = vpop.f32.mrf.mxu1  ;;  %3318 = vmatmul.mubr.msk.bf16.gmra.mxu0 %vm2110_vm4, %v2042_v58  ;;  %v2478_v42 = vsel %vm2477_vm9, %v2464_v18, %v2476_v51 }
 0x2db   : > { %v1916_v44 = vadd.f32 %v4152_v52, %v1915_v19  ;;  %v2479_v25 = vpack.c.b16 %v2478_v42, %v2478_v42  ;;  %v2018_v26 = vmax.f32 %v1924_v23, 0.0 }
 0x2dc   : > { %v3283_v27 = vpop.f32.mrf.mxu1 }
 0x2dd   : > { %v2016_v29 = vmax.f32 %v1916_v44, 0.0  ;;  %3362 = vmatmul.mubr.bf16.vlgmr.msra.gmra.mxu1 %v2479_v25  ;;  %v2044_v53 = vpack.c.bf16 %v2018_v26, %v2017_v30  ;;  %v1937_v35 = vadd.f32 %v3283_v27, %v4152_v52 }
 0x2de   : > { %v1928_v32 = vpop.f32.mrf.mxu1  ;;  %3381 = vmatprep.mubr.msk.bf16.mxu1 %vm3628_vm1, %v3627_v50 }
 0x2df   : > { %v2043_v33 = vpack.c.bf16 %v2016_v29, %v2015_v28  ;;  %v1929_v56 = vadd.f32 %v4152_v52, %v1928_v32  ;;  %v2021_v48 = vmax.f32 %v1937_v35, 0.0 }
 0x2e0   : > { %v3284_v34 = vpop.f32.mrf.mxu1 }
 0x2e1   : > { %v1940_v46 = vadd.f32 %v3284_v34, %v4152_v52  ;;  %3321 = vmatprep.mubr.msk.bf16.mxu0 %vm2110_vm4, %v2043_v33  ;;  %v2019_v41 = vmax.f32 %v1929_v56, 0.0 }
 0x2e2   : > { %v1931_v39 = vpop.f32.mrf.mxu1  ;;  %3322 = vmatmul.mubr.msk.bf16.gmra.mxu0 %vm2110_vm4, %v2044_v53 }
 0x2e3   : > { %v1932_v36 = vadd.f32 %v4152_v52, %v1931_v39  ;;  %v2022_v37 = vmax.f32 %v1940_v46, 0.0 }
 0x2e4   : > { %v3287_v38 = vpop.f32.mrf.mxu1 }
 0x2e5   : > { %v2020_v47 = vmax.f32 %v1932_v36, 0.0  ;;  %v2046_v22 = vpack.c.bf16 %v2022_v37, %v2021_v48  ;;  %v1953_v61 = vadd.f32 %v3287_v38, %v4152_v52  ;;  %v3525_v37 = vld [vmem:[%s4366_s16 + $0x38] sm:$0xff]   ;;  %v3527_v38 = vld [vmem:[%s4366_s16 + $0x28] sm:$0xff]   ;;  %v3530_v48 = vld [vmem:[%s4366_s16 + $0x10] sm:$0xff]  }
 0x2e6   : > { %v1944_v4 = vpop.f32.mrf.mxu1  ;;  %3366 = vmatpush3.bf16.msra.mxu1 %v3525_v37 }
 0x2e7   : > { %v2045_v55 = vpack.c.bf16 %v2020_v47, %v2019_v41  ;;  %v1945_v54 = vadd.f32 %v4152_v52, %v1944_v4  ;;  %v2025_v5 = vmax.f32 %v1953_v61, 0.0  ;;  %3367 = vmatprep.subr.bf16.mxu1 %v3627_v50  ;;  %v3528_v41 = vld [vmem:[%s4366_s16 + $0x20] sm:$0xff]   ;;  %v3529_v47 = vld [vmem:[%s4366_s16 + $0x18] sm:$0xff]   ;;  %v3531_v4 = vld [vmem:[%s4366_s16 + $0x8] sm:$0xff]  }
 0x2e8   : > { %v3288_v57 = vpop.f32.mrf.mxu1 }
 0x2e9   : > { %v1956_v59 = vadd.f32 %v3288_v57, %v4152_v52  ;;  %3325 = vmatprep.mubr.msk.bf16.mxu0 %vm2110_vm4, %v2045_v55  ;;  %v2023_v3 = vmax.f32 %v1945_v54, 0.0  ;;  %v3532_v55 = vld [vmem:[%s4366_s16] sm:$0xff]  }
 0x2ea   : > { %v1947_v62 = vpop.f32.mrf.mxu1  ;;  %3326 = vmatmul.mubr.msk.bf16.gmra.mxu0 %vm2110_vm4, %v2046_v22 }
 0x2eb   : > { %v1948_v63 = vadd.f32 %v4152_v52, %v1947_v62  ;;  %v2026_v1 = vmax.f32 %v1956_v59, 0.0 }
 0x2ec   : > { %v3291_v2 = vpop.f32.mrf.mxu1 }
 0x2ed   : > { %v2024_v40 = vmax.f32 %v1948_v63, 0.0  ;;  %v2048_v60 = vpack.c.bf16 %v2026_v1, %v2025_v5  ;;  %v1969_v8 = vadd.f32 %v3291_v2, %v4152_v52 }
 0x2ee   : > { %v1960_v43 = vpop.f32.mrf.mxu1 }
 0x2ef   : > { %v2047_v6 = vpack.c.bf16 %v2024_v40, %v2023_v3  ;;  %v1961_v45 = vadd.f32 %v4152_v52, %v1960_v43  ;;  %v2029_v16 = vmax.f32 %v1969_v8, 0.0  ;;  %v4247_v8 = vld [vmem:[%s4363_s13] ss:$0 sm:$0xff] }
 0x2f0   : > { %v3292_v13 = vpop.f32.mrf.mxu1 }
 0x2f1   : > { %v1972_v7 = vadd.f32 %v3292_v13, %v4152_v52  ;;  %3329 = vmatprep.mubr.msk.bf16.mxu0 %vm2110_vm4, %v2047_v6  ;;  %v2027_v14 = vmax.f32 %v1961_v45, 0.0 }
 0x2f2   : > { %v1963_v9 = vpop.f32.mrf.mxu1  ;;  %3330 = vmatmul.mubr.msk.bf16.gmra.mxu0 %vm2110_vm4, %v2048_v60 }
 0x2f3   : > { %v1964_v10 = vadd.f32 %v4152_v52, %v1963_v9  ;;  %v2030_v11 = vmax.f32 %v1972_v7, 0.0 }
 0x2f4   : > { %v3295_v12 = vpop.f32.mrf.mxu1 }
 0x2f5   : > { %v2028_v15 = vmax.f32 %v1964_v10, 0.0  ;;  %v2050_v17 = vpack.c.bf16 %v2030_v11, %v2029_v16  ;;  %v1985_v49 = vadd.f32 %v3295_v12, %v4152_v52 }
 0x2f6   : > { %v1976_v31 = vpop.f32.mrf.mxu1 }
 0x2f7   : > { %v2049_v0 = vpack.c.bf16 %v2028_v15, %v2027_v14  ;;  %v1977_v58 = vadd.f32 %v4152_v52, %v1976_v31  ;;  %v2033_v44 = vmax.f32 %v1985_v49, 0.0 }
 0x2f8   : > { %v3296_v18 = vpop.f32.mrf.mxu1 }
 0x2f9   : > { %v1988_v20 = vadd.f32 %v3296_v18, %v4152_v52  ;;  %3333 = vmatprep.mubr.msk.bf16.mxu0 %vm2110_vm4, %v2049_v0  ;;  %v2031_v19 = vmax.f32 %v1977_v58, 0.0 }
 0x2fa   : > { %v1979_v21 = vpop.f32.mrf.mxu1  ;;  %3334 = vmatmul.mubr.msk.bf16.gmra.mxu0 %vm2110_vm4, %v2050_v17 }
 0x2fb   : > { %v1980_v23 = vadd.f32 %v4152_v52, %v1979_v21  ;;  %v2034_v51 = vmax.f32 %v1988_v20, 0.0 }
 0x2fc   : > { %v3299_v24 = vpop.f32.mrf.mxu1 }
 0x2fd   : > { %v2032_v42 = vmax.f32 %v1980_v23, 0.0  ;;  %v2052_v27 = vpack.c.bf16 %v2034_v51, %v2033_v44  ;;  %v2001_v32 = vadd.f32 %v3299_v24, %v4152_v52 }
 0x2fe   : > { %v1992_v25 = vpop.f32.mrf.mxu1 }
 0x2ff   : > { %v2051_v26 = vpack.c.bf16 %v2032_v42, %v2031_v19  ;;  %v1993_v29 = vadd.f32 %v4152_v52, %v1992_v25  ;;  %v2037_v35 = vmax.f32 %v2001_v32, 0.0 }
 0x300   : > { %v3300_v28 = vpop.f32.mrf.mxu1 }
 0x301   : > { %v2004_v30 = vadd.f32 %v3300_v28, %v4152_v52  ;;  %3337 = vmatprep.mubr.msk.bf16.mxu0 %vm2110_vm4, %v2051_v26  ;;  %v2035_v56 = vmax.f32 %v1993_v29, 0.0 }
 0x302   : > { %v1995_v33 = vpop.f32.mrf.mxu1  ;;  %3338 = vmatmul.mubr.msk.bf16.gmra.mxu0 %vm2110_vm4, %v2052_v27 }
 0x303   : > { %v1996_v53 = vadd.f32 %v4152_v52, %v1995_v33  ;;  %v2038_v34 = vmax.f32 %v2004_v30, 0.0  ;;  %v3526_v52 = vld [vmem:[%s4366_s16 + $0x30] sm:$0xff]  }
 0x304   : > { %3368 = vmatpush3.bf16.msra.mxu1 %v3526_v52 }
 0x305   : > { %v2036_v46 = vmax.f32 %v1996_v53, 0.0  ;;  %v2054_v36 = vpack.c.bf16 %v2038_v34, %v2037_v35  ;;  %3369 = vmatprep.subr.bf16.mxu1 %v3627_v50 }
 0x307   : > { %v2053_v39 = vpack.c.bf16 %v2036_v46, %v2035_v56 }
 0x308   : > { %3370 = vmatpush3.bf16.msra.mxu1 %v3527_v38 }
 0x309   : > { %3341 = vmatprep.mubr.msk.bf16.mxu0 %vm2110_vm4, %v2053_v39  ;;  %3371 = vmatprep.subr.bf16.mxu1 %v3627_v50 }
 0x30a   : > { %3342 = vmatmul.mubr.msk.bf16.gmra.mxu0 %vm2110_vm4, %v2054_v36 }
 0x30c   : > { %3372 = vmatpush3.bf16.msra.mxu1 %v3528_v41 }
 0x30d   : > { %3373 = vmatprep.subr.bf16.mxu1 %v3627_v50 }
 0x310   : > { %3374 = vmatpush3.bf16.msra.mxu1 %v3529_v47 }
 0x311   : > { %3375 = vmatprep.subr.bf16.mxu1 %v3627_v50 }
 0x314   : > { %3376 = vmatpush3.bf16.msra.mxu1 %v3530_v48 }
 0x315   : > { %3377 = vmatprep.subr.bf16.mxu1 %v3627_v50 }
 0x318   : > { %3378 = vmatpush3.bf16.msra.mxu1 %v3531_v4 }
 0x319   : > { %3379 = vmatprep.subr.bf16.mxu1 %v3627_v50 }
 0x31c   : > { %3380 = vmatpush3.bf16.msra.mxu1 %v3532_v55 }
 0x392   : > { %v3315_v22 = vpop.f32.mrf.mxu0 }
 0x393   : > { %v2202_v18 = vadd.f32 %v3315_v22, %v4247_v8 }
 0x394   : > { %v2193_v57 = vpop.f32.mrf.mxu0 }
 0x395   : > { %v2194_v15 = vadd.f32 %v4247_v8, %v2193_v57  ;;  %v2322_v28 = vmax.f32 %v2202_v18, 0.0 }
 0x396   : > { %v3316_v54 = vpop.f32.mrf.mxu0 }
 0x397   : > { %v2320_v51 = vmax.f32 %v2194_v15, 0.0  ;;  %v2205_v29 = vadd.f32 %v3316_v54, %v4247_v8 }
 0x398   : > { %v2196_v59 = vpop.f32.mrf.mxu0 }
 0x399   : > { %v2197_v10 = vadd.f32 %v4247_v8, %v2196_v59 }
 0x39a   : > { %v3319_v61 = vpop.f32.mrf.mxu0 }
 0x39b   : > { %v2321_v58 = vmax.f32 %v2197_v10, 0.0  ;;  %v2218_v24 = vadd.f32 %v3319_v61, %v4247_v8 }
 0x39c   : > { %v2209_v62 = vpop.f32.mrf.mxu0 }
 0x39d   : > { %v4242_v63 = vpop.f32.mrf.mxu1  ;;  %v2210_v16 = vadd.f32 %v4247_v8, %v2209_v62  ;;  %v2352_v30 = vmax.f32 %v2320_v51, %v2321_v58  ;;  %v2326_v35 = vmax.f32 %v2218_v24, 0.0 }
 0x39e   : > { %v3320_v1 = vpop.f32.mrf.mxu0 }
 0x39f   : > { %v3363_v2 = vpop.f32.mrf.mxu1  ;;  %v2324_v42 = vmax.f32 %v2210_v16, 0.0  ;;  %v2221_v52 = vadd.f32 %v3320_v1, %v4247_v8  ;;  %v2353_v4 = vmax.f32 %v2352_v30, %v2322_v28 }
 0x3a0   : > { %v2212_v3 = vpop.f32.mrf.mxu0 }
 0x3a1   : > { %v2566_v40 = vpop.f32.mrf.mxu1  ;;  %v2213_v11 = vadd.f32 %v4247_v8, %v2212_v3  ;;  %v2327_v1 = vmax.f32 %v2221_v52, 0.0 }
 0x3a2   : > { %v3323_v5 = vpop.f32.mrf.mxu0  ;;  %v2323_v40 = vmax.f32 %v2205_v29, 0.0 }
 0x3a3   : > { %v3364_v43 = vpop.f32.mrf.mxu1  ;;  %v2325_v20 = vmax.f32 %v2213_v11, 0.0  ;;  %v2234_v44 = vadd.f32 %v3323_v5, %v4247_v8 }
 0x3a4   : > { %v2225_v6 = vpop.f32.mrf.mxu0 }
 0x3a5   : > { %v2226_v31 = vadd.f32 %v4247_v8, %v2225_v6  ;;  %v2361_v33 = vmax.f32 %v2324_v42, %v2325_v20  ;;  %v2330_v38 = vmax.f32 %v2234_v44, 0.0 }
 0x3a6   : > { %v3324_v60 = vpop.f32.mrf.mxu0 }
 0x3a7   : > { %v2328_v25 = vmax.f32 %v2226_v31, 0.0  ;;  %v2237_v41 = vadd.f32 %v3324_v60, %v4247_v8  ;;  %v2362_v22 = vmax.f32 %v2361_v33, %v2326_v35 }
 0x3a8   : > { %v2228_v13 = vpop.f32.mrf.mxu0 }
 0x3a9   : > { %v2229_v12 = vadd.f32 %v4247_v8, %v2228_v13  ;;  %v2331_v5 = vmax.f32 %v2237_v41, 0.0 }
 0x3aa   : > { %v3327_v45 = vpop.f32.mrf.mxu0 }
 0x3ab   : > { %v2329_v49 = vmax.f32 %v2229_v12, 0.0  ;;  %v2250_v34 = vadd.f32 %v3327_v45, %v4247_v8 }
 0x3ac   : > { %v2241_v50 = vpop.f32.mrf.mxu0 }
 0x3ad   : > { %v2242_v21 = vadd.f32 %v4247_v8, %v2241_v50  ;;  %v2370_v53 = vmax.f32 %v2328_v25, %v2329_v49  ;;  %v2334_v54 = vmax.f32 %v2250_v34, 0.0  ;;  %v2354_v50 = vmax.f32 %v2353_v4, %v2323_v40 }
 0x3ae   : > { %v3328_v7 = vpop.f32.mrf.mxu0 }
 0x3af   : > { %v2332_v56 = vmax.f32 %v2242_v21, 0.0  ;;  %v2371_v57 = vmax.f32 %v2370_v53, %v2330_v38  ;;  %v2253_v59 = vadd.f32 %v3328_v7, %v4247_v8  ;;  %v2355_v20 = vrot.slane %v2354_v50, 4 }
 0x3b0   : > { %v2244_v9 = vpop.f32.mrf.mxu0 }
 0x3b1   : > { %v2245_v0 = vadd.f32 %v4247_v8, %v2244_v9  ;;  %v2363_v9 = vmax.f32 %v2362_v22, %v2327_v1  ;;  %v2372_v10 = vmax.f32 %v2371_v57, %v2331_v5  ;;  %v2335_v7 = vmax.f32 %v2253_v59, 0.0 }
 0x3b2   : > { %v3331_v14 = vpop.f32.mrf.mxu0  ;;  %v2356_v29 = vmax.f32 %v2354_v50, %v2355_v20 }
 0x3b3   : > { %v2333_v26 = vmax.f32 %v2245_v0, 0.0  ;;  %v2266_v39 = vadd.f32 %v3331_v14, %v4247_v8  ;;  %v2364_v49 = vrot.slane %v2363_v9, 4  ;;  %v2373_v21 = vrot.slane %v2372_v10, 4 }
 0x3b4   : > { %v2257_v17 = vpop.f32.mrf.mxu0 }
 0x3b5   : > { %v2258_v19 = vadd.f32 %v4247_v8, %v2257_v17  ;;  %v2379_v47 = vmax.f32 %v2332_v56, %v2333_v26  ;;  %v2338_v62 = vmax.f32 %v2266_v39, 0.0  ;;  %v2365_v30 = vmax.f32 %v2363_v9, %v2364_v49 }
 0x3b6   : > { %v3332_v23 = vpop.f32.mrf.mxu0 }
 0x3b7   : > { %v2336_v36 = vmax.f32 %v2258_v19, 0.0  ;;  %v2269_v2 = vadd.f32 %v3332_v23, %v4247_v8  ;;  %v2380_v43 = vmax.f32 %v2379_v47, %v2334_v54  ;;  %v2366_v38 = vrot.slane %v2365_v30, 2 }
 0x3b8   : > { %v2260_v27 = vpop.f32.mrf.mxu0 }
 0x3b9   : > { %v2261_v32 = vadd.f32 %v4247_v8, %v2260_v27  ;;  %v2339_v12 = vmax.f32 %v2269_v2, 0.0  ;;  %v2381_v31 = vmax.f32 %v2380_v43, %v2335_v7  ;;  %v2367_v2 = vmax.f32 %v2365_v30, %v2366_v38 }
 0x3ba   : > { %v3335_v46 = vpop.f32.mrf.mxu0 }
 0x3bb   : > { %v2337_v37 = vmax.f32 %v2261_v32, 0.0  ;;  %v2282_v13 = vadd.f32 %v3335_v46, %v4247_v8  ;;  %v2382_v42 = vrot.slane %v2381_v31, 4  ;;  %v2374_v32 = vmax.f32 %v2372_v10, %v2373_v21 }
 0x3bc   : > { %v2273_v48 = vpop.f32.mrf.mxu0  ;;  %v2368_v7 = vrot.slane %v2367_v2, 1 }
 0x3bd   : > { %v2388_v55 = vmax.f32 %v2336_v36, %v2337_v37  ;;  %v2274_v3 = vadd.f32 %v4247_v8, %v2273_v48  ;;  %v2342_v18 = vmax.f32 %v2282_v13, 0.0  ;;  %v2383_v35 = vmax.f32 %v2381_v31, %v2382_v42 }
 0x3be   : > { %v3336_v61 = vpop.f32.mrf.mxu0  ;;  %v2357_v48 = vrot.slane %v2356_v29, 2  ;;  %v2375_v4 = vrot.slane %v2374_v32, 2  ;;  %v2369_v49 = vmax.f32 %v2367_v2, %v2368_v7 }
 0x3bf   : > { %v2389_v60 = vmax.f32 %v2388_v55, %v2338_v62  ;;  %v2340_v14 = vmax.f32 %v2274_v3, 0.0  ;;  %v2285_v15 = vadd.f32 %v3336_v61, %v4247_v8  ;;  %v2384_v57 = vrot.slane %v2383_v35, 2 }
 0x3c0   : > { %v2276_v6 = vpop.f32.mrf.mxu0  ;;  %v2358_v5 = vmax.f32 %v2356_v29, %v2357_v48  ;;  %v2376_v43 = vmax.f32 %v2374_v32, %v2375_v4 }
 0x3c1   : > { %v2277_v45 = vadd.f32 %v4247_v8, %v2276_v6  ;;  %v2390_v17 = vmax.f32 %v2389_v60, %v2339_v12  ;;  %v2343_v51 = vmax.f32 %v2285_v15, 0.0  ;;  %v2385_v60 = vmax.f32 %v2383_v35, %v2384_v57 }
 0x3c2   : > { %v3339_v11 = vpop.f32.mrf.mxu0  ;;  %v2377_v15 = vrot.slane %v2376_v43, 1  ;;  %v2359_v31 = vrot.slane %v2358_v5, 1 }
 0x3c3   : > { %v2341_v16 = vmax.f32 %v2277_v45, 0.0  ;;  %v2391_v25 = vrot.slane %v2390_v17, 4  ;;  %v2298_v27 = vadd.f32 %v3339_v11, %v4247_v8 }
 0x3c4   : > { %v2289_v0 = vpop.f32.mrf.mxu0 }
 0x3c5   : > { %v2397_v58 = vmax.f32 %v2340_v14, %v2341_v16  ;;  %v2290_v19 = vadd.f32 %v4247_v8, %v2289_v0  ;;  %v2392_v36 = vmax.f32 %v2390_v17, %v2391_v25  ;;  %v2346_v37 = vmax.f32 %v2298_v27, 0.0 }
 0x3c6   : > { %v3340_v23 = vpop.f32.mrf.mxu0  ;;  %v2386_v0 = vrot.slane %v2385_v60, 1  ;;  %v2577_v25 = vpack.c.bf16 %v2369_v49, %v2369_v49 }
 0x3c7   : > { %v2398_v24 = vmax.f32 %v2397_v58, %v2342_v18  ;;  %v2344_v34 = vmax.f32 %v2290_v19, 0.0  ;;  %v2301_v56 = vadd.f32 %v3340_v23, %v4247_v8  ;;  %v2393_v61 = vrot.slane %v2392_v36, 2 }
 0x3c8   : > { %v2292_v44 = vpop.f32.mrf.mxu0  ;;  %v2387_v19 = vmax.f32 %v2385_v60, %v2386_v0 }
 0x3c9   : > { %v2399_v26 = vmax.f32 %v2398_v24, %v2343_v51  ;;  %v2293_v28 = vadd.f32 %v4247_v8, %v2292_v44  ;;  %v2347_v55 = vmax.f32 %v2301_v56, 0.0  ;;  %v2394_v9 = vmax.f32 %v2392_v36, %v2393_v61 }
 0x3ca   : > { %v3343_v33 = vpop.f32.mrf.mxu0  ;;  %v2378_v51 = vmax.f32 %v2376_v43, %v2377_v15  ;;  %v2360_v24 = vmax.f32 %v2358_v5, %v2359_v31  ;;  %v2579_v32 = vpack.c.bf16 %v2387_v19, %v2387_v19 }
 0x3cb   : > { %v2400_v53 = vrot.slane %v2399_v26, 4  ;;  %v2345_v46 = vmax.f32 %v2293_v28, 0.0  ;;  %v2314_v40 = vadd.f32 %v3343_v33, %v4247_v8  ;;  %v2395_v58 = vrot.slane %v2394_v9, 1 }
 0x3cc   : > { %v2305_v39 = vpop.f32.mrf.mxu0  ;;  %v2578_v28 = vpack.c.bf16 %v2378_v51, %v2378_v51  ;;  %v2576_v30 = vpack.c.bf16 %v2360_v24, %v2360_v24 }
 0x3cd   : > { %v2406_v52 = vmax.f32 %v2344_v34, %v2345_v46  ;;  %v2401_v41 = vmax.f32 %v2399_v26, %v2400_v53  ;;  %v2306_v54 = vadd.f32 %v4247_v8, %v2305_v39  ;;  %v2350_v12 = vmax.f32 %v2314_v40, 0.0  ;;  %v2714_v40 = vld [vmem:[%s676_s24] sm:$0xff]  ;;  %s3533_s24 = scalar_lea.vmem %s2740_s21, 128 }
 0x3ce   : > { %v3344_v47 = vpop.f32.mrf.mxu0  ;;  %v2396_v44 = vmax.f32 %v2394_v9, %v2395_v58  ;;  %v2609_v34 = vunpack.c.l.b16 %v2577_v25  ;;  %v2610_v35 = vunpack.c.l.b16 %v2578_v28  ;;  %v2608_v36 = vunpack.c.l.b16 %v2576_v30  ;;  %2716 = vst.msk [vmem:[%s646_s29] sm:$0xff] %vm2715_vm10, %v2714_v40  ;;  %p3534_p1 = scmp.ne.s32.totalorder %s2740_s21, %s3533_s24  ;;  %p3541_p6 = scmp.lt.s32.totalorder %s3539_s30, %s3533_s24 }
 0x3cf   : > { %v2407_v22 = vmax.f32 %v2406_v52, %v2346_v37  ;;  %v2402_v3 = vrot.slane %v2401_v41, 2  ;;  %v2348_v13 = vmax.f32 %v2306_v54, 0.0  ;;  %v2317_v45 = vadd.f32 %v3344_v47, %v4247_v8 }
 0x3d0   : > { %v2308_v59 = vpop.f32.mrf.mxu0  ;;  %v2580_v53 = vpack.c.bf16 %v2396_v44, %v2396_v44  ;;  %v2611_v37 = vunpack.c.l.b16 %v2579_v32  ;;  %p3535_p2 = pnand %p3534_p1, %p3777_p3  ;;  %p3542_p7 = por %p3541_p6, %p3540_p5 }
 0x3d1   : > { %v2408_v62 = vmax.f32 %v2407_v22, %v2347_v55  ;;  %v2309_v1 = vadd.f32 %v4247_v8, %v2308_v59  ;;  %v2403_v11 = vmax.f32 %v2401_v41, %v2402_v3  ;;  %v2351_v17 = vmax.f32 %v2317_v45, 0.0 }
 0x3d2   : > { %v2612_v38 = vunpack.c.l.b16 %v2580_v53  ;;  %v2616_v41 = vsel %vm2465_vm2, %v2609_v34, %v2608_v36  ;;  %p3536_p4 = pneg %p3535_p2 }
 0x3d3   : > { %v2409_v6 = vrot.slane %v2408_v62, 4  ;;  %v2349_v50 = vmax.f32 %v2309_v1, 0.0  ;;  %v2404_v21 = vrot.slane %v2403_v11, 1  ;;  %v2617_v4 = vsel %vm2467_vm3, %v2610_v35, %v2616_v41  ;;  %v2995_v1 = vld [vmem:[%s4412_s3] ss:$0 sm:$0xff]  ;;  %s2724_s3 = scalar_lea.sflag [#allocation3], %s644_s25 }
 0x3d4   : > { %v2618_v57 = vsel %vm2469_vm5, %v2611_v37, %v2617_v4  ;;  %v2575_v5 = vadd.f32 %v2995_v1, %v4242_v63  ;;  %p3543_p9 = pnand %p3542_p7, %p3536_p4 }
 0x3d5   : > { %v2410_v10 = vmax.f32 %v2408_v62, %v2409_v6  ;;  %v2415_v14 = vmax.f32 %v2348_v13, %v2349_v50  ;;  %v2405_v26 = vmax.f32 %v2403_v11, %v2404_v21  ;;  %v2619_v54 = vsel %vm2471_vm6, %v2612_v38, %v2618_v57 }
 0x3d7   : > { %v2411_v16 = vrot.slane %v2410_v10, 2  ;;  %v2416_v18 = vmax.f32 %v2415_v14, %v2350_v12  ;;  %v2581_v56 = vpack.c.bf16 %v2405_v26, %v2405_v26 }
 0x3d9   : > { %v2412_v20 = vmax.f32 %v2410_v10, %v2411_v16  ;;  %v2417_v23 = vmax.f32 %v2416_v18, %v2351_v17  ;;  %v2613_v47 = vunpack.c.l.b16 %v2581_v56 }
 0x3db   : > { %v2413_v8 = vrot.slane %v2412_v20, 1  ;;  %v2418_v42 = vrot.slane %v2417_v23, 4  ;;  %v2620_v61 = vsel %vm2473_vm7, %v2613_v47, %v2619_v54 }
 0x3dd   : > { %v2419_v27 = vmax.f32 %v2417_v23, %v2418_v42  ;;  %v2414_v29 = vmax.f32 %v2412_v20, %v2413_v8 }
 0x3df   : > { %v2420_v33 = vrot.slane %v2419_v27, 2  ;;  %v2582_v39 = vpack.c.bf16 %v2414_v29, %v2414_v29 }
 0x3e1   : > { %v2421_v46 = vmax.f32 %v2419_v27, %v2420_v33  ;;  %v2614_v55 = vunpack.c.l.b16 %v2582_v39 }
 0x3e3   : > { %v2422_v52 = vrot.slane %v2421_v46, 1  ;;  %v2621_v62 = vsel %vm2475_vm8, %v2614_v55, %v2620_v61 }
 0x3e5   : > { %v2423_v48 = vmax.f32 %v2421_v46, %v2422_v52 }
 0x3e7   : > { %v2583_v22 = vpack.c.bf16 %v2423_v48, %v2423_v48 }
 0x3e9   : > { %v2615_v59 = vunpack.c.l.b16 %v2583_v22 }
 0x3eb   : > { %v2622_v2 = vsel %vm2477_vm9, %v2615_v59, %v2621_v62 }
 0x3ec   : > { %v2623_v3 = vpack.c.b16 %v2622_v2, %v2622_v2 }
 0x3ee   : > { %3382 = vmatmul.mubr.bf16.vlgmr.msra.gmra.mxu1 %v2623_v3 }
 0x4ae   : > { %v2707_v43 = vpop.f32.mrf.mxu1 }
 0x4af   : > { %v2713_v6 = vadd.f32 %v2707_v43, %v2575_v5 }
 0x4b0   : > { %v3383_v60 = vpop.f32.mrf.mxu1 }
 0x4b1   : > { %2718 = vrot.lane.b32.xlu0 %v2713_v6, %s3629_s17 }
 0x4b2   : > { %v2710_v13 = vpop.f32.mrf.mxu1 }
 0x4b4   : > { %v3384_v45 = vpop.f32.mrf.mxu1 }
 0x523   : > { %v2719_v63 = vpop.permute.xlu0 %2718 }
 0x524   : > { %2722 = vst.msk [vmem:[%s646_s29] sm:$0xff] %vm2721_vm11, %v2719_v63 }
 0x525   : > { %3546 = shalt.err (!%p3543_p9)
}
 0x526   : > { %s3547_s29 = scalar_lea.hbm %s4304_s19, 128  ;;  %s3551_s17 = scalar_lea.hbm %s4414_s18, 512 }
 0x527   : > { %p3548_p10 = scmp.ne.s32.totalorder %s4304_s19, %s3547_s29  ;;  %p3552_p13 = scmp.lt.s32.totalorder %s4304_s19, %s4414_s18 }
 0x528   : > { %p3553_p0 = scmp.lt.s32.totalorder %s3551_s17, %s3547_s29 }
 0x529   : > { %p3549_p11 = pnand %p3548_p10, %p3777_p3 }
 0x52a   : > { %p3554_p1 = por %p3553_p0, %p3552_p13 }
 0x52b   : > { %p3550_p12 = pneg %p3549_p11 }
 0x52d   : > { %p3555_p2 = pnand %p3554_p1, %p3550_p12 }
 0x52f   : > { %3558 = shalt.err (!%p3555_p2)
}
 0x530   : > { %3385 = dma.vmem_to_hbm [thread:$0]  (%p3777_p3), %s2740_s21, 128, %s4304_s19, %s2724_s3  }
 0x531 PF: > { %s4415_s23 = sld [smem:[#allocation11_spill]] }
 0x532   : > { %s4416_s27 = sld [smem:[#allocation5_spill]] }
 0x537   : > { %p3391_p4 = scmp.ge.s32.totalorder %s4415_s23, 2 }
 0x538   : > { %s2751_s24 = sand.u32 1, %s4416_s27  }
 0x539   : > { %p3388_p5 = pnand %p3391_p4, %p3786_p8  ;;  %s2752_s0 = scalar_lea.sflag [#allocation3], %s2751_s24 }
 0x53b   : > { %p3389_p6 = pneg %p3388_p5 }
 0x53d   : > { %3592 = dma.done.wait (%p3389_p6), %s2752_s0, 128  }
 0x53e   : > { %3594 = vsyncadd (%p3389_p6), %s2752_s0, 4294967168  ;;  %s31_s20 = sadd.s32 1, %s4415_s23   ;;  %s4418_s27 = sld [smem:[#allocation6_spill]] }
 0x53f   : > { %p28_p7 = scmp.ge.s32.totalorder %s31_s20, 6   ;;  %s4419_s28 = sld [smem:[#allocation7_spill]] }
 0x540   : > { %s4420_s29 = sld [smem:[#allocation16_spill]] }
 0x541   : > { %s4421_s30 = sld [smem:[#allocation9_spill]]  ;;  %30 = sbr.rel (!%p28_p7) target bundleno = 13 (0xd), region = 133 }
 0x542   : > { %s4422_s0 = sld [smem:[#allocation10_spill]] }
 0x543   : > { %s4423_s19 = sld [smem:[#allocation12_spill]] }
 0x544   : > { %s4424_s1 = sld [smem:[#allocation14_spill]] }
 0x546   :  { %2757 = vsyncpa [#allocation3], 1 }
 0x547   :  { %2759 = vsyncpa [#allocation3 + $0x1], 1 }

</bundles_post_ra>
